<compile_context>
chip_gen: v6e
topology: v6e:2x2x1
jax: 0.10.0
libtpu: 0.0.40
codegen_flags: <defaults>
</compile_context>

<pallas_src>
import math

import numpy as np
import jax
import jax.numpy as jnp
from jax import lax
from jax.experimental import pallas as pl
from jax.experimental.pallas import tpu as pltpu

# ---- model hyper-params (small, consistent with the module: heads=8, N=3,
# d_ff = 2*d_model as in 2048/1024) ----
D_MODEL = 128
HEADS = 8
D_K = D_MODEL // HEADS
N_LAYERS = 3
D_FF = 2 * D_MODEL
VOCAB = 100
MAX_SEQ = 400
EPS = 1e-6
NEG_BIG = -1e9

# ---- packed slab layout ----
# bf16 weight slab: (L, 640, 384) with per-layer rows
#   [  0:128, 0:384] = Wqkv  (Q columns pre-scaled by 1/sqrt(d_k))
#   [128:256, 0:128] = Wo
#   [256:384, 0:256] = W1
#   [384:640, 0:128] = W2
W_ROWS = 5 * D_MODEL          # 640
W_LANES = 3 * D_MODEL         # 384
# f32 bias/norm slab: (16, 384) with per-layer rows (4 per layer)
#   row 4l+0: [bq/sqrt(dk) | bk | bv]
#   row 4l+1: [b1 (256)    | bo ]
#   row 4l+2: [b2 | norm1.alpha | norm1.bias]
#   row 4l+3: [norm2.alpha | norm2.bias | 0 ]
#   row 4L  : [final.alpha | final.bias | 0 ]
B_ROWS_PER_LAYER = 4
B_ROWS = 16


# ----------------------------------------------------------------------------
# Fused whole-stack Pallas kernel
# ----------------------------------------------------------------------------
def _encoder_stack_kernel(x_ref, mb_ref, w_ref, b_ref, o_ref):
    BB, S, D = x_ref.shape
    M = BB * S

    def layer_norm(x, a, b):
        # matches torch Norm: unbiased std (n-1), eps added to std, f32 stats
        mean = jnp.mean(x, axis=-1, keepdims=True)
        xc = x - mean
        var = jnp.sum(xc * xc, axis=-1, keepdims=True) * (1.0 / (D_MODEL - 1))
        inv = pl.reciprocal(jnp.sqrt(var) + EPS, approx=True)   # EUP slot
        return a * (xc * inv) + b

    # activation slab stays resident; batch folded into the sublane/M dim
    x = x_ref[...].reshape(M, D)                                # (M, 128) f32

    for l in range(N_LAYERS):                                   # static unroll
        # ---- tile-aligned static views into the packed slabs ----
        wqkv = w_ref[l, 0:D, :]                                 # (128, 384) bf16
        wo = w_ref[l, D:2 * D, 0:D]                             # (128, 128) bf16
        w1 = w_ref[l, 2 * D:3 * D, 0:D_FF]                      # (128, 256) bf16
        w2 = w_ref[l, 3 * D:5 * D, 0:D]                         # (256, 128) bf16
        r0 = B_ROWS_PER_LAYER * l
        bqkv = b_ref[r0:r0 + 1, :]                              # (1, 384)
        b1 = b_ref[r0 + 1:r0 + 2, 0:D_FF]                       # (1, 256)
        bo = b_ref[r0 + 1:r0 + 2, D_FF:D_FF + D]                # (1, 128)
        b2 = b_ref[r0 + 2:r0 + 3, 0:D]
        n1a = b_ref[r0 + 2:r0 + 3, D:2 * D]
        n1b = b_ref[r0 + 2:r0 + 3, 2 * D:3 * D]
        n2a = b_ref[r0 + 3:r0 + 4, 0:D]
        n2b = b_ref[r0 + 3:r0 + 4, D:2 * D]

        # ---- sublayer 1: pre-norm + multi-head attention (+ residual) ----
        x2 = layer_norm(x, n1a, n1b)
        x2b = x2.astype(jnp.bfloat16)                           # single cast
        # fused QKV projection: one full-width MXU matmul, bias lane-dense
        qkv = jnp.dot(x2b, wqkv, preferred_element_type=jnp.float32) + bqkv

        per_batch = []
        for bidx in range(BB):                                  # static unroll
            row = bidx * S
            qkv_b = qkv[row:row + S]                            # (S, 384)
            bias = mb_ref[bidx]                                 # (1, S) additive mask
            head_outs = []
            for h in range(HEADS):                              # static unroll
                c = h * D_K
                qh = qkv_b[:, c:c + D_K]                        # (S,16), /sqrt(dk) folded in
                kh = qkv_b[:, D + c:D + c + D_K]
                vh = qkv_b[:, 2 * D + c:2 * D + c + D_K]
                s = lax.dot_general(qh, kh,
                                    dimension_numbers=(((1,), (1,)), ((), ())),
                                    preferred_element_type=jnp.float32)
                s = s + bias
                s = s - jnp.max(s, axis=-1, keepdims=True)
                p = jnp.exp(s)                                  # f32 (v5e-safe)
                p = p * pl.reciprocal(jnp.sum(p, axis=-1, keepdims=True),
                                      approx=True)
                head_outs.append(
                    jnp.dot(p, vh, preferred_element_type=jnp.float32))  # (S,16)
            per_batch.append(jnp.concatenate(head_outs, axis=-1))        # (S,128)
        concat = jnp.concatenate(per_batch, axis=0) if BB > 1 else per_batch[0]
        # fused output projection: one full-width (M,128)@(128,128) MXU matmul
        attn = jnp.dot(concat.astype(jnp.bfloat16), wo,
                       preferred_element_type=jnp.float32) + bo
        x = x + attn                      # dropout_1 == identity (eval)

        # ---- sublayer 2: pre-norm + feed-forward (+ residual) ----
        x2 = layer_norm(x, n2a, n2b)
        h1 = jnp.dot(x2.astype(jnp.bfloat16), w1,
                     preferred_element_type=jnp.float32) + b1
        h1 = jnp.maximum(h1, 0.0)
        ff = jnp.dot(h1.astype(jnp.bfloat16), w2,
                     preferred_element_type=jnp.float32) + b2
        x = x + ff                        # dropout_2 == identity (eval)

    # final Norm, lane-dense (BB, S, 128) store
    rf = B_ROWS_PER_LAYER * N_LAYERS
    na = b_ref[rf:rf + 1, 0:D]
    nb = b_ref[rf:rf + 1, D:2 * D]
    o_ref[...] = layer_norm(x, na, nb).reshape(BB, S, D)


def _pick_block_b(B):
    """Largest divisor of B that still leaves >= 2 grid tiles (v7x: 2 TCs)."""
    if B < 2:
        return 1
    for bb in range(B // 2, 0, -1):
        if B % bb == 0:
            return bb
    return 1


def encoder_stack(x, mask_bias, wslab, bslab):
    """x: (B, S, D) f32, mask_bias: (B, 1, S) f32 -> (B, S, D) f32."""
    B, S, D = x.shape
    bb = _pick_block_b(B)
    grid = (B // bb,)
    return pl.pallas_call(
        _encoder_stack_kernel,
        out_shape=jax.ShapeDtypeStruct((B, S, D), jnp.float32),
        grid=grid,
        in_specs=[
            pl.BlockSpec((bb, S, D), lambda i: (i, 0, 0)),      # activations
            pl.BlockSpec((bb, 1, S), lambda i: (i, 0, 0)),      # additive mask
            pl.BlockSpec(wslab.shape, lambda i: (0, 0, 0)),     # bf16 weight slab
            pl.BlockSpec(bslab.shape, lambda i: (0, 0)),        # f32 bias/norm slab
        ],
        out_specs=pl.BlockSpec((bb, S, D), lambda i: (i, 0, 0)),
        compiler_params=pltpu.CompilerParams(
            dimension_semantics=("parallel",)),
    )(x, mask_bias, wslab, bslab)


# ----------------------------------------------------------------------------
# Model glue (plain JAX)
# ----------------------------------------------------------------------------
def make_positional_encoding(max_seq_len, d_model):
    pe = np.zeros((max_seq_len, d_model), dtype=np.float32)
    pos = np.arange(max_seq_len, dtype=np.float64)[:, None]
    i_even = np.arange(0, d_model, 2, dtype=np.float64)[None, :]
    pe[:, 0::2] = np.sin(pos / 10000.0 ** (2.0 * i_even / d_model))
    pe[:, 1::2] = np.cos(pos / 10000.0 ** (2.0 * (i_even + 1.0) / d_model))
    return jnp.asarray(pe)


def encoder_forward(kp, src, mask):
    # TODO(synk): embedding gather + positional-encoding add are left to plain
    # JAX/XLA (data-dependent gather has no clean tile-based Pallas form here).
    x = jnp.take(kp["embed"], src, axis=0)                       # (B, S, D)
    S = x.shape[1]
    x = x * math.sqrt(D_MODEL) + kp["pe"][:S][None, :, :]
    mask_bias = jnp.where(mask == 0, NEG_BIG, 0.0).astype(jnp.float32)
    return encoder_stack(x, mask_bias, kp["wslab"], kp["bslab"])


# ----------------------------------------------------------------------------
# Deterministic parameter init + packed-slab layout prep for the fused kernel
# ----------------------------------------------------------------------------
def init_params(key):
    keys = iter(jax.random.split(key, 64))

    def w(shape, scale):
        return jax.random.normal(next(keys), shape, jnp.float32) * scale

    params = {
        "embed": w((VOCAB, D_MODEL), 1.0),
        "pe": make_positional_encoding(MAX_SEQ, D_MODEL),
        "a_out": jnp.ones((D_MODEL,), jnp.float32),
        "b_out": jnp.zeros((D_MODEL,), jnp.float32),
        "layers": [],
    }
    s_d = 1.0 / math.sqrt(D_MODEL)
    s_f = 1.0 / math.sqrt(D_FF)
    for _ in range(N_LAYERS):
        lp = {
            "a1": jnp.ones((D_MODEL,), jnp.float32),
            "n1": jnp.zeros((D_MODEL,), jnp.float32),
            "a2": jnp.ones((D_MODEL,), jnp.float32),
            "n2": jnp.zeros((D_MODEL,), jnp.float32),
            "wq": w((D_MODEL, D_MODEL), s_d), "bq": jnp.zeros((D_MODEL,), jnp.float32),
            "wk": w((D_MODEL, D_MODEL), s_d), "bk": jnp.zeros((D_MODEL,), jnp.float32),
            "wv": w((D_MODEL, D_MODEL), s_d), "bv": jnp.zeros((D_MODEL,), jnp.float32),
            "wo": w((D_MODEL, D_MODEL), s_d), "bo": jnp.zeros((D_MODEL,), jnp.float32),
            "w1": w((D_MODEL, D_FF), s_d), "b1": jnp.zeros((D_FF,), jnp.float32),
            "w2": w((D_FF, D_MODEL), s_f), "b2": jnp.zeros((D_MODEL,), jnp.float32),
        }
        params["layers"].append(lp)
    return params


def prepare_kernel_params(params):
    """Pack all weights into one bf16 slab and all biases/norm params into one
    f32 slab; fold 1/sqrt(d_k) into Wq/bq; column h*dk+j <-> head h, dim j."""
    L = N_LAYERS
    D = D_MODEL
    inv_sqrt_dk = 1.0 / math.sqrt(D_K)

    wslab = np.zeros((L, W_ROWS, W_LANES), np.float32)
    bslab = np.zeros((B_ROWS, W_LANES), np.float32)
    for l, lp in enumerate(params["layers"]):
        wslab[l, 0:D, 0:D] = np.asarray(lp["wq"]) * inv_sqrt_dk
        wslab[l, 0:D, D:2 * D] = np.asarray(lp["wk"])
        wslab[l, 0:D, 2 * D:3 * D] = np.asarray(lp["wv"])
        wslab[l, D:2 * D, 0:D] = np.asarray(lp["wo"])
        wslab[l, 2 * D:3 * D, 0:D_FF] = np.asarray(lp["w1"])
        wslab[l, 3 * D:5 * D, 0:D] = np.asarray(lp["w2"])

        r0 = B_ROWS_PER_LAYER * l
        bslab[r0, 0:D] = np.asarray(lp["bq"]) * inv_sqrt_dk
        bslab[r0, D:2 * D] = np.asarray(lp["bk"])
        bslab[r0, 2 * D:3 * D] = np.asarray(lp["bv"])
        bslab[r0 + 1, 0:D_FF] = np.asarray(lp["b1"])
        bslab[r0 + 1, D_FF:D_FF + D] = np.asarray(lp["bo"])
        bslab[r0 + 2, 0:D] = np.asarray(lp["b2"])
        bslab[r0 + 2, D:2 * D] = np.asarray(lp["a1"])
        bslab[r0 + 2, 2 * D:3 * D] = np.asarray(lp["n1"])
        bslab[r0 + 3, 0:D] = np.asarray(lp["a2"])
        bslab[r0 + 3, D:2 * D] = np.asarray(lp["n2"])
    rf = B_ROWS_PER_LAYER * L
    bslab[rf, 0:D] = np.asarray(params["a_out"])
    bslab[rf, D:2 * D] = np.asarray(params["b_out"])

    return {
        "embed": params["embed"],
        "pe": params["pe"],
        "wslab": jnp.asarray(wslab).astype(jnp.bfloat16),
        "bslab": jnp.asarray(bslab),
    }


# ----------------------------------------------------------------------------
if __name__ == "__main__":
    B, S = 2, 8
    key = jax.random.PRNGKey(0)
    k_param, k_src = jax.random.split(key)

    params = init_params(k_param)
    kp = prepare_kernel_params(params)

    src = jax.random.randint(k_src, (B, S), 0, VOCAB, dtype=jnp.int32)
    # mask: (B, 1, S); second batch element masks out the last 3 positions.
    mask_np = np.ones((B, 1, S), dtype=np.int32)
    mask_np[1, 0, S - 3:] = 0
    mask = jnp.asarray(mask_np)

    fwd = jax.jit(encoder_forward)
    out = fwd(kp, src, mask)
    out = jax.block_until_ready(out)

    assert out.shape == (B, S, D_MODEL)
    assert bool(jnp.all(jnp.isfinite(out)))
    print("KERNEL_OK")
</pallas_src>

<mosaic_0001>
module attributes {stable_mosaic.version = 11 : i64} {
  func.func @_encoder_stack_kernel(%arg0: i32, %arg1: memref<1x8x128xf32, #tpu.memory_space<vmem>>, %arg2: memref<1x1x8xf32, #tpu.memory_space<vmem>>, %arg3: memref<3x640x384xbf16, #tpu.memory_space<vmem>>, %arg4: memref<16x384xf32, #tpu.memory_space<vmem>>, %arg5: memref<1x8x128xf32, #tpu.memory_space<vmem>>) attributes {dimension_semantics = [#tpu.dimension_semantics<parallel>], iteration_bounds = array<i64: 2>, scalar_prefetch = 0 : i64, scratch_operands = 0 : i64, tpu.core_type = #tpu.core_type<tc>, window_params = [{transform_indices = @transform_0, window_bounds = array<i64: 1, 8, 128>}, {transform_indices = @transform_1, window_bounds = array<i64: 1, 1, 8>}, {pipeline_mode = #tpu.pipeline_mode<synchronous>, transform_indices = @transform_2, window_bounds = array<i64: 3, 640, 384>}, {pipeline_mode = #tpu.pipeline_mode<synchronous>, transform_indices = @transform_3, window_bounds = array<i64: 16, 384>}, {transform_indices = @transform_4, window_bounds = array<i64: 1, 8, 128>}]} {
    %c0 = arith.constant 0 : index
    %c0_0 = arith.constant 0 : index
    %c0_1 = arith.constant 0 : index
    %0 = vector.load %arg1[%c0, %c0_0, %c0_1] : memref<1x8x128xf32, #tpu.memory_space<vmem>>, vector<1x8x128xf32>
    %1 = vector.shape_cast %0 : vector<1x8x128xf32> to vector<8x128xf32>
    %c0_2 = arith.constant 0 : index
    %c0_3 = arith.constant 0 : index
    %c0_4 = arith.constant 0 : index
    %2 = vector.load %arg3[%c0_2, %c0_3, %c0_4] : memref<3x640x384xbf16, #tpu.memory_space<vmem>>, vector<1x128x384xbf16>
    %3 = vector.shape_cast %2 : vector<1x128x384xbf16> to vector<128x384xbf16>
    %c0_5 = arith.constant 0 : index
    %c128 = arith.constant 128 : index
    %c0_6 = arith.constant 0 : index
    %4 = vector.load %arg3[%c0_5, %c128, %c0_6] : memref<3x640x384xbf16, #tpu.memory_space<vmem>>, vector<1x128x128xbf16>
    %5 = vector.shape_cast %4 : vector<1x128x128xbf16> to vector<128x128xbf16>
    %c0_7 = arith.constant 0 : index
    %c256 = arith.constant 256 : index
    %c0_8 = arith.constant 0 : index
    %6 = vector.load %arg3[%c0_7, %c256, %c0_8] : memref<3x640x384xbf16, #tpu.memory_space<vmem>>, vector<1x128x256xbf16>
    %7 = vector.shape_cast %6 : vector<1x128x256xbf16> to vector<128x256xbf16>
    %c0_9 = arith.constant 0 : index
    %c384 = arith.constant 384 : index
    %c0_10 = arith.constant 0 : index
    %8 = vector.load %arg3[%c0_9, %c384, %c0_10] : memref<3x640x384xbf16, #tpu.memory_space<vmem>>, vector<1x256x128xbf16>
    %9 = vector.shape_cast %8 : vector<1x256x128xbf16> to vector<256x128xbf16>
    %c0_11 = arith.constant 0 : index
    %c0_12 = arith.constant 0 : index
    %10 = vector.load %arg4[%c0_11, %c0_12] : memref<16x384xf32, #tpu.memory_space<vmem>>, vector<1x384xf32>
    %c1 = arith.constant 1 : index
    %c0_13 = arith.constant 0 : index
    %11 = vector.load %arg4[%c1, %c0_13] : memref<16x384xf32, #tpu.memory_space<vmem>>, vector<1x256xf32>
    %c1_14 = arith.constant 1 : index
    %c256_15 = arith.constant 256 : index
    %12 = vector.load %arg4[%c1_14, %c256_15] : memref<16x384xf32, #tpu.memory_space<vmem>>, vector<1x128xf32>
    %c2 = arith.constant 2 : index
    %c0_16 = arith.constant 0 : index
    %13 = vector.load %arg4[%c2, %c0_16] : memref<16x384xf32, #tpu.memory_space<vmem>>, vector<1x128xf32>
    %c2_17 = arith.constant 2 : index
    %c128_18 = arith.constant 128 : index
    %14 = vector.load %arg4[%c2_17, %c128_18] : memref<16x384xf32, #tpu.memory_space<vmem>>, vector<1x128xf32>
    %c2_19 = arith.constant 2 : index
    %c256_20 = arith.constant 256 : index
    %15 = vector.load %arg4[%c2_19, %c256_20] : memref<16x384xf32, #tpu.memory_space<vmem>>, vector<1x128xf32>
    %c3 = arith.constant 3 : index
    %c0_21 = arith.constant 0 : index
    %16 = vector.load %arg4[%c3, %c0_21] : memref<16x384xf32, #tpu.memory_space<vmem>>, vector<1x128xf32>
    %c3_22 = arith.constant 3 : index
    %c128_23 = arith.constant 128 : index
    %17 = vector.load %arg4[%c3_22, %c128_23] : memref<16x384xf32, #tpu.memory_space<vmem>>, vector<1x128xf32>
    %cst = arith.constant dense<0.000000e+00> : vector<8xf32>
    %18 = vector.multi_reduction <add>, %1, %cst [1] : vector<8x128xf32> to vector<8xf32>
    %19 = vector.shape_cast %18 : vector<8xf32> to vector<8x1xf32>
    %cst_24 = arith.constant 1.280000e+02 : f32
    %20 = vector.broadcast %cst_24 : f32 to vector<8x1xf32>
    %21 = arith.divf %19, %20 : vector<8x1xf32>
    %22 = vector.broadcast %21 : vector<8x1xf32> to vector<8x128xf32>
    %23 = arith.subf %1, %22 : vector<8x128xf32>
    %24 = arith.mulf %23, %23 : vector<8x128xf32>
    %cst_25 = arith.constant dense<0.000000e+00> : vector<8xf32>
    %25 = vector.multi_reduction <add>, %24, %cst_25 [1] : vector<8x128xf32> to vector<8xf32>
    %26 = vector.shape_cast %25 : vector<8xf32> to vector<8x1xf32>
    %cst_26 = arith.constant 0.00787401571 : f32
    %27 = vector.broadcast %cst_26 : f32 to vector<8x1xf32>
    %28 = arith.mulf %26, %27 : vector<8x1xf32>
    %29 = math.sqrt %28 : vector<8x1xf32>
    %cst_27 = arith.constant 9.99999997E-7 : f32
    %30 = vector.broadcast %cst_27 : f32 to vector<8x1xf32>
    %31 = arith.addf %29, %30 : vector<8x1xf32>
    %32 = tpu.reciprocal %31 {approx = true} : vector<8x1xf32> -> vector<8x1xf32>
    %33 = vector.broadcast %32 : vector<8x1xf32> to vector<8x128xf32>
    %34 = arith.mulf %23, %33 : vector<8x128xf32>
    %35 = vector.broadcast %14 : vector<1x128xf32> to vector<8x128xf32>
    %36 = arith.mulf %35, %34 : vector<8x128xf32>
    %37 = vector.broadcast %15 : vector<1x128xf32> to vector<8x128xf32>
    %38 = arith.addf %36, %37 : vector<8x128xf32>
    %39 = arith.truncf %38 : vector<8x128xf32> to vector<8x128xbf16>
    %cst_28 = arith.constant dense<0.000000e+00> : vector<8x384xf32>
    %40 = tpu.matmul %39, %3, %cst_28 {dimension_numbers = #tpu.dot_dimension_numbers<[1], [0], [0], [1], [0, 0, 1, 1], [], []>} : vector<8x128xbf16>, vector<128x384xbf16>, vector<8x384xf32> -> vector<8x384xf32>
    %41 = vector.broadcast %10 : vector<1x384xf32> to vector<8x384xf32>
    %42 = arith.addf %40, %41 : vector<8x384xf32>
    %c0_29 = arith.constant 0 : index
    %c0_30 = arith.constant 0 : index
    %c0_31 = arith.constant 0 : index
    %43 = vector.load %arg2[%c0_29, %c0_30, %c0_31] : memref<1x1x8xf32, #tpu.memory_space<vmem>>, vector<1x1x8xf32>
    %44 = vector.shape_cast %43 : vector<1x1x8xf32> to vector<1x8xf32>
    %45 = vector.extract_strided_slice %42 {offsets = [0, 0], sizes = [8, 16], strides = [1, 1]} : vector<8x384xf32> to vector<8x16xf32>
    %46 = vector.extract_strided_slice %42 {offsets = [0, 128], sizes = [8, 16], strides = [1, 1]} : vector<8x384xf32> to vector<8x16xf32>
    %47 = vector.extract_strided_slice %42 {offsets = [0, 256], sizes = [8, 16], strides = [1, 1]} : vector<8x384xf32> to vector<8x16xf32>
    %cst_32 = arith.constant dense<0.000000e+00> : vector<8x8xf32>
    %48 = tpu.matmul %45, %46, %cst_32 {dimension_numbers = #tpu.dot_dimension_numbers<[1], [1], [0], [0], [0, 0, 1, 0], [], []>} : vector<8x16xf32>, vector<8x16xf32>, vector<8x8xf32> -> vector<8x8xf32>
    %49 = vector.broadcast %44 : vector<1x8xf32> to vector<8x8xf32>
    %50 = arith.addf %48, %49 : vector<8x8xf32>
    %cst_33 = arith.constant dense<0xFF800000> : vector<8xf32>
    %51 = vector.multi_reduction <maximumf>, %50, %cst_33 [1] : vector<8x8xf32> to vector<8xf32>
    %52 = vector.shape_cast %51 : vector<8xf32> to vector<8x1xf32>
    %53 = vector.broadcast %52 : vector<8x1xf32> to vector<8x8xf32>
    %54 = arith.subf %50, %53 : vector<8x8xf32>
    %55 = math.exp %54 : vector<8x8xf32>
    %cst_34 = arith.constant dense<0.000000e+00> : vector<8xf32>
    %56 = vector.multi_reduction <add>, %55, %cst_34 [1] : vector<8x8xf32> to vector<8xf32>
    %57 = vector.shape_cast %56 : vector<8xf32> to vector<8x1xf32>
    %58 = tpu.reciprocal %57 {approx = true} : vector<8x1xf32> -> vector<8x1xf32>
    %59 = vector.broadcast %58 : vector<8x1xf32> to vector<8x8xf32>
    %60 = arith.mulf %55, %59 : vector<8x8xf32>
    %cst_35 = arith.constant dense<0.000000e+00> : vector<8x16xf32>
    %61 = tpu.matmul %60, %47, %cst_35 {dimension_numbers = #tpu.dot_dimension_numbers<[1], [0], [0], [1], [0, 0, 1, 1], [], []>} : vector<8x8xf32>, vector<8x16xf32>, vector<8x16xf32> -> vector<8x16xf32>
    %62 = vector.extract_strided_slice %42 {offsets = [0, 16], sizes = [8, 16], strides = [1, 1]} : vector<8x384xf32> to vector<8x16xf32>
    %63 = vector.extract_strided_slice %42 {offsets = [0, 144], sizes = [8, 16], strides = [1, 1]} : vector<8x384xf32> to vector<8x16xf32>
    %64 = vector.extract_strided_slice %42 {offsets = [0, 272], sizes = [8, 16], strides = [1, 1]} : vector<8x384xf32> to vector<8x16xf32>
    %cst_36 = arith.constant dense<0.000000e+00> : vector<8x8xf32>
    %65 = tpu.matmul %62, %63, %cst_36 {dimension_numbers = #tpu.dot_dimension_numbers<[1], [1], [0], [0], [0, 0, 1, 0], [], []>} : vector<8x16xf32>, vector<8x16xf32>, vector<8x8xf32> -> vector<8x8xf32>
    %66 = vector.broadcast %44 : vector<1x8xf32> to vector<8x8xf32>
    %67 = arith.addf %65, %66 : vector<8x8xf32>
    %cst_37 = arith.constant dense<0xFF800000> : vector<8xf32>
    %68 = vector.multi_reduction <maximumf>, %67, %cst_37 [1] : vector<8x8xf32> to vector<8xf32>
    %69 = vector.shape_cast %68 : vector<8xf32> to vector<8x1xf32>
    %70 = vector.broadcast %69 : vector<8x1xf32> to vector<8x8xf32>
    %71 = arith.subf %67, %70 : vector<8x8xf32>
    %72 = math.exp %71 : vector<8x8xf32>
    %cst_38 = arith.constant dense<0.000000e+00> : vector<8xf32>
    %73 = vector.multi_reduction <add>, %72, %cst_38 [1] : vector<8x8xf32> to vector<8xf32>
    %74 = vector.shape_cast %73 : vector<8xf32> to vector<8x1xf32>
    %75 = tpu.reciprocal %74 {approx = true} : vector<8x1xf32> -> vector<8x1xf32>
    %76 = vector.broadcast %75 : vector<8x1xf32> to vector<8x8xf32>
    %77 = arith.mulf %72, %76 : vector<8x8xf32>
    %cst_39 = arith.constant dense<0.000000e+00> : vector<8x16xf32>
    %78 = tpu.matmul %77, %64, %cst_39 {dimension_numbers = #tpu.dot_dimension_numbers<[1], [0], [0], [1], [0, 0, 1, 1], [], []>} : vector<8x8xf32>, vector<8x16xf32>, vector<8x16xf32> -> vector<8x16xf32>
    %79 = vector.extract_strided_slice %42 {offsets = [0, 32], sizes = [8, 16], strides = [1, 1]} : vector<8x384xf32> to vector<8x16xf32>
    %80 = vector.extract_strided_slice %42 {offsets = [0, 160], sizes = [8, 16], strides = [1, 1]} : vector<8x384xf32> to vector<8x16xf32>
    %81 = vector.extract_strided_slice %42 {offsets = [0, 288], sizes = [8, 16], strides = [1, 1]} : vector<8x384xf32> to vector<8x16xf32>
    %cst_40 = arith.constant dense<0.000000e+00> : vector<8x8xf32>
    %82 = tpu.matmul %79, %80, %cst_40 {dimension_numbers = #tpu.dot_dimension_numbers<[1], [1], [0], [0], [0, 0, 1, 0], [], []>} : vector<8x16xf32>, vector<8x16xf32>, vector<8x8xf32> -> vector<8x8xf32>
    %83 = vector.broadcast %44 : vector<1x8xf32> to vector<8x8xf32>
    %84 = arith.addf %82, %83 : vector<8x8xf32>
    %cst_41 = arith.constant dense<0xFF800000> : vector<8xf32>
    %85 = vector.multi_reduction <maximumf>, %84, %cst_41 [1] : vector<8x8xf32> to vector<8xf32>
    %86 = vector.shape_cast %85 : vector<8xf32> to vector<8x1xf32>
    %87 = vector.broadcast %86 : vector<8x1xf32> to vector<8x8xf32>
    %88 = arith.subf %84, %87 : vector<8x8xf32>
    %89 = math.exp %88 : vector<8x8xf32>
    %cst_42 = arith.constant dense<0.000000e+00> : vector<8xf32>
    %90 = vector.multi_reduction <add>, %89, %cst_42 [1] : vector<8x8xf32> to vector<8xf32>
    %91 = vector.shape_cast %90 : vector<8xf32> to vector<8x1xf32>
    %92 = tpu.reciprocal %91 {approx = true} : vector<8x1xf32> -> vector<8x1xf32>
    %93 = vector.broadcast %92 : vector<8x1xf32> to vector<8x8xf32>
    %94 = arith.mulf %89, %93 : vector<8x8xf32>
    %cst_43 = arith.constant dense<0.000000e+00> : vector<8x16xf32>
    %95 = tpu.matmul %94, %81, %cst_43 {dimension_numbers = #tpu.dot_dimension_numbers<[1], [0], [0], [1], [0, 0, 1, 1], [], []>} : vector<8x8xf32>, vector<8x16xf32>, vector<8x16xf32> -> vector<8x16xf32>
    %96 = vector.extract_strided_slice %42 {offsets = [0, 48], sizes = [8, 16], strides = [1, 1]} : vector<8x384xf32> to vector<8x16xf32>
    %97 = vector.extract_strided_slice %42 {offsets = [0, 176], sizes = [8, 16], strides = [1, 1]} : vector<8x384xf32> to vector<8x16xf32>
    %98 = vector.extract_strided_slice %42 {offsets = [0, 304], sizes = [8, 16], strides = [1, 1]} : vector<8x384xf32> to vector<8x16xf32>
    %cst_44 = arith.constant dense<0.000000e+00> : vector<8x8xf32>
    %99 = tpu.matmul %96, %97, %cst_44 {dimension_numbers = #tpu.dot_dimension_numbers<[1], [1], [0], [0], [0, 0, 1, 0], [], []>} : vector<8x16xf32>, vector<8x16xf32>, vector<8x8xf32> -> vector<8x8xf32>
    %100 = vector.broadcast %44 : vector<1x8xf32> to vector<8x8xf32>
    %101 = arith.addf %99, %100 : vector<8x8xf32>
    %cst_45 = arith.constant dense<0xFF800000> : vector<8xf32>
    %102 = vector.multi_reduction <maximumf>, %101, %cst_45 [1] : vector<8x8xf32> to vector<8xf32>
    %103 = vector.shape_cast %102 : vector<8xf32> to vector<8x1xf32>
    %104 = vector.broadcast %103 : vector<8x1xf32> to vector<8x8xf32>
    %105 = arith.subf %101, %104 : vector<8x8xf32>
    %106 = math.exp %105 : vector<8x8xf32>
    %cst_46 = arith.constant dense<0.000000e+00> : vector<8xf32>
    %107 = vector.multi_reduction <add>, %106, %cst_46 [1] : vector<8x8xf32> to vector<8xf32>
    %108 = vector.shape_cast %107 : vector<8xf32> to vector<8x1xf32>
    %109 = tpu.reciprocal %108 {approx = true} : vector<8x1xf32> -> vector<8x1xf32>
    %110 = vector.broadcast %109 : vector<8x1xf32> to vector<8x8xf32>
    %111 = arith.mulf %106, %110 : vector<8x8xf32>
    %cst_47 = arith.constant dense<0.000000e+00> : vector<8x16xf32>
    %112 = tpu.matmul %111, %98, %cst_47 {dimension_numbers = #tpu.dot_dimension_numbers<[1], [0], [0], [1], [0, 0, 1, 1], [], []>} : vector<8x8xf32>, vector<8x16xf32>, vector<8x16xf32> -> vector<8x16xf32>
    %113 = vector.extract_strided_slice %42 {offsets = [0, 64], sizes = [8, 16], strides = [1, 1]} : vector<8x384xf32> to vector<8x16xf32>
    %114 = vector.extract_strided_slice %42 {offsets = [0, 192], sizes = [8, 16], strides = [1, 1]} : vector<8x384xf32> to vector<8x16xf32>
    %115 = vector.extract_strided_slice %42 {offsets = [0, 320], sizes = [8, 16], strides = [1, 1]} : vector<8x384xf32> to vector<8x16xf32>
    %cst_48 = arith.constant dense<0.000000e+00> : vector<8x8xf32>
    %116 = tpu.matmul %113, %114, %cst_48 {dimension_numbers = #tpu.dot_dimension_numbers<[1], [1], [0], [0], [0, 0, 1, 0], [], []>} : vector<8x16xf32>, vector<8x16xf32>, vector<8x8xf32> -> vector<8x8xf32>
    %117 = vector.broadcast %44 : vector<1x8xf32> to vector<8x8xf32>
    %118 = arith.addf %116, %117 : vector<8x8xf32>
    %cst_49 = arith.constant dense<0xFF800000> : vector<8xf32>
    %119 = vector.multi_reduction <maximumf>, %118, %cst_49 [1] : vector<8x8xf32> to vector<8xf32>
    %120 = vector.shape_cast %119 : vector<8xf32> to vector<8x1xf32>
    %121 = vector.broadcast %120 : vector<8x1xf32> to vector<8x8xf32>
    %122 = arith.subf %118, %121 : vector<8x8xf32>
    %123 = math.exp %122 : vector<8x8xf32>
    %cst_50 = arith.constant dense<0.000000e+00> : vector<8xf32>
    %124 = vector.multi_reduction <add>, %123, %cst_50 [1] : vector<8x8xf32> to vector<8xf32>
    %125 = vector.shape_cast %124 : vector<8xf32> to vector<8x1xf32>
    %126 = tpu.reciprocal %125 {approx = true} : vector<8x1xf32> -> vector<8x1xf32>
    %127 = vector.broadcast %126 : vector<8x1xf32> to vector<8x8xf32>
    %128 = arith.mulf %123, %127 : vector<8x8xf32>
    %cst_51 = arith.constant dense<0.000000e+00> : vector<8x16xf32>
    %129 = tpu.matmul %128, %115, %cst_51 {dimension_numbers = #tpu.dot_dimension_numbers<[1], [0], [0], [1], [0, 0, 1, 1], [], []>} : vector<8x8xf32>, vector<8x16xf32>, vector<8x16xf32> -> vector<8x16xf32>
    %130 = vector.extract_strided_slice %42 {offsets = [0, 80], sizes = [8, 16], strides = [1, 1]} : vector<8x384xf32> to vector<8x16xf32>
    %131 = vector.extract_strided_slice %42 {offsets = [0, 208], sizes = [8, 16], strides = [1, 1]} : vector<8x384xf32> to vector<8x16xf32>
    %132 = vector.extract_strided_slice %42 {offsets = [0, 336], sizes = [8, 16], strides = [1, 1]} : vector<8x384xf32> to vector<8x16xf32>
    %cst_52 = arith.constant dense<0.000000e+00> : vector<8x8xf32>
    %133 = tpu.matmul %130, %131, %cst_52 {dimension_numbers = #tpu.dot_dimension_numbers<[1], [1], [0], [0], [0, 0, 1, 0], [], []>} : vector<8x16xf32>, vector<8x16xf32>, vector<8x8xf32> -> vector<8x8xf32>
    %134 = vector.broadcast %44 : vector<1x8xf32> to vector<8x8xf32>
    %135 = arith.addf %133, %134 : vector<8x8xf32>
    %cst_53 = arith.constant dense<0xFF800000> : vector<8xf32>
    %136 = vector.multi_reduction <maximumf>, %135, %cst_53 [1] : vector<8x8xf32> to vector<8xf32>
    %137 = vector.shape_cast %136 : vector<8xf32> to vector<8x1xf32>
    %138 = vector.broadcast %137 : vector<8x1xf32> to vector<8x8xf32>
    %139 = arith.subf %135, %138 : vector<8x8xf32>
    %140 = math.exp %139 : vector<8x8xf32>
    %cst_54 = arith.constant dense<0.000000e+00> : vector<8xf32>
    %141 = vector.multi_reduction <add>, %140, %cst_54 [1] : vector<8x8xf32> to vector<8xf32>
    %142 = vector.shape_cast %141 : vector<8xf32> to vector<8x1xf32>
    %143 = tpu.reciprocal %142 {approx = true} : vector<8x1xf32> -> vector<8x1xf32>
    %144 = vector.broadcast %143 : vector<8x1xf32> to vector<8x8xf32>
    %145 = arith.mulf %140, %144 : vector<8x8xf32>
    %cst_55 = arith.constant dense<0.000000e+00> : vector<8x16xf32>
    %146 = tpu.matmul %145, %132, %cst_55 {dimension_numbers = #tpu.dot_dimension_numbers<[1], [0], [0], [1], [0, 0, 1, 1], [], []>} : vector<8x8xf32>, vector<8x16xf32>, vector<8x16xf32> -> vector<8x16xf32>
    %147 = vector.extract_strided_slice %42 {offsets = [0, 96], sizes = [8, 16], strides = [1, 1]} : vector<8x384xf32> to vector<8x16xf32>
    %148 = vector.extract_strided_slice %42 {offsets = [0, 224], sizes = [8, 16], strides = [1, 1]} : vector<8x384xf32> to vector<8x16xf32>
    %149 = vector.extract_strided_slice %42 {offsets = [0, 352], sizes = [8, 16], strides = [1, 1]} : vector<8x384xf32> to vector<8x16xf32>
    %cst_56 = arith.constant dense<0.000000e+00> : vector<8x8xf32>
    %150 = tpu.matmul %147, %148, %cst_56 {dimension_numbers = #tpu.dot_dimension_numbers<[1], [1], [0], [0], [0, 0, 1, 0], [], []>} : vector<8x16xf32>, vector<8x16xf32>, vector<8x8xf32> -> vector<8x8xf32>
    %151 = vector.broadcast %44 : vector<1x8xf32> to vector<8x8xf32>
    %152 = arith.addf %150, %151 : vector<8x8xf32>
    %cst_57 = arith.constant dense<0xFF800000> : vector<8xf32>
    %153 = vector.multi_reduction <maximumf>, %152, %cst_57 [1] : vector<8x8xf32> to vector<8xf32>
    %154 = vector.shape_cast %153 : vector<8xf32> to vector<8x1xf32>
    %155 = vector.broadcast %154 : vector<8x1xf32> to vector<8x8xf32>
    %156 = arith.subf %152, %155 : vector<8x8xf32>
    %157 = math.exp %156 : vector<8x8xf32>
    %cst_58 = arith.constant dense<0.000000e+00> : vector<8xf32>
    %158 = vector.multi_reduction <add>, %157, %cst_58 [1] : vector<8x8xf32> to vector<8xf32>
    %159 = vector.shape_cast %158 : vector<8xf32> to vector<8x1xf32>
    %160 = tpu.reciprocal %159 {approx = true} : vector<8x1xf32> -> vector<8x1xf32>
    %161 = vector.broadcast %160 : vector<8x1xf32> to vector<8x8xf32>
    %162 = arith.mulf %157, %161 : vector<8x8xf32>
    %cst_59 = arith.constant dense<0.000000e+00> : vector<8x16xf32>
    %163 = tpu.matmul %162, %149, %cst_59 {dimension_numbers = #tpu.dot_dimension_numbers<[1], [0], [0], [1], [0, 0, 1, 1], [], []>} : vector<8x8xf32>, vector<8x16xf32>, vector<8x16xf32> -> vector<8x16xf32>
    %164 = vector.extract_strided_slice %42 {offsets = [0, 112], sizes = [8, 16], strides = [1, 1]} : vector<8x384xf32> to vector<8x16xf32>
    %165 = vector.extract_strided_slice %42 {offsets = [0, 240], sizes = [8, 16], strides = [1, 1]} : vector<8x384xf32> to vector<8x16xf32>
    %166 = vector.extract_strided_slice %42 {offsets = [0, 368], sizes = [8, 16], strides = [1, 1]} : vector<8x384xf32> to vector<8x16xf32>
    %cst_60 = arith.constant dense<0.000000e+00> : vector<8x8xf32>
    %167 = tpu.matmul %164, %165, %cst_60 {dimension_numbers = #tpu.dot_dimension_numbers<[1], [1], [0], [0], [0, 0, 1, 0], [], []>} : vector<8x16xf32>, vector<8x16xf32>, vector<8x8xf32> -> vector<8x8xf32>
    %168 = vector.broadcast %44 : vector<1x8xf32> to vector<8x8xf32>
    %169 = arith.addf %167, %168 : vector<8x8xf32>
    %cst_61 = arith.constant dense<0xFF800000> : vector<8xf32>
    %170 = vector.multi_reduction <maximumf>, %169, %cst_61 [1] : vector<8x8xf32> to vector<8xf32>
    %171 = vector.shape_cast %170 : vector<8xf32> to vector<8x1xf32>
    %172 = vector.broadcast %171 : vector<8x1xf32> to vector<8x8xf32>
    %173 = arith.subf %169, %172 : vector<8x8xf32>
    %174 = math.exp %173 : vector<8x8xf32>
    %cst_62 = arith.constant dense<0.000000e+00> : vector<8xf32>
    %175 = vector.multi_reduction <add>, %174, %cst_62 [1] : vector<8x8xf32> to vector<8xf32>
    %176 = vector.shape_cast %175 : vector<8xf32> to vector<8x1xf32>
    %177 = tpu.reciprocal %176 {approx = true} : vector<8x1xf32> -> vector<8x1xf32>
    %178 = vector.broadcast %177 : vector<8x1xf32> to vector<8x8xf32>
    %179 = arith.mulf %174, %178 : vector<8x8xf32>
    %cst_63 = arith.constant dense<0.000000e+00> : vector<8x16xf32>
    %180 = tpu.matmul %179, %166, %cst_63 {dimension_numbers = #tpu.dot_dimension_numbers<[1], [0], [0], [1], [0, 0, 1, 1], [], []>} : vector<8x8xf32>, vector<8x16xf32>, vector<8x16xf32> -> vector<8x16xf32>
    %181 = tpu.concatenate %61, %78, %95, %112, %129, %146, %163, %180 in 1 : vector<8x16xf32>, vector<8x16xf32>, vector<8x16xf32>, vector<8x16xf32>, vector<8x16xf32>, vector<8x16xf32>, vector<8x16xf32>, vector<8x16xf32> -> vector<8x128xf32>
    %182 = arith.truncf %181 : vector<8x128xf32> to vector<8x128xbf16>
    %cst_64 = arith.constant dense<0.000000e+00> : vector<8x128xf32>
    %183 = tpu.matmul %182, %5, %cst_64 {dimension_numbers = #tpu.dot_dimension_numbers<[1], [0], [0], [1], [0, 0, 1, 1], [], []>} : vector<8x128xbf16>, vector<128x128xbf16>, vector<8x128xf32> -> vector<8x128xf32>
    %184 = vector.broadcast %12 : vector<1x128xf32> to vector<8x128xf32>
    %185 = arith.addf %183, %184 : vector<8x128xf32>
    %186 = arith.addf %1, %185 : vector<8x128xf32>
    %cst_65 = arith.constant dense<0.000000e+00> : vector<8xf32>
    %187 = vector.multi_reduction <add>, %186, %cst_65 [1] : vector<8x128xf32> to vector<8xf32>
    %188 = vector.shape_cast %187 : vector<8xf32> to vector<8x1xf32>
    %cst_66 = arith.constant 1.280000e+02 : f32
    %189 = vector.broadcast %cst_66 : f32 to vector<8x1xf32>
    %190 = arith.divf %188, %189 : vector<8x1xf32>
    %191 = vector.broadcast %190 : vector<8x1xf32> to vector<8x128xf32>
    %192 = arith.subf %186, %191 : vector<8x128xf32>
    %193 = arith.mulf %192, %192 : vector<8x128xf32>
    %cst_67 = arith.constant dense<0.000000e+00> : vector<8xf32>
    %194 = vector.multi_reduction <add>, %193, %cst_67 [1] : vector<8x128xf32> to vector<8xf32>
    %195 = vector.shape_cast %194 : vector<8xf32> to vector<8x1xf32>
    %cst_68 = arith.constant 0.00787401571 : f32
    %196 = vector.broadcast %cst_68 : f32 to vector<8x1xf32>
    %197 = arith.mulf %195, %196 : vector<8x1xf32>
    %198 = math.sqrt %197 : vector<8x1xf32>
    %cst_69 = arith.constant 9.99999997E-7 : f32
    %199 = vector.broadcast %cst_69 : f32 to vector<8x1xf32>
    %200 = arith.addf %198, %199 : vector<8x1xf32>
    %201 = tpu.reciprocal %200 {approx = true} : vector<8x1xf32> -> vector<8x1xf32>
    %202 = vector.broadcast %201 : vector<8x1xf32> to vector<8x128xf32>
    %203 = arith.mulf %192, %202 : vector<8x128xf32>
    %204 = vector.broadcast %16 : vector<1x128xf32> to vector<8x128xf32>
    %205 = arith.mulf %204, %203 : vector<8x128xf32>
    %206 = vector.broadcast %17 : vector<1x128xf32> to vector<8x128xf32>
    %207 = arith.addf %205, %206 : vector<8x128xf32>
    %208 = arith.truncf %207 : vector<8x128xf32> to vector<8x128xbf16>
    %cst_70 = arith.constant dense<0.000000e+00> : vector<8x256xf32>
    %209 = tpu.matmul %208, %7, %cst_70 {dimension_numbers = #tpu.dot_dimension_numbers<[1], [0], [0], [1], [0, 0, 1, 1], [], []>} : vector<8x128xbf16>, vector<128x256xbf16>, vector<8x256xf32> -> vector<8x256xf32>
    %210 = vector.broadcast %11 : vector<1x256xf32> to vector<8x256xf32>
    %211 = arith.addf %209, %210 : vector<8x256xf32>
    %cst_71 = arith.constant 0.000000e+00 : f32
    %212 = vector.broadcast %cst_71 : f32 to vector<8x256xf32>
    %213 = arith.maximumf %211, %212 : vector<8x256xf32>
    %214 = arith.truncf %213 : vector<8x256xf32> to vector<8x256xbf16>
    %cst_72 = arith.constant dense<0.000000e+00> : vector<8x128xf32>
    %215 = tpu.matmul %214, %9, %cst_72 {dimension_numbers = #tpu.dot_dimension_numbers<[1], [0], [0], [1], [0, 0, 1, 1], [], []>} : vector<8x256xbf16>, vector<256x128xbf16>, vector<8x128xf32> -> vector<8x128xf32>
    %216 = vector.broadcast %13 : vector<1x128xf32> to vector<8x128xf32>
    %217 = arith.addf %215, %216 : vector<8x128xf32>
    %218 = arith.addf %186, %217 : vector<8x128xf32>
    %c1_73 = arith.constant 1 : index
    %c0_74 = arith.constant 0 : index
    %c0_75 = arith.constant 0 : index
    %219 = vector.load %arg3[%c1_73, %c0_74, %c0_75] : memref<3x640x384xbf16, #tpu.memory_space<vmem>>, vector<1x128x384xbf16>
    %220 = vector.shape_cast %219 : vector<1x128x384xbf16> to vector<128x384xbf16>
    %c1_76 = arith.constant 1 : index
    %c128_77 = arith.constant 128 : index
    %c0_78 = arith.constant 0 : index
    %221 = vector.load %arg3[%c1_76, %c128_77, %c0_78] : memref<3x640x384xbf16, #tpu.memory_space<vmem>>, vector<1x128x128xbf16>
    %222 = vector.shape_cast %221 : vector<1x128x128xbf16> to vector<128x128xbf16>
    %c1_79 = arith.constant 1 : index
    %c256_80 = arith.constant 256 : index
    %c0_81 = arith.constant 0 : index
    %223 = vector.load %arg3[%c1_79, %c256_80, %c0_81] : memref<3x640x384xbf16, #tpu.memory_space<vmem>>, vector<1x128x256xbf16>
    %224 = vector.shape_cast %223 : vector<1x128x256xbf16> to vector<128x256xbf16>
    %c1_82 = arith.constant 1 : index
    %c384_83 = arith.constant 384 : index
    %c0_84 = arith.constant 0 : index
    %225 = vector.load %arg3[%c1_82, %c384_83, %c0_84] : memref<3x640x384xbf16, #tpu.memory_space<vmem>>, vector<1x256x128xbf16>
    %226 = vector.shape_cast %225 : vector<1x256x128xbf16> to vector<256x128xbf16>
    %c4 = arith.constant 4 : index
    %c0_85 = arith.constant 0 : index
    %227 = vector.load %arg4[%c4, %c0_85] : memref<16x384xf32, #tpu.memory_space<vmem>>, vector<1x384xf32>
    %c5 = arith.constant 5 : index
    %c0_86 = arith.constant 0 : index
    %228 = vector.load %arg4[%c5, %c0_86] : memref<16x384xf32, #tpu.memory_space<vmem>>, vector<1x256xf32>
    %c5_87 = arith.constant 5 : index
    %c256_88 = arith.constant 256 : index
    %229 = vector.load %arg4[%c5_87, %c256_88] : memref<16x384xf32, #tpu.memory_space<vmem>>, vector<1x128xf32>
    %c6 = arith.constant 6 : index
    %c0_89 = arith.constant 0 : index
    %230 = vector.load %arg4[%c6, %c0_89] : memref<16x384xf32, #tpu.memory_space<vmem>>, vector<1x128xf32>
    %c6_90 = arith.constant 6 : index
    %c128_91 = arith.constant 128 : index
    %231 = vector.load %arg4[%c6_90, %c128_91] : memref<16x384xf32, #tpu.memory_space<vmem>>, vector<1x128xf32>
    %c6_92 = arith.constant 6 : index
    %c256_93 = arith.constant 256 : index
    %232 = vector.load %arg4[%c6_92, %c256_93] : memref<16x384xf32, #tpu.memory_space<vmem>>, vector<1x128xf32>
    %c7 = arith.constant 7 : index
    %c0_94 = arith.constant 0 : index
    %233 = vector.load %arg4[%c7, %c0_94] : memref<16x384xf32, #tpu.memory_space<vmem>>, vector<1x128xf32>
    %c7_95 = arith.constant 7 : index
    %c128_96 = arith.constant 128 : index
    %234 = vector.load %arg4[%c7_95, %c128_96] : memref<16x384xf32, #tpu.memory_space<vmem>>, vector<1x128xf32>
    %cst_97 = arith.constant dense<0.000000e+00> : vector<8xf32>
    %235 = vector.multi_reduction <add>, %218, %cst_97 [1] : vector<8x128xf32> to vector<8xf32>
    %236 = vector.shape_cast %235 : vector<8xf32> to vector<8x1xf32>
    %cst_98 = arith.constant 1.280000e+02 : f32
    %237 = vector.broadcast %cst_98 : f32 to vector<8x1xf32>
    %238 = arith.divf %236, %237 : vector<8x1xf32>
    %239 = vector.broadcast %238 : vector<8x1xf32> to vector<8x128xf32>
    %240 = arith.subf %218, %239 : vector<8x128xf32>
    %241 = arith.mulf %240, %240 : vector<8x128xf32>
    %cst_99 = arith.constant dense<0.000000e+00> : vector<8xf32>
    %242 = vector.multi_reduction <add>, %241, %cst_99 [1] : vector<8x128xf32> to vector<8xf32>
    %243 = vector.shape_cast %242 : vector<8xf32> to vector<8x1xf32>
    %cst_100 = arith.constant 0.00787401571 : f32
    %244 = vector.broadcast %cst_100 : f32 to vector<8x1xf32>
    %245 = arith.mulf %243, %244 : vector<8x1xf32>
    %246 = math.sqrt %245 : vector<8x1xf32>
    %cst_101 = arith.constant 9.99999997E-7 : f32
    %247 = vector.broadcast %cst_101 : f32 to vector<8x1xf32>
    %248 = arith.addf %246, %247 : vector<8x1xf32>
    %249 = tpu.reciprocal %248 {approx = true} : vector<8x1xf32> -> vector<8x1xf32>
    %250 = vector.broadcast %249 : vector<8x1xf32> to vector<8x128xf32>
    %251 = arith.mulf %240, %250 : vector<8x128xf32>
    %252 = vector.broadcast %231 : vector<1x128xf32> to vector<8x128xf32>
    %253 = arith.mulf %252, %251 : vector<8x128xf32>
    %254 = vector.broadcast %232 : vector<1x128xf32> to vector<8x128xf32>
    %255 = arith.addf %253, %254 : vector<8x128xf32>
    %256 = arith.truncf %255 : vector<8x128xf32> to vector<8x128xbf16>
    %cst_102 = arith.constant dense<0.000000e+00> : vector<8x384xf32>
    %257 = tpu.matmul %256, %220, %cst_102 {dimension_numbers = #tpu.dot_dimension_numbers<[1], [0], [0], [1], [0, 0, 1, 1], [], []>} : vector<8x128xbf16>, vector<128x384xbf16>, vector<8x384xf32> -> vector<8x384xf32>
    %258 = vector.broadcast %227 : vector<1x384xf32> to vector<8x384xf32>
    %259 = arith.addf %257, %258 : vector<8x384xf32>
    %c0_103 = arith.constant 0 : index
    %c0_104 = arith.constant 0 : index
    %c0_105 = arith.constant 0 : index
    %260 = vector.load %arg2[%c0_103, %c0_104, %c0_105] : memref<1x1x8xf32, #tpu.memory_space<vmem>>, vector<1x1x8xf32>
    %261 = vector.shape_cast %260 : vector<1x1x8xf32> to vector<1x8xf32>
    %262 = vector.extract_strided_slice %259 {offsets = [0, 0], sizes = [8, 16], strides = [1, 1]} : vector<8x384xf32> to vector<8x16xf32>
    %263 = vector.extract_strided_slice %259 {offsets = [0, 128], sizes = [8, 16], strides = [1, 1]} : vector<8x384xf32> to vector<8x16xf32>
    %264 = vector.extract_strided_slice %259 {offsets = [0, 256], sizes = [8, 16], strides = [1, 1]} : vector<8x384xf32> to vector<8x16xf32>
    %cst_106 = arith.constant dense<0.000000e+00> : vector<8x8xf32>
    %265 = tpu.matmul %262, %263, %cst_106 {dimension_numbers = #tpu.dot_dimension_numbers<[1], [1], [0], [0], [0, 0, 1, 0], [], []>} : vector<8x16xf32>, vector<8x16xf32>, vector<8x8xf32> -> vector<8x8xf32>
    %266 = vector.broadcast %261 : vector<1x8xf32> to vector<8x8xf32>
    %267 = arith.addf %265, %266 : vector<8x8xf32>
    %cst_107 = arith.constant dense<0xFF800000> : vector<8xf32>
    %268 = vector.multi_reduction <maximumf>, %267, %cst_107 [1] : vector<8x8xf32> to vector<8xf32>
    %269 = vector.shape_cast %268 : vector<8xf32> to vector<8x1xf32>
    %270 = vector.broadcast %269 : vector<8x1xf32> to vector<8x8xf32>
    %271 = arith.subf %267, %270 : vector<8x8xf32>
    %272 = math.exp %271 : vector<8x8xf32>
    %cst_108 = arith.constant dense<0.000000e+00> : vector<8xf32>
    %273 = vector.multi_reduction <add>, %272, %cst_108 [1] : vector<8x8xf32> to vector<8xf32>
    %274 = vector.shape_cast %273 : vector<8xf32> to vector<8x1xf32>
    %275 = tpu.reciprocal %274 {approx = true} : vector<8x1xf32> -> vector<8x1xf32>
    %276 = vector.broadcast %275 : vector<8x1xf32> to vector<8x8xf32>
    %277 = arith.mulf %272, %276 : vector<8x8xf32>
    %cst_109 = arith.constant dense<0.000000e+00> : vector<8x16xf32>
    %278 = tpu.matmul %277, %264, %cst_109 {dimension_numbers = #tpu.dot_dimension_numbers<[1], [0], [0], [1], [0, 0, 1, 1], [], []>} : vector<8x8xf32>, vector<8x16xf32>, vector<8x16xf32> -> vector<8x16xf32>
    %279 = vector.extract_strided_slice %259 {offsets = [0, 16], sizes = [8, 16], strides = [1, 1]} : vector<8x384xf32> to vector<8x16xf32>
    %280 = vector.extract_strided_slice %259 {offsets = [0, 144], sizes = [8, 16], strides = [1, 1]} : vector<8x384xf32> to vector<8x16xf32>
    %281 = vector.extract_strided_slice %259 {offsets = [0, 272], sizes = [8, 16], strides = [1, 1]} : vector<8x384xf32> to vector<8x16xf32>
    %cst_110 = arith.constant dense<0.000000e+00> : vector<8x8xf32>
    %282 = tpu.matmul %279, %280, %cst_110 {dimension_numbers = #tpu.dot_dimension_numbers<[1], [1], [0], [0], [0, 0, 1, 0], [], []>} : vector<8x16xf32>, vector<8x16xf32>, vector<8x8xf32> -> vector<8x8xf32>
    %283 = vector.broadcast %261 : vector<1x8xf32> to vector<8x8xf32>
    %284 = arith.addf %282, %283 : vector<8x8xf32>
    %cst_111 = arith.constant dense<0xFF800000> : vector<8xf32>
    %285 = vector.multi_reduction <maximumf>, %284, %cst_111 [1] : vector<8x8xf32> to vector<8xf32>
    %286 = vector.shape_cast %285 : vector<8xf32> to vector<8x1xf32>
    %287 = vector.broadcast %286 : vector<8x1xf32> to vector<8x8xf32>
    %288 = arith.subf %284, %287 : vector<8x8xf32>
    %289 = math.exp %288 : vector<8x8xf32>
    %cst_112 = arith.constant dense<0.000000e+00> : vector<8xf32>
    %290 = vector.multi_reduction <add>, %289, %cst_112 [1] : vector<8x8xf32> to vector<8xf32>
    %291 = vector.shape_cast %290 : vector<8xf32> to vector<8x1xf32>
    %292 = tpu.reciprocal %291 {approx = true} : vector<8x1xf32> -> vector<8x1xf32>
    %293 = vector.broadcast %292 : vector<8x1xf32> to vector<8x8xf32>
    %294 = arith.mulf %289, %293 : vector<8x8xf32>
    %cst_113 = arith.constant dense<0.000000e+00> : vector<8x16xf32>
    %295 = tpu.matmul %294, %281, %cst_113 {dimension_numbers = #tpu.dot_dimension_numbers<[1], [0], [0], [1], [0, 0, 1, 1], [], []>} : vector<8x8xf32>, vector<8x16xf32>, vector<8x16xf32> -> vector<8x16xf32>
    %296 = vector.extract_strided_slice %259 {offsets = [0, 32], sizes = [8, 16], strides = [1, 1]} : vector<8x384xf32> to vector<8x16xf32>
    %297 = vector.extract_strided_slice %259 {offsets = [0, 160], sizes = [8, 16], strides = [1, 1]} : vector<8x384xf32> to vector<8x16xf32>
    %298 = vector.extract_strided_slice %259 {offsets = [0, 288], sizes = [8, 16], strides = [1, 1]} : vector<8x384xf32> to vector<8x16xf32>
    %cst_114 = arith.constant dense<0.000000e+00> : vector<8x8xf32>
    %299 = tpu.matmul %296, %297, %cst_114 {dimension_numbers = #tpu.dot_dimension_numbers<[1], [1], [0], [0], [0, 0, 1, 0], [], []>} : vector<8x16xf32>, vector<8x16xf32>, vector<8x8xf32> -> vector<8x8xf32>
    %300 = vector.broadcast %261 : vector<1x8xf32> to vector<8x8xf32>
    %301 = arith.addf %299, %300 : vector<8x8xf32>
    %cst_115 = arith.constant dense<0xFF800000> : vector<8xf32>
    %302 = vector.multi_reduction <maximumf>, %301, %cst_115 [1] : vector<8x8xf32> to vector<8xf32>
    %303 = vector.shape_cast %302 : vector<8xf32> to vector<8x1xf32>
    %304 = vector.broadcast %303 : vector<8x1xf32> to vector<8x8xf32>
    %305 = arith.subf %301, %304 : vector<8x8xf32>
    %306 = math.exp %305 : vector<8x8xf32>
    %cst_116 = arith.constant dense<0.000000e+00> : vector<8xf32>
    %307 = vector.multi_reduction <add>, %306, %cst_116 [1] : vector<8x8xf32> to vector<8xf32>
    %308 = vector.shape_cast %307 : vector<8xf32> to vector<8x1xf32>
    %309 = tpu.reciprocal %308 {approx = true} : vector<8x1xf32> -> vector<8x1xf32>
    %310 = vector.broadcast %309 : vector<8x1xf32> to vector<8x8xf32>
    %311 = arith.mulf %306, %310 : vector<8x8xf32>
    %cst_117 = arith.constant dense<0.000000e+00> : vector<8x16xf32>
    %312 = tpu.matmul %311, %298, %cst_117 {dimension_numbers = #tpu.dot_dimension_numbers<[1], [0], [0], [1], [0, 0, 1, 1], [], []>} : vector<8x8xf32>, vector<8x16xf32>, vector<8x16xf32> -> vector<8x16xf32>
    %313 = vector.extract_strided_slice %259 {offsets = [0, 48], sizes = [8, 16], strides = [1, 1]} : vector<8x384xf32> to vector<8x16xf32>
    %314 = vector.extract_strided_slice %259 {offsets = [0, 176], sizes = [8, 16], strides = [1, 1]} : vector<8x384xf32> to vector<8x16xf32>
    %315 = vector.extract_strided_slice %259 {offsets = [0, 304], sizes = [8, 16], strides = [1, 1]} : vector<8x384xf32> to vector<8x16xf32>
    %cst_118 = arith.constant dense<0.000000e+00> : vector<8x8xf32>
    %316 = tpu.matmul %313, %314, %cst_118 {dimension_numbers = #tpu.dot_dimension_numbers<[1], [1], [0], [0], [0, 0, 1, 0], [], []>} : vector<8x16xf32>, vector<8x16xf32>, vector<8x8xf32> -> vector<8x8xf32>
    %317 = vector.broadcast %261 : vector<1x8xf32> to vector<8x8xf32>
    %318 = arith.addf %316, %317 : vector<8x8xf32>
    %cst_119 = arith.constant dense<0xFF800000> : vector<8xf32>
    %319 = vector.multi_reduction <maximumf>, %318, %cst_119 [1] : vector<8x8xf32> to vector<8xf32>
    %320 = vector.shape_cast %319 : vector<8xf32> to vector<8x1xf32>
    %321 = vector.broadcast %320 : vector<8x1xf32> to vector<8x8xf32>
    %322 = arith.subf %318, %321 : vector<8x8xf32>
    %323 = math.exp %322 : vector<8x8xf32>
    %cst_120 = arith.constant dense<0.000000e+00> : vector<8xf32>
    %324 = vector.multi_reduction <add>, %323, %cst_120 [1] : vector<8x8xf32> to vector<8xf32>
    %325 = vector.shape_cast %324 : vector<8xf32> to vector<8x1xf32>
    %326 = tpu.reciprocal %325 {approx = true} : vector<8x1xf32> -> vector<8x1xf32>
    %327 = vector.broadcast %326 : vector<8x1xf32> to vector<8x8xf32>
    %328 = arith.mulf %323, %327 : vector<8x8xf32>
    %cst_121 = arith.constant dense<0.000000e+00> : vector<8x16xf32>
    %329 = tpu.matmul %328, %315, %cst_121 {dimension_numbers = #tpu.dot_dimension_numbers<[1], [0], [0], [1], [0, 0, 1, 1], [], []>} : vector<8x8xf32>, vector<8x16xf32>, vector<8x16xf32> -> vector<8x16xf32>
    %330 = vector.extract_strided_slice %259 {offsets = [0, 64], sizes = [8, 16], strides = [1, 1]} : vector<8x384xf32> to vector<8x16xf32>
    %331 = vector.extract_strided_slice %259 {offsets = [0, 192], sizes = [8, 16], strides = [1, 1]} : vector<8x384xf32> to vector<8x16xf32>
    %332 = vector.extract_strided_slice %259 {offsets = [0, 320], sizes = [8, 16], strides = [1, 1]} : vector<8x384xf32> to vector<8x16xf32>
    %cst_122 = arith.constant dense<0.000000e+00> : vector<8x8xf32>
    %333 = tpu.matmul %330, %331, %cst_122 {dimension_numbers = #tpu.dot_dimension_numbers<[1], [1], [0], [0], [0, 0, 1, 0], [], []>} : vector<8x16xf32>, vector<8x16xf32>, vector<8x8xf32> -> vector<8x8xf32>
    %334 = vector.broadcast %261 : vector<1x8xf32> to vector<8x8xf32>
    %335 = arith.addf %333, %334 : vector<8x8xf32>
    %cst_123 = arith.constant dense<0xFF800000> : vector<8xf32>
    %336 = vector.multi_reduction <maximumf>, %335, %cst_123 [1] : vector<8x8xf32> to vector<8xf32>
    %337 = vector.shape_cast %336 : vector<8xf32> to vector<8x1xf32>
    %338 = vector.broadcast %337 : vector<8x1xf32> to vector<8x8xf32>
    %339 = arith.subf %335, %338 : vector<8x8xf32>
    %340 = math.exp %339 : vector<8x8xf32>
    %cst_124 = arith.constant dense<0.000000e+00> : vector<8xf32>
    %341 = vector.multi_reduction <add>, %340, %cst_124 [1] : vector<8x8xf32> to vector<8xf32>
    %342 = vector.shape_cast %341 : vector<8xf32> to vector<8x1xf32>
    %343 = tpu.reciprocal %342 {approx = true} : vector<8x1xf32> -> vector<8x1xf32>
    %344 = vector.broadcast %343 : vector<8x1xf32> to vector<8x8xf32>
    %345 = arith.mulf %340, %344 : vector<8x8xf32>
    %cst_125 = arith.constant dense<0.000000e+00> : vector<8x16xf32>
    %346 = tpu.matmul %345, %332, %cst_125 {dimension_numbers = #tpu.dot_dimension_numbers<[1], [0], [0], [1], [0, 0, 1, 1], [], []>} : vector<8x8xf32>, vector<8x16xf32>, vector<8x16xf32> -> vector<8x16xf32>
    %347 = vector.extract_strided_slice %259 {offsets = [0, 80], sizes = [8, 16], strides = [1, 1]} : vector<8x384xf32> to vector<8x16xf32>
    %348 = vector.extract_strided_slice %259 {offsets = [0, 208], sizes = [8, 16], strides = [1, 1]} : vector<8x384xf32> to vector<8x16xf32>
    %349 = vector.extract_strided_slice %259 {offsets = [0, 336], sizes = [8, 16], strides = [1, 1]} : vector<8x384xf32> to vector<8x16xf32>
    %cst_126 = arith.constant dense<0.000000e+00> : vector<8x8xf32>
    %350 = tpu.matmul %347, %348, %cst_126 {dimension_numbers = #tpu.dot_dimension_numbers<[1], [1], [0], [0], [0, 0, 1, 0], [], []>} : vector<8x16xf32>, vector<8x16xf32>, vector<8x8xf32> -> vector<8x8xf32>
    %351 = vector.broadcast %261 : vector<1x8xf32> to vector<8x8xf32>
    %352 = arith.addf %350, %351 : vector<8x8xf32>
    %cst_127 = arith.constant dense<0xFF800000> : vector<8xf32>
    %353 = vector.multi_reduction <maximumf>, %352, %cst_127 [1] : vector<8x8xf32> to vector<8xf32>
    %354 = vector.shape_cast %353 : vector<8xf32> to vector<8x1xf32>
    %355 = vector.broadcast %354 : vector<8x1xf32> to vector<8x8xf32>
    %356 = arith.subf %352, %355 : vector<8x8xf32>
    %357 = math.exp %356 : vector<8x8xf32>
    %cst_128 = arith.constant dense<0.000000e+00> : vector<8xf32>
    %358 = vector.multi_reduction <add>, %357, %cst_128 [1] : vector<8x8xf32> to vector<8xf32>
    %359 = vector.shape_cast %358 : vector<8xf32> to vector<8x1xf32>
    %360 = tpu.reciprocal %359 {approx = true} : vector<8x1xf32> -> vector<8x1xf32>
    %361 = vector.broadcast %360 : vector<8x1xf32> to vector<8x8xf32>
    %362 = arith.mulf %357, %361 : vector<8x8xf32>
    %cst_129 = arith.constant dense<0.000000e+00> : vector<8x16xf32>
    %363 = tpu.matmul %362, %349, %cst_129 {dimension_numbers = #tpu.dot_dimension_numbers<[1], [0], [0], [1], [0, 0, 1, 1], [], []>} : vector<8x8xf32>, vector<8x16xf32>, vector<8x16xf32> -> vector<8x16xf32>
    %364 = vector.extract_strided_slice %259 {offsets = [0, 96], sizes = [8, 16], strides = [1, 1]} : vector<8x384xf32> to vector<8x16xf32>
    %365 = vector.extract_strided_slice %259 {offsets = [0, 224], sizes = [8, 16], strides = [1, 1]} : vector<8x384xf32> to vector<8x16xf32>
    %366 = vector.extract_strided_slice %259 {offsets = [0, 352], sizes = [8, 16], strides = [1, 1]} : vector<8x384xf32> to vector<8x16xf32>
    %cst_130 = arith.constant dense<0.000000e+00> : vector<8x8xf32>
    %367 = tpu.matmul %364, %365, %cst_130 {dimension_numbers = #tpu.dot_dimension_numbers<[1], [1], [0], [0], [0, 0, 1, 0], [], []>} : vector<8x16xf32>, vector<8x16xf32>, vector<8x8xf32> -> vector<8x8xf32>
    %368 = vector.broadcast %261 : vector<1x8xf32> to vector<8x8xf32>
    %369 = arith.addf %367, %368 : vector<8x8xf32>
    %cst_131 = arith.constant dense<0xFF800000> : vector<8xf32>
    %370 = vector.multi_reduction <maximumf>, %369, %cst_131 [1] : vector<8x8xf32> to vector<8xf32>
    %371 = vector.shape_cast %370 : vector<8xf32> to vector<8x1xf32>
    %372 = vector.broadcast %371 : vector<8x1xf32> to vector<8x8xf32>
    %373 = arith.subf %369, %372 : vector<8x8xf32>
    %374 = math.exp %373 : vector<8x8xf32>
    %cst_132 = arith.constant dense<0.000000e+00> : vector<8xf32>
    %375 = vector.multi_reduction <add>, %374, %cst_132 [1] : vector<8x8xf32> to vector<8xf32>
    %376 = vector.shape_cast %375 : vector<8xf32> to vector<8x1xf32>
    %377 = tpu.reciprocal %376 {approx = true} : vector<8x1xf32> -> vector<8x1xf32>
    %378 = vector.broadcast %377 : vector<8x1xf32> to vector<8x8xf32>
    %379 = arith.mulf %374, %378 : vector<8x8xf32>
    %cst_133 = arith.constant dense<0.000000e+00> : vector<8x16xf32>
    %380 = tpu.matmul %379, %366, %cst_133 {dimension_numbers = #tpu.dot_dimension_numbers<[1], [0], [0], [1], [0, 0, 1, 1], [], []>} : vector<8x8xf32>, vector<8x16xf32>, vector<8x16xf32> -> vector<8x16xf32>
    %381 = vector.extract_strided_slice %259 {offsets = [0, 112], sizes = [8, 16], strides = [1, 1]} : vector<8x384xf32> to vector<8x16xf32>
    %382 = vector.extract_strided_slice %259 {offsets = [0, 240], sizes = [8, 16], strides = [1, 1]} : vector<8x384xf32> to vector<8x16xf32>
    %383 = vector.extract_strided_slice %259 {offsets = [0, 368], sizes = [8, 16], strides = [1, 1]} : vector<8x384xf32> to vector<8x16xf32>
    %cst_134 = arith.constant dense<0.000000e+00> : vector<8x8xf32>
    %384 = tpu.matmul %381, %382, %cst_134 {dimension_numbers = #tpu.dot_dimension_numbers<[1], [1], [0], [0], [0, 0, 1, 0], [], []>} : vector<8x16xf32>, vector<8x16xf32>, vector<8x8xf32> -> vector<8x8xf32>
    %385 = vector.broadcast %261 : vector<1x8xf32> to vector<8x8xf32>
    %386 = arith.addf %384, %385 : vector<8x8xf32>
    %cst_135 = arith.constant dense<0xFF800000> : vector<8xf32>
    %387 = vector.multi_reduction <maximumf>, %386, %cst_135 [1] : vector<8x8xf32> to vector<8xf32>
    %388 = vector.shape_cast %387 : vector<8xf32> to vector<8x1xf32>
    %389 = vector.broadcast %388 : vector<8x1xf32> to vector<8x8xf32>
    %390 = arith.subf %386, %389 : vector<8x8xf32>
    %391 = math.exp %390 : vector<8x8xf32>
    %cst_136 = arith.constant dense<0.000000e+00> : vector<8xf32>
    %392 = vector.multi_reduction <add>, %391, %cst_136 [1] : vector<8x8xf32> to vector<8xf32>
    %393 = vector.shape_cast %392 : vector<8xf32> to vector<8x1xf32>
    %394 = tpu.reciprocal %393 {approx = true} : vector<8x1xf32> -> vector<8x1xf32>
    %395 = vector.broadcast %394 : vector<8x1xf32> to vector<8x8xf32>
    %396 = arith.mulf %391, %395 : vector<8x8xf32>
    %cst_137 = arith.constant dense<0.000000e+00> : vector<8x16xf32>
    %397 = tpu.matmul %396, %383, %cst_137 {dimension_numbers = #tpu.dot_dimension_numbers<[1], [0], [0], [1], [0, 0, 1, 1], [], []>} : vector<8x8xf32>, vector<8x16xf32>, vector<8x16xf32> -> vector<8x16xf32>
    %398 = tpu.concatenate %278, %295, %312, %329, %346, %363, %380, %397 in 1 : vector<8x16xf32>, vector<8x16xf32>, vector<8x16xf32>, vector<8x16xf32>, vector<8x16xf32>, vector<8x16xf32>, vector<8x16xf32>, vector<8x16xf32> -> vector<8x128xf32>
    %399 = arith.truncf %398 : vector<8x128xf32> to vector<8x128xbf16>
    %cst_138 = arith.constant dense<0.000000e+00> : vector<8x128xf32>
    %400 = tpu.matmul %399, %222, %cst_138 {dimension_numbers = #tpu.dot_dimension_numbers<[1], [0], [0], [1], [0, 0, 1, 1], [], []>} : vector<8x128xbf16>, vector<128x128xbf16>, vector<8x128xf32> -> vector<8x128xf32>
    %401 = vector.broadcast %229 : vector<1x128xf32> to vector<8x128xf32>
    %402 = arith.addf %400, %401 : vector<8x128xf32>
    %403 = arith.addf %218, %402 : vector<8x128xf32>
    %cst_139 = arith.constant dense<0.000000e+00> : vector<8xf32>
    %404 = vector.multi_reduction <add>, %403, %cst_139 [1] : vector<8x128xf32> to vector<8xf32>
    %405 = vector.shape_cast %404 : vector<8xf32> to vector<8x1xf32>
    %cst_140 = arith.constant 1.280000e+02 : f32
    %406 = vector.broadcast %cst_140 : f32 to vector<8x1xf32>
    %407 = arith.divf %405, %406 : vector<8x1xf32>
    %408 = vector.broadcast %407 : vector<8x1xf32> to vector<8x128xf32>
    %409 = arith.subf %403, %408 : vector<8x128xf32>
    %410 = arith.mulf %409, %409 : vector<8x128xf32>
    %cst_141 = arith.constant dense<0.000000e+00> : vector<8xf32>
    %411 = vector.multi_reduction <add>, %410, %cst_141 [1] : vector<8x128xf32> to vector<8xf32>
    %412 = vector.shape_cast %411 : vector<8xf32> to vector<8x1xf32>
    %cst_142 = arith.constant 0.00787401571 : f32
    %413 = vector.broadcast %cst_142 : f32 to vector<8x1xf32>
    %414 = arith.mulf %412, %413 : vector<8x1xf32>
    %415 = math.sqrt %414 : vector<8x1xf32>
    %cst_143 = arith.constant 9.99999997E-7 : f32
    %416 = vector.broadcast %cst_143 : f32 to vector<8x1xf32>
    %417 = arith.addf %415, %416 : vector<8x1xf32>
    %418 = tpu.reciprocal %417 {approx = true} : vector<8x1xf32> -> vector<8x1xf32>
    %419 = vector.broadcast %418 : vector<8x1xf32> to vector<8x128xf32>
    %420 = arith.mulf %409, %419 : vector<8x128xf32>
    %421 = vector.broadcast %233 : vector<1x128xf32> to vector<8x128xf32>
    %422 = arith.mulf %421, %420 : vector<8x128xf32>
    %423 = vector.broadcast %234 : vector<1x128xf32> to vector<8x128xf32>
    %424 = arith.addf %422, %423 : vector<8x128xf32>
    %425 = arith.truncf %424 : vector<8x128xf32> to vector<8x128xbf16>
    %cst_144 = arith.constant dense<0.000000e+00> : vector<8x256xf32>
    %426 = tpu.matmul %425, %224, %cst_144 {dimension_numbers = #tpu.dot_dimension_numbers<[1], [0], [0], [1], [0, 0, 1, 1], [], []>} : vector<8x128xbf16>, vector<128x256xbf16>, vector<8x256xf32> -> vector<8x256xf32>
    %427 = vector.broadcast %228 : vector<1x256xf32> to vector<8x256xf32>
    %428 = arith.addf %426, %427 : vector<8x256xf32>
    %cst_145 = arith.constant 0.000000e+00 : f32
    %429 = vector.broadcast %cst_145 : f32 to vector<8x256xf32>
    %430 = arith.maximumf %428, %429 : vector<8x256xf32>
    %431 = arith.truncf %430 : vector<8x256xf32> to vector<8x256xbf16>
    %cst_146 = arith.constant dense<0.000000e+00> : vector<8x128xf32>
    %432 = tpu.matmul %431, %226, %cst_146 {dimension_numbers = #tpu.dot_dimension_numbers<[1], [0], [0], [1], [0, 0, 1, 1], [], []>} : vector<8x256xbf16>, vector<256x128xbf16>, vector<8x128xf32> -> vector<8x128xf32>
    %433 = vector.broadcast %230 : vector<1x128xf32> to vector<8x128xf32>
    %434 = arith.addf %432, %433 : vector<8x128xf32>
    %435 = arith.addf %403, %434 : vector<8x128xf32>
    %c2_147 = arith.constant 2 : index
    %c0_148 = arith.constant 0 : index
    %c0_149 = arith.constant 0 : index
    %436 = vector.load %arg3[%c2_147, %c0_148, %c0_149] : memref<3x640x384xbf16, #tpu.memory_space<vmem>>, vector<1x128x384xbf16>
    %437 = vector.shape_cast %436 : vector<1x128x384xbf16> to vector<128x384xbf16>
    %c2_150 = arith.constant 2 : index
    %c128_151 = arith.constant 128 : index
    %c0_152 = arith.constant 0 : index
    %438 = vector.load %arg3[%c2_150, %c128_151, %c0_152] : memref<3x640x384xbf16, #tpu.memory_space<vmem>>, vector<1x128x128xbf16>
    %439 = vector.shape_cast %438 : vector<1x128x128xbf16> to vector<128x128xbf16>
    %c2_153 = arith.constant 2 : index
    %c256_154 = arith.constant 256 : index
    %c0_155 = arith.constant 0 : index
    %440 = vector.load %arg3[%c2_153, %c256_154, %c0_155] : memref<3x640x384xbf16, #tpu.memory_space<vmem>>, vector<1x128x256xbf16>
    %441 = vector.shape_cast %440 : vector<1x128x256xbf16> to vector<128x256xbf16>
    %c2_156 = arith.constant 2 : index
    %c384_157 = arith.constant 384 : index
    %c0_158 = arith.constant 0 : index
    %442 = vector.load %arg3[%c2_156, %c384_157, %c0_158] : memref<3x640x384xbf16, #tpu.memory_space<vmem>>, vector<1x256x128xbf16>
    %443 = vector.shape_cast %442 : vector<1x256x128xbf16> to vector<256x128xbf16>
    %c8 = arith.constant 8 : index
    %c0_159 = arith.constant 0 : index
    %444 = vector.load %arg4[%c8, %c0_159] : memref<16x384xf32, #tpu.memory_space<vmem>>, vector<1x384xf32>
    %c9 = arith.constant 9 : index
    %c0_160 = arith.constant 0 : index
    %445 = vector.load %arg4[%c9, %c0_160] : memref<16x384xf32, #tpu.memory_space<vmem>>, vector<1x256xf32>
    %c9_161 = arith.constant 9 : index
    %c256_162 = arith.constant 256 : index
    %446 = vector.load %arg4[%c9_161, %c256_162] : memref<16x384xf32, #tpu.memory_space<vmem>>, vector<1x128xf32>
    %c10 = arith.constant 10 : index
    %c0_163 = arith.constant 0 : index
    %447 = vector.load %arg4[%c10, %c0_163] : memref<16x384xf32, #tpu.memory_space<vmem>>, vector<1x128xf32>
    %c10_164 = arith.constant 10 : index
    %c128_165 = arith.constant 128 : index
    %448 = vector.load %arg4[%c10_164, %c128_165] : memref<16x384xf32, #tpu.memory_space<vmem>>, vector<1x128xf32>
    %c10_166 = arith.constant 10 : index
    %c256_167 = arith.constant 256 : index
    %449 = vector.load %arg4[%c10_166, %c256_167] : memref<16x384xf32, #tpu.memory_space<vmem>>, vector<1x128xf32>
    %c11 = arith.constant 11 : index
    %c0_168 = arith.constant 0 : index
    %450 = vector.load %arg4[%c11, %c0_168] : memref<16x384xf32, #tpu.memory_space<vmem>>, vector<1x128xf32>
    %c11_169 = arith.constant 11 : index
    %c128_170 = arith.constant 128 : index
    %451 = vector.load %arg4[%c11_169, %c128_170] : memref<16x384xf32, #tpu.memory_space<vmem>>, vector<1x128xf32>
    %cst_171 = arith.constant dense<0.000000e+00> : vector<8xf32>
    %452 = vector.multi_reduction <add>, %435, %cst_171 [1] : vector<8x128xf32> to vector<8xf32>
    %453 = vector.shape_cast %452 : vector<8xf32> to vector<8x1xf32>
    %cst_172 = arith.constant 1.280000e+02 : f32
    %454 = vector.broadcast %cst_172 : f32 to vector<8x1xf32>
    %455 = arith.divf %453, %454 : vector<8x1xf32>
    %456 = vector.broadcast %455 : vector<8x1xf32> to vector<8x128xf32>
    %457 = arith.subf %435, %456 : vector<8x128xf32>
    %458 = arith.mulf %457, %457 : vector<8x128xf32>
    %cst_173 = arith.constant dense<0.000000e+00> : vector<8xf32>
    %459 = vector.multi_reduction <add>, %458, %cst_173 [1] : vector<8x128xf32> to vector<8xf32>
    %460 = vector.shape_cast %459 : vector<8xf32> to vector<8x1xf32>
    %cst_174 = arith.constant 0.00787401571 : f32
    %461 = vector.broadcast %cst_174 : f32 to vector<8x1xf32>
    %462 = arith.mulf %460, %461 : vector<8x1xf32>
    %463 = math.sqrt %462 : vector<8x1xf32>
    %cst_175 = arith.constant 9.99999997E-7 : f32
    %464 = vector.broadcast %cst_175 : f32 to vector<8x1xf32>
    %465 = arith.addf %463, %464 : vector<8x1xf32>
    %466 = tpu.reciprocal %465 {approx = true} : vector<8x1xf32> -> vector<8x1xf32>
    %467 = vector.broadcast %466 : vector<8x1xf32> to vector<8x128xf32>
    %468 = arith.mulf %457, %467 : vector<8x128xf32>
    %469 = vector.broadcast %448 : vector<1x128xf32> to vector<8x128xf32>
    %470 = arith.mulf %469, %468 : vector<8x128xf32>
    %471 = vector.broadcast %449 : vector<1x128xf32> to vector<8x128xf32>
    %472 = arith.addf %470, %471 : vector<8x128xf32>
    %473 = arith.truncf %472 : vector<8x128xf32> to vector<8x128xbf16>
    %cst_176 = arith.constant dense<0.000000e+00> : vector<8x384xf32>
    %474 = tpu.matmul %473, %437, %cst_176 {dimension_numbers = #tpu.dot_dimension_numbers<[1], [0], [0], [1], [0, 0, 1, 1], [], []>} : vector<8x128xbf16>, vector<128x384xbf16>, vector<8x384xf32> -> vector<8x384xf32>
    %475 = vector.broadcast %444 : vector<1x384xf32> to vector<8x384xf32>
    %476 = arith.addf %474, %475 : vector<8x384xf32>
    %c0_177 = arith.constant 0 : index
    %c0_178 = arith.constant 0 : index
    %c0_179 = arith.constant 0 : index
    %477 = vector.load %arg2[%c0_177, %c0_178, %c0_179] : memref<1x1x8xf32, #tpu.memory_space<vmem>>, vector<1x1x8xf32>
    %478 = vector.shape_cast %477 : vector<1x1x8xf32> to vector<1x8xf32>
    %479 = vector.extract_strided_slice %476 {offsets = [0, 0], sizes = [8, 16], strides = [1, 1]} : vector<8x384xf32> to vector<8x16xf32>
    %480 = vector.extract_strided_slice %476 {offsets = [0, 128], sizes = [8, 16], strides = [1, 1]} : vector<8x384xf32> to vector<8x16xf32>
    %481 = vector.extract_strided_slice %476 {offsets = [0, 256], sizes = [8, 16], strides = [1, 1]} : vector<8x384xf32> to vector<8x16xf32>
    %cst_180 = arith.constant dense<0.000000e+00> : vector<8x8xf32>
    %482 = tpu.matmul %479, %480, %cst_180 {dimension_numbers = #tpu.dot_dimension_numbers<[1], [1], [0], [0], [0, 0, 1, 0], [], []>} : vector<8x16xf32>, vector<8x16xf32>, vector<8x8xf32> -> vector<8x8xf32>
    %483 = vector.broadcast %478 : vector<1x8xf32> to vector<8x8xf32>
    %484 = arith.addf %482, %483 : vector<8x8xf32>
    %cst_181 = arith.constant dense<0xFF800000> : vector<8xf32>
    %485 = vector.multi_reduction <maximumf>, %484, %cst_181 [1] : vector<8x8xf32> to vector<8xf32>
    %486 = vector.shape_cast %485 : vector<8xf32> to vector<8x1xf32>
    %487 = vector.broadcast %486 : vector<8x1xf32> to vector<8x8xf32>
    %488 = arith.subf %484, %487 : vector<8x8xf32>
    %489 = math.exp %488 : vector<8x8xf32>
    %cst_182 = arith.constant dense<0.000000e+00> : vector<8xf32>
    %490 = vector.multi_reduction <add>, %489, %cst_182 [1] : vector<8x8xf32> to vector<8xf32>
    %491 = vector.shape_cast %490 : vector<8xf32> to vector<8x1xf32>
    %492 = tpu.reciprocal %491 {approx = true} : vector<8x1xf32> -> vector<8x1xf32>
    %493 = vector.broadcast %492 : vector<8x1xf32> to vector<8x8xf32>
    %494 = arith.mulf %489, %493 : vector<8x8xf32>
    %cst_183 = arith.constant dense<0.000000e+00> : vector<8x16xf32>
    %495 = tpu.matmul %494, %481, %cst_183 {dimension_numbers = #tpu.dot_dimension_numbers<[1], [0], [0], [1], [0, 0, 1, 1], [], []>} : vector<8x8xf32>, vector<8x16xf32>, vector<8x16xf32> -> vector<8x16xf32>
    %496 = vector.extract_strided_slice %476 {offsets = [0, 16], sizes = [8, 16], strides = [1, 1]} : vector<8x384xf32> to vector<8x16xf32>
    %497 = vector.extract_strided_slice %476 {offsets = [0, 144], sizes = [8, 16], strides = [1, 1]} : vector<8x384xf32> to vector<8x16xf32>
    %498 = vector.extract_strided_slice %476 {offsets = [0, 272], sizes = [8, 16], strides = [1, 1]} : vector<8x384xf32> to vector<8x16xf32>
    %cst_184 = arith.constant dense<0.000000e+00> : vector<8x8xf32>
    %499 = tpu.matmul %496, %497, %cst_184 {dimension_numbers = #tpu.dot_dimension_numbers<[1], [1], [0], [0], [0, 0, 1, 0], [], []>} : vector<8x16xf32>, vector<8x16xf32>, vector<8x8xf32> -> vector<8x8xf32>
    %500 = vector.broadcast %478 : vector<1x8xf32> to vector<8x8xf32>
    %501 = arith.addf %499, %500 : vector<8x8xf32>
    %cst_185 = arith.constant dense<0xFF800000> : vector<8xf32>
    %502 = vector.multi_reduction <maximumf>, %501, %cst_185 [1] : vector<8x8xf32> to vector<8xf32>
    %503 = vector.shape_cast %502 : vector<8xf32> to vector<8x1xf32>
    %504 = vector.broadcast %503 : vector<8x1xf32> to vector<8x8xf32>
    %505 = arith.subf %501, %504 : vector<8x8xf32>
    %506 = math.exp %505 : vector<8x8xf32>
    %cst_186 = arith.constant dense<0.000000e+00> : vector<8xf32>
    %507 = vector.multi_reduction <add>, %506, %cst_186 [1] : vector<8x8xf32> to vector<8xf32>
    %508 = vector.shape_cast %507 : vector<8xf32> to vector<8x1xf32>
    %509 = tpu.reciprocal %508 {approx = true} : vector<8x1xf32> -> vector<8x1xf32>
    %510 = vector.broadcast %509 : vector<8x1xf32> to vector<8x8xf32>
    %511 = arith.mulf %506, %510 : vector<8x8xf32>
    %cst_187 = arith.constant dense<0.000000e+00> : vector<8x16xf32>
    %512 = tpu.matmul %511, %498, %cst_187 {dimension_numbers = #tpu.dot_dimension_numbers<[1], [0], [0], [1], [0, 0, 1, 1], [], []>} : vector<8x8xf32>, vector<8x16xf32>, vector<8x16xf32> -> vector<8x16xf32>
    %513 = vector.extract_strided_slice %476 {offsets = [0, 32], sizes = [8, 16], strides = [1, 1]} : vector<8x384xf32> to vector<8x16xf32>
    %514 = vector.extract_strided_slice %476 {offsets = [0, 160], sizes = [8, 16], strides = [1, 1]} : vector<8x384xf32> to vector<8x16xf32>
    %515 = vector.extract_strided_slice %476 {offsets = [0, 288], sizes = [8, 16], strides = [1, 1]} : vector<8x384xf32> to vector<8x16xf32>
    %cst_188 = arith.constant dense<0.000000e+00> : vector<8x8xf32>
    %516 = tpu.matmul %513, %514, %cst_188 {dimension_numbers = #tpu.dot_dimension_numbers<[1], [1], [0], [0], [0, 0, 1, 0], [], []>} : vector<8x16xf32>, vector<8x16xf32>, vector<8x8xf32> -> vector<8x8xf32>
    %517 = vector.broadcast %478 : vector<1x8xf32> to vector<8x8xf32>
    %518 = arith.addf %516, %517 : vector<8x8xf32>
    %cst_189 = arith.constant dense<0xFF800000> : vector<8xf32>
    %519 = vector.multi_reduction <maximumf>, %518, %cst_189 [1] : vector<8x8xf32> to vector<8xf32>
    %520 = vector.shape_cast %519 : vector<8xf32> to vector<8x1xf32>
    %521 = vector.broadcast %520 : vector<8x1xf32> to vector<8x8xf32>
    %522 = arith.subf %518, %521 : vector<8x8xf32>
    %523 = math.exp %522 : vector<8x8xf32>
    %cst_190 = arith.constant dense<0.000000e+00> : vector<8xf32>
    %524 = vector.multi_reduction <add>, %523, %cst_190 [1] : vector<8x8xf32> to vector<8xf32>
    %525 = vector.shape_cast %524 : vector<8xf32> to vector<8x1xf32>
    %526 = tpu.reciprocal %525 {approx = true} : vector<8x1xf32> -> vector<8x1xf32>
    %527 = vector.broadcast %526 : vector<8x1xf32> to vector<8x8xf32>
    %528 = arith.mulf %523, %527 : vector<8x8xf32>
    %cst_191 = arith.constant dense<0.000000e+00> : vector<8x16xf32>
    %529 = tpu.matmul %528, %515, %cst_191 {dimension_numbers = #tpu.dot_dimension_numbers<[1], [0], [0], [1], [0, 0, 1, 1], [], []>} : vector<8x8xf32>, vector<8x16xf32>, vector<8x16xf32> -> vector<8x16xf32>
    %530 = vector.extract_strided_slice %476 {offsets = [0, 48], sizes = [8, 16], strides = [1, 1]} : vector<8x384xf32> to vector<8x16xf32>
    %531 = vector.extract_strided_slice %476 {offsets = [0, 176], sizes = [8, 16], strides = [1, 1]} : vector<8x384xf32> to vector<8x16xf32>
    %532 = vector.extract_strided_slice %476 {offsets = [0, 304], sizes = [8, 16], strides = [1, 1]} : vector<8x384xf32> to vector<8x16xf32>
    %cst_192 = arith.constant dense<0.000000e+00> : vector<8x8xf32>
    %533 = tpu.matmul %530, %531, %cst_192 {dimension_numbers = #tpu.dot_dimension_numbers<[1], [1], [0], [0], [0, 0, 1, 0], [], []>} : vector<8x16xf32>, vector<8x16xf32>, vector<8x8xf32> -> vector<8x8xf32>
    %534 = vector.broadcast %478 : vector<1x8xf32> to vector<8x8xf32>
    %535 = arith.addf %533, %534 : vector<8x8xf32>
    %cst_193 = arith.constant dense<0xFF800000> : vector<8xf32>
    %536 = vector.multi_reduction <maximumf>, %535, %cst_193 [1] : vector<8x8xf32> to vector<8xf32>
    %537 = vector.shape_cast %536 : vector<8xf32> to vector<8x1xf32>
    %538 = vector.broadcast %537 : vector<8x1xf32> to vector<8x8xf32>
    %539 = arith.subf %535, %538 : vector<8x8xf32>
    %540 = math.exp %539 : vector<8x8xf32>
    %cst_194 = arith.constant dense<0.000000e+00> : vector<8xf32>
    %541 = vector.multi_reduction <add>, %540, %cst_194 [1] : vector<8x8xf32> to vector<8xf32>
    %542 = vector.shape_cast %541 : vector<8xf32> to vector<8x1xf32>
    %543 = tpu.reciprocal %542 {approx = true} : vector<8x1xf32> -> vector<8x1xf32>
    %544 = vector.broadcast %543 : vector<8x1xf32> to vector<8x8xf32>
    %545 = arith.mulf %540, %544 : vector<8x8xf32>
    %cst_195 = arith.constant dense<0.000000e+00> : vector<8x16xf32>
    %546 = tpu.matmul %545, %532, %cst_195 {dimension_numbers = #tpu.dot_dimension_numbers<[1], [0], [0], [1], [0, 0, 1, 1], [], []>} : vector<8x8xf32>, vector<8x16xf32>, vector<8x16xf32> -> vector<8x16xf32>
    %547 = vector.extract_strided_slice %476 {offsets = [0, 64], sizes = [8, 16], strides = [1, 1]} : vector<8x384xf32> to vector<8x16xf32>
    %548 = vector.extract_strided_slice %476 {offsets = [0, 192], sizes = [8, 16], strides = [1, 1]} : vector<8x384xf32> to vector<8x16xf32>
    %549 = vector.extract_strided_slice %476 {offsets = [0, 320], sizes = [8, 16], strides = [1, 1]} : vector<8x384xf32> to vector<8x16xf32>
    %cst_196 = arith.constant dense<0.000000e+00> : vector<8x8xf32>
    %550 = tpu.matmul %547, %548, %cst_196 {dimension_numbers = #tpu.dot_dimension_numbers<[1], [1], [0], [0], [0, 0, 1, 0], [], []>} : vector<8x16xf32>, vector<8x16xf32>, vector<8x8xf32> -> vector<8x8xf32>
    %551 = vector.broadcast %478 : vector<1x8xf32> to vector<8x8xf32>
    %552 = arith.addf %550, %551 : vector<8x8xf32>
    %cst_197 = arith.constant dense<0xFF800000> : vector<8xf32>
    %553 = vector.multi_reduction <maximumf>, %552, %cst_197 [1] : vector<8x8xf32> to vector<8xf32>
    %554 = vector.shape_cast %553 : vector<8xf32> to vector<8x1xf32>
    %555 = vector.broadcast %554 : vector<8x1xf32> to vector<8x8xf32>
    %556 = arith.subf %552, %555 : vector<8x8xf32>
    %557 = math.exp %556 : vector<8x8xf32>
    %cst_198 = arith.constant dense<0.000000e+00> : vector<8xf32>
    %558 = vector.multi_reduction <add>, %557, %cst_198 [1] : vector<8x8xf32> to vector<8xf32>
    %559 = vector.shape_cast %558 : vector<8xf32> to vector<8x1xf32>
    %560 = tpu.reciprocal %559 {approx = true} : vector<8x1xf32> -> vector<8x1xf32>
    %561 = vector.broadcast %560 : vector<8x1xf32> to vector<8x8xf32>
    %562 = arith.mulf %557, %561 : vector<8x8xf32>
    %cst_199 = arith.constant dense<0.000000e+00> : vector<8x16xf32>
    %563 = tpu.matmul %562, %549, %cst_199 {dimension_numbers = #tpu.dot_dimension_numbers<[1], [0], [0], [1], [0, 0, 1, 1], [], []>} : vector<8x8xf32>, vector<8x16xf32>, vector<8x16xf32> -> vector<8x16xf32>
    %564 = vector.extract_strided_slice %476 {offsets = [0, 80], sizes = [8, 16], strides = [1, 1]} : vector<8x384xf32> to vector<8x16xf32>
    %565 = vector.extract_strided_slice %476 {offsets = [0, 208], sizes = [8, 16], strides = [1, 1]} : vector<8x384xf32> to vector<8x16xf32>
    %566 = vector.extract_strided_slice %476 {offsets = [0, 336], sizes = [8, 16], strides = [1, 1]} : vector<8x384xf32> to vector<8x16xf32>
    %cst_200 = arith.constant dense<0.000000e+00> : vector<8x8xf32>
    %567 = tpu.matmul %564, %565, %cst_200 {dimension_numbers = #tpu.dot_dimension_numbers<[1], [1], [0], [0], [0, 0, 1, 0], [], []>} : vector<8x16xf32>, vector<8x16xf32>, vector<8x8xf32> -> vector<8x8xf32>
    %568 = vector.broadcast %478 : vector<1x8xf32> to vector<8x8xf32>
    %569 = arith.addf %567, %568 : vector<8x8xf32>
    %cst_201 = arith.constant dense<0xFF800000> : vector<8xf32>
    %570 = vector.multi_reduction <maximumf>, %569, %cst_201 [1] : vector<8x8xf32> to vector<8xf32>
    %571 = vector.shape_cast %570 : vector<8xf32> to vector<8x1xf32>
    %572 = vector.broadcast %571 : vector<8x1xf32> to vector<8x8xf32>
    %573 = arith.subf %569, %572 : vector<8x8xf32>
    %574 = math.exp %573 : vector<8x8xf32>
    %cst_202 = arith.constant dense<0.000000e+00> : vector<8xf32>
    %575 = vector.multi_reduction <add>, %574, %cst_202 [1] : vector<8x8xf32> to vector<8xf32>
    %576 = vector.shape_cast %575 : vector<8xf32> to vector<8x1xf32>
    %577 = tpu.reciprocal %576 {approx = true} : vector<8x1xf32> -> vector<8x1xf32>
    %578 = vector.broadcast %577 : vector<8x1xf32> to vector<8x8xf32>
    %579 = arith.mulf %574, %578 : vector<8x8xf32>
    %cst_203 = arith.constant dense<0.000000e+00> : vector<8x16xf32>
    %580 = tpu.matmul %579, %566, %cst_203 {dimension_numbers = #tpu.dot_dimension_numbers<[1], [0], [0], [1], [0, 0, 1, 1], [], []>} : vector<8x8xf32>, vector<8x16xf32>, vector<8x16xf32> -> vector<8x16xf32>
    %581 = vector.extract_strided_slice %476 {offsets = [0, 96], sizes = [8, 16], strides = [1, 1]} : vector<8x384xf32> to vector<8x16xf32>
    %582 = vector.extract_strided_slice %476 {offsets = [0, 224], sizes = [8, 16], strides = [1, 1]} : vector<8x384xf32> to vector<8x16xf32>
    %583 = vector.extract_strided_slice %476 {offsets = [0, 352], sizes = [8, 16], strides = [1, 1]} : vector<8x384xf32> to vector<8x16xf32>
    %cst_204 = arith.constant dense<0.000000e+00> : vector<8x8xf32>
    %584 = tpu.matmul %581, %582, %cst_204 {dimension_numbers = #tpu.dot_dimension_numbers<[1], [1], [0], [0], [0, 0, 1, 0], [], []>} : vector<8x16xf32>, vector<8x16xf32>, vector<8x8xf32> -> vector<8x8xf32>
    %585 = vector.broadcast %478 : vector<1x8xf32> to vector<8x8xf32>
    %586 = arith.addf %584, %585 : vector<8x8xf32>
    %cst_205 = arith.constant dense<0xFF800000> : vector<8xf32>
    %587 = vector.multi_reduction <maximumf>, %586, %cst_205 [1] : vector<8x8xf32> to vector<8xf32>
    %588 = vector.shape_cast %587 : vector<8xf32> to vector<8x1xf32>
    %589 = vector.broadcast %588 : vector<8x1xf32> to vector<8x8xf32>
    %590 = arith.subf %586, %589 : vector<8x8xf32>
    %591 = math.exp %590 : vector<8x8xf32>
    %cst_206 = arith.constant dense<0.000000e+00> : vector<8xf32>
    %592 = vector.multi_reduction <add>, %591, %cst_206 [1] : vector<8x8xf32> to vector<8xf32>
    %593 = vector.shape_cast %592 : vector<8xf32> to vector<8x1xf32>
    %594 = tpu.reciprocal %593 {approx = true} : vector<8x1xf32> -> vector<8x1xf32>
    %595 = vector.broadcast %594 : vector<8x1xf32> to vector<8x8xf32>
    %596 = arith.mulf %591, %595 : vector<8x8xf32>
    %cst_207 = arith.constant dense<0.000000e+00> : vector<8x16xf32>
    %597 = tpu.matmul %596, %583, %cst_207 {dimension_numbers = #tpu.dot_dimension_numbers<[1], [0], [0], [1], [0, 0, 1, 1], [], []>} : vector<8x8xf32>, vector<8x16xf32>, vector<8x16xf32> -> vector<8x16xf32>
    %598 = vector.extract_strided_slice %476 {offsets = [0, 112], sizes = [8, 16], strides = [1, 1]} : vector<8x384xf32> to vector<8x16xf32>
    %599 = vector.extract_strided_slice %476 {offsets = [0, 240], sizes = [8, 16], strides = [1, 1]} : vector<8x384xf32> to vector<8x16xf32>
    %600 = vector.extract_strided_slice %476 {offsets = [0, 368], sizes = [8, 16], strides = [1, 1]} : vector<8x384xf32> to vector<8x16xf32>
    %cst_208 = arith.constant dense<0.000000e+00> : vector<8x8xf32>
    %601 = tpu.matmul %598, %599, %cst_208 {dimension_numbers = #tpu.dot_dimension_numbers<[1], [1], [0], [0], [0, 0, 1, 0], [], []>} : vector<8x16xf32>, vector<8x16xf32>, vector<8x8xf32> -> vector<8x8xf32>
    %602 = vector.broadcast %478 : vector<1x8xf32> to vector<8x8xf32>
    %603 = arith.addf %601, %602 : vector<8x8xf32>
    %cst_209 = arith.constant dense<0xFF800000> : vector<8xf32>
    %604 = vector.multi_reduction <maximumf>, %603, %cst_209 [1] : vector<8x8xf32> to vector<8xf32>
    %605 = vector.shape_cast %604 : vector<8xf32> to vector<8x1xf32>
    %606 = vector.broadcast %605 : vector<8x1xf32> to vector<8x8xf32>
    %607 = arith.subf %603, %606 : vector<8x8xf32>
    %608 = math.exp %607 : vector<8x8xf32>
    %cst_210 = arith.constant dense<0.000000e+00> : vector<8xf32>
    %609 = vector.multi_reduction <add>, %608, %cst_210 [1] : vector<8x8xf32> to vector<8xf32>
    %610 = vector.shape_cast %609 : vector<8xf32> to vector<8x1xf32>
    %611 = tpu.reciprocal %610 {approx = true} : vector<8x1xf32> -> vector<8x1xf32>
    %612 = vector.broadcast %611 : vector<8x1xf32> to vector<8x8xf32>
    %613 = arith.mulf %608, %612 : vector<8x8xf32>
    %cst_211 = arith.constant dense<0.000000e+00> : vector<8x16xf32>
    %614 = tpu.matmul %613, %600, %cst_211 {dimension_numbers = #tpu.dot_dimension_numbers<[1], [0], [0], [1], [0, 0, 1, 1], [], []>} : vector<8x8xf32>, vector<8x16xf32>, vector<8x16xf32> -> vector<8x16xf32>
    %615 = tpu.concatenate %495, %512, %529, %546, %563, %580, %597, %614 in 1 : vector<8x16xf32>, vector<8x16xf32>, vector<8x16xf32>, vector<8x16xf32>, vector<8x16xf32>, vector<8x16xf32>, vector<8x16xf32>, vector<8x16xf32> -> vector<8x128xf32>
    %616 = arith.truncf %615 : vector<8x128xf32> to vector<8x128xbf16>
    %cst_212 = arith.constant dense<0.000000e+00> : vector<8x128xf32>
    %617 = tpu.matmul %616, %439, %cst_212 {dimension_numbers = #tpu.dot_dimension_numbers<[1], [0], [0], [1], [0, 0, 1, 1], [], []>} : vector<8x128xbf16>, vector<128x128xbf16>, vector<8x128xf32> -> vector<8x128xf32>
    %618 = vector.broadcast %446 : vector<1x128xf32> to vector<8x128xf32>
    %619 = arith.addf %617, %618 : vector<8x128xf32>
    %620 = arith.addf %435, %619 : vector<8x128xf32>
    %cst_213 = arith.constant dense<0.000000e+00> : vector<8xf32>
    %621 = vector.multi_reduction <add>, %620, %cst_213 [1] : vector<8x128xf32> to vector<8xf32>
    %622 = vector.shape_cast %621 : vector<8xf32> to vector<8x1xf32>
    %cst_214 = arith.constant 1.280000e+02 : f32
    %623 = vector.broadcast %cst_214 : f32 to vector<8x1xf32>
    %624 = arith.divf %622, %623 : vector<8x1xf32>
    %625 = vector.broadcast %624 : vector<8x1xf32> to vector<8x128xf32>
    %626 = arith.subf %620, %625 : vector<8x128xf32>
    %627 = arith.mulf %626, %626 : vector<8x128xf32>
    %cst_215 = arith.constant dense<0.000000e+00> : vector<8xf32>
    %628 = vector.multi_reduction <add>, %627, %cst_215 [1] : vector<8x128xf32> to vector<8xf32>
    %629 = vector.shape_cast %628 : vector<8xf32> to vector<8x1xf32>
    %cst_216 = arith.constant 0.00787401571 : f32
    %630 = vector.broadcast %cst_216 : f32 to vector<8x1xf32>
    %631 = arith.mulf %629, %630 : vector<8x1xf32>
    %632 = math.sqrt %631 : vector<8x1xf32>
    %cst_217 = arith.constant 9.99999997E-7 : f32
    %633 = vector.broadcast %cst_217 : f32 to vector<8x1xf32>
    %634 = arith.addf %632, %633 : vector<8x1xf32>
    %635 = tpu.reciprocal %634 {approx = true} : vector<8x1xf32> -> vector<8x1xf32>
    %636 = vector.broadcast %635 : vector<8x1xf32> to vector<8x128xf32>
    %637 = arith.mulf %626, %636 : vector<8x128xf32>
    %638 = vector.broadcast %450 : vector<1x128xf32> to vector<8x128xf32>
    %639 = arith.mulf %638, %637 : vector<8x128xf32>
    %640 = vector.broadcast %451 : vector<1x128xf32> to vector<8x128xf32>
    %641 = arith.addf %639, %640 : vector<8x128xf32>
    %642 = arith.truncf %641 : vector<8x128xf32> to vector<8x128xbf16>
    %cst_218 = arith.constant dense<0.000000e+00> : vector<8x256xf32>
    %643 = tpu.matmul %642, %441, %cst_218 {dimension_numbers = #tpu.dot_dimension_numbers<[1], [0], [0], [1], [0, 0, 1, 1], [], []>} : vector<8x128xbf16>, vector<128x256xbf16>, vector<8x256xf32> -> vector<8x256xf32>
    %644 = vector.broadcast %445 : vector<1x256xf32> to vector<8x256xf32>
    %645 = arith.addf %643, %644 : vector<8x256xf32>
    %cst_219 = arith.constant 0.000000e+00 : f32
    %646 = vector.broadcast %cst_219 : f32 to vector<8x256xf32>
    %647 = arith.maximumf %645, %646 : vector<8x256xf32>
    %648 = arith.truncf %647 : vector<8x256xf32> to vector<8x256xbf16>
    %cst_220 = arith.constant dense<0.000000e+00> : vector<8x128xf32>
    %649 = tpu.matmul %648, %443, %cst_220 {dimension_numbers = #tpu.dot_dimension_numbers<[1], [0], [0], [1], [0, 0, 1, 1], [], []>} : vector<8x256xbf16>, vector<256x128xbf16>, vector<8x128xf32> -> vector<8x128xf32>
    %650 = vector.broadcast %447 : vector<1x128xf32> to vector<8x128xf32>
    %651 = arith.addf %649, %650 : vector<8x128xf32>
    %652 = arith.addf %620, %651 : vector<8x128xf32>
    %c12 = arith.constant 12 : index
    %c0_221 = arith.constant 0 : index
    %653 = vector.load %arg4[%c12, %c0_221] : memref<16x384xf32, #tpu.memory_space<vmem>>, vector<1x128xf32>
    %c12_222 = arith.constant 12 : index
    %c128_223 = arith.constant 128 : index
    %654 = vector.load %arg4[%c12_222, %c128_223] : memref<16x384xf32, #tpu.memory_space<vmem>>, vector<1x128xf32>
    %cst_224 = arith.constant dense<0.000000e+00> : vector<8xf32>
    %655 = vector.multi_reduction <add>, %652, %cst_224 [1] : vector<8x128xf32> to vector<8xf32>
    %656 = vector.shape_cast %655 : vector<8xf32> to vector<8x1xf32>
    %cst_225 = arith.constant 1.280000e+02 : f32
    %657 = vector.broadcast %cst_225 : f32 to vector<8x1xf32>
    %658 = arith.divf %656, %657 : vector<8x1xf32>
    %659 = vector.broadcast %658 : vector<8x1xf32> to vector<8x128xf32>
    %660 = arith.subf %652, %659 : vector<8x128xf32>
    %661 = arith.mulf %660, %660 : vector<8x128xf32>
    %cst_226 = arith.constant dense<0.000000e+00> : vector<8xf32>
    %662 = vector.multi_reduction <add>, %661, %cst_226 [1] : vector<8x128xf32> to vector<8xf32>
    %663 = vector.shape_cast %662 : vector<8xf32> to vector<8x1xf32>
    %cst_227 = arith.constant 0.00787401571 : f32
    %664 = vector.broadcast %cst_227 : f32 to vector<8x1xf32>
    %665 = arith.mulf %663, %664 : vector<8x1xf32>
    %666 = math.sqrt %665 : vector<8x1xf32>
    %cst_228 = arith.constant 9.99999997E-7 : f32
    %667 = vector.broadcast %cst_228 : f32 to vector<8x1xf32>
    %668 = arith.addf %666, %667 : vector<8x1xf32>
    %669 = tpu.reciprocal %668 {approx = true} : vector<8x1xf32> -> vector<8x1xf32>
    %670 = vector.broadcast %669 : vector<8x1xf32> to vector<8x128xf32>
    %671 = arith.mulf %660, %670 : vector<8x128xf32>
    %672 = vector.broadcast %653 : vector<1x128xf32> to vector<8x128xf32>
    %673 = arith.mulf %672, %671 : vector<8x128xf32>
    %674 = vector.broadcast %654 : vector<1x128xf32> to vector<8x128xf32>
    %675 = arith.addf %673, %674 : vector<8x128xf32>
    %676 = vector.shape_cast %675 : vector<8x128xf32> to vector<1x8x128xf32>
    %c0_229 = arith.constant 0 : index
    %c0_230 = arith.constant 0 : index
    %c0_231 = arith.constant 0 : index
    %677 = vector.load %arg5[%c0_229, %c0_230, %c0_231] : memref<1x8x128xf32, #tpu.memory_space<vmem>>, vector<1x8x128xf32>
    tpu.vector_store %arg5[%c0_229, %c0_230, %c0_231], %676 {strides = array<i32>} : memref<1x8x128xf32, #tpu.memory_space<vmem>>, vector<1x8x128xf32>,
    return
  }
  func.func @transform_0(%arg0: i32) -> (i32, i32, i32) {
    %c0_i32 = arith.constant 0 : i32
    %c0_i32_0 = arith.constant 0 : i32
    %c0_i32_1 = arith.constant 0 : i32
    return %arg0, %c0_i32, %c0_i32_0 : i32, i32, i32
  }
  func.func @transform_1(%arg0: i32) -> (i32, i32, i32) {
    %c0_i32 = arith.constant 0 : i32
    %c0_i32_0 = arith.constant 0 : i32
    %c0_i32_1 = arith.constant 0 : i32
    return %arg0, %c0_i32, %c0_i32_0 : i32, i32, i32
  }
  func.func @transform_2(%arg0: i32) -> (i32, i32, i32) {
    %c0_i32 = arith.constant 0 : i32
    %c0_i32_0 = arith.constant 0 : i32
    %c0_i32_1 = arith.constant 0 : i32
    %c0_i32_2 = arith.constant 0 : i32
    return %c0_i32, %c0_i32_0, %c0_i32_1 : i32, i32, i32
  }
  func.func @transform_3(%arg0: i32) -> (i32, i32) {
    %c0_i32 = arith.constant 0 : i32
    %c0_i32_0 = arith.constant 0 : i32
    %c0_i32_1 = arith.constant 0 : i32
    return %c0_i32, %c0_i32_0 : i32, i32
  }
  func.func @transform_4(%arg0: i32) -> (i32, i32, i32) {
    %c0_i32 = arith.constant 0 : i32
    %c0_i32_0 = arith.constant 0 : i32
    %c0_i32_1 = arith.constant 0 : i32
    return %arg0, %c0_i32, %c0_i32_0 : i32, i32, i32
  }
}

</mosaic_0001>

<bundles_post_ra>
// kernel: encoder_forward.1
= control target key start
LH: loop header
LB: loop body
LE: loop exit
PB: predicated region body
PF: predicated region fallthrough
CT: control target
= control target key end

     0   :  { %9 = vsyncpa [#allocation3], 0  ;;  %s8897_s0 = inlined_call_operand.vmem [shape: f32[2,8,128], index: 0, kind: input, shape index: {}]   ;;  %s8898_s1 = inlined_call_operand.vmem [shape: f32[2,1,8], index: 1, kind: input, shape index: {}]   ;;  %s8899_s2 = inlined_call_operand.hbm [shape: bf16[3,640,384], index: 2, kind: input, shape index: {}]   ;;  %s8900_s3 = inlined_call_operand.hbm [shape: f32[16,384], index: 3, kind: input, shape index: {}]   ;;  %s8901_s4 = inlined_call_operand.hbm [shape: f32[2,8,128], index: 4, kind: output, shape index: {}]  }
   0x1   :  { %10 = vsyncpa [#allocation6], 0 }
   0x2   :  { %11 = vsyncpa [#allocation4], 0 }
   0x3   :  { %13 = vsyncpa [#allocation4 + $0x1], 0  ;;  %s8104_s15 = smov 0   ;;  %s8106_s16 = smov 0  }
   0x4   :  { %s8108_s17 = smov 0   ;;  %s8110_s18 = smov 0  }
   0x5 LB: > { %s8125_s19 = sadd.s32 4294967295, %s8060_s18   ;;  %s6644_s20 = sadd.s32 4294967294, %s8060_s18   ;;  %s8060_s18 = sphi %s8110_s18, %s8915_s18   ;;  %s8056_s17 = sphi %s8108_s17, %s8914_s17   ;;  %s8052_s16 = sphi %s8106_s16, %s8913_s16   ;;  %s8048_s15 = sphi %s8104_s15, %s8912_s15  }
   0x6   : > { %s8129_s21 = sadd.s32 1, %s8060_s18   ;;  %s120_s22 = sadd.s32 1, %s8056_s17 }
   0x7   : > { %s117_s23 = ssub.s32 %s8060_s18, %s8129_s21  ;;  %p130_p0 = scmp.ne.s32.totalorder %s8056_s17, %s8052_s16 }
   0x8   : > { %p118_p1 = scmp.eq.s32.totalorder %s117_s23, 0  ;;  %p131_p2 = scmp.eq.s32.totalorder %s8125_s19, 1 }
   0x9   : > { %p136_p3 = scmp.ne.s32.totalorder %s8052_s16, %s8048_s15  ;;  %p137_p4 = scmp.eq.s32.totalorder %s6644_s20, 1 }
   0xa   : > { %s8140_s24 = scalar_select %p118_p1, %s8056_s17, %s120_s22  }
   0xb   : > { %p8142_p5 = por %p131_p2, %p130_p0  ;;  %p8146_p6 = por %p137_p4, %p136_p3 }
   0xc   : > { %p6645_p7 = scmp.ge.s32.totalorder %s8060_s18, 1  ;;  %p144_p8 = scmp.lt.s32.totalorder %s8060_s18, 3 }
   0xd   : > { %s8904_s26 = scalar_select %p8146_p6, 1, 0 }
   0xe   : > { %p8902_p9 = scmp.eq.s32.totalorder %s8125_s19, 0  ;;  %p8153_p10 = pnand %p6645_p7, %p144_p8 }
   0xf   : > { %s8062_s28 = smov [#allocation2]   ;;  %s8063_s5 = smov [#allocation5]  }
  0x10   : > { %s156_s29 = sshll.u32 %s8062_s28, 4  ;;  %p7509_p11 = pneg %p8153_p10  ;;  %s157_s29 = int_to_ptr.vmem [resolvable:$true] %s156_s29 }
  0x11   : > { %s169_s6 = sshll.u32 %s8063_s5, 4  ;;  %s7951_s7 = scalar_lea.vmem %s157_s29, 46080  ;;  %s170_s6 = int_to_ptr.vmem [resolvable:$true] %s169_s6 }
  0x12   : > { %p8161_p12 = pnand %p8902_p9, %p7509_p11  ;;  %p7952_p0 = scmp.ne.s32.totalorder %s157_s29, %s7951_s7 }
  0x13   : > { %p7959_p3 = scmp.lt.s32.totalorder %s157_s29, %s157_s29  ;;  %p7960_p4 = scmp.lt.s32.totalorder %s7951_s7, %s7951_s7 }
  0x14   : > { %p7942_p13 = pneg %p8161_p12 }
  0x15   : > { %p7961_p7 = por %p7960_p4, %p7959_p3 }
  0x16   : > { %p7954_p1 = pnand %p7952_p0, %p7942_p13 }
  0x18   : > { %p7955_p2 = pneg %p7954_p1 }
  0x1a   : > { %p7962_p8 = pnand %p7961_p7, %p7955_p2 }
  0x1c   : > { %7965 = shalt.err (!%p7962_p8)
}
  0x1d   : > { %s8064_s8 = smov 192   ;;  %s8065_s9 = smov 12  }
  0x1e   : > { %7512 = dma.hbm_to_vmem [thread:$0]  (!%p8161_p12), %s8899_s2, 46080, %s157_s29, [#allocation3], %s8064_s8, %s8064_s8, %s8065_s9  }
  0x1f   : > { %s7977_s12 = scalar_lea.vmem %s170_s6, 768  ;;  %p7985_p9 = scmp.lt.s32.totalorder %s170_s6, %s170_s6 }
  0x20   : > { %p7978_p11 = scmp.ne.s32.totalorder %s170_s6, %s7977_s12  ;;  %p7986_p6 = scmp.lt.s32.totalorder %s7977_s12, %s7977_s12 }
  0x22   : > { %p7980_p0 = pnand %p7978_p11, %p7942_p13  ;;  %p7987_p3 = por %p7986_p6, %p7985_p9 }
  0x24   : > { %p7981_p1 = pneg %p7980_p0 }
  0x26   : > { %p7988_p2 = pnand %p7987_p3, %p7981_p1 }
  0x28   : > { %7991 = shalt.err (!%p7988_p2)
}
  0x29   : > { %s8066_s13 = smov 384   ;;  %s8067_s14 = smov 24  }
  0x2a   : > { %7515 = dma.hbm_to_vmem [thread:$0]  (!%p8161_p12), %s8900_s3, 768, %s170_s6, [#allocation6], %s8066_s13, %s8066_s13, %s8067_s14  }
  0x2b   : > { %198 = sbr.rel (%p8153_p10) target bundleno = 12048 (0x2f10), region = 36  ;;  %p8907_p4 = scmp.eq.s32.totalorder (!%p8153_p10), %s8125_s19, 0 }
  0x30   : > { %8035 = dma.done.wait (%p8907_p4), [#allocation3], 46080   ;;  %p8908_p13 = pmov %p8907_p4 }
  0x31   : > { %p8909_p6 = pmov %p8907_p4 }
  0x32   : > { %8037 = vsyncadd (%p8908_p13), [#allocation3], 4294921216 }
  0x33   : > { %8039 = dma.done.wait (%p8909_p6), [#allocation6], 768   ;;  %p8910_p9 = pmov %p8907_p4 }
  0x34   : > { %p230_p7 = scmp.lt.s32.totalorder %s8125_s19, 1  ;;  %v7573_v5 = vld [vmem:[#allocation2 + $0xac] ss:$12 sps:$4 sm:$0xff]   ;;  %v7575_v6 = vld [vmem:[#allocation2 + $0xa8] ss:$12 sps:$4 sm:$0xff]   ;;  %v8068_v8 = vmov 0.0   ;;  %v367_v46 = vlaneseq }
  0x35   : > { %8041 = vsyncadd (%p8910_p9), [#allocation6], 4294966528  ;;  %v7576_v7 = vld [vmem:[#allocation2 + $0xb0] ss:$12 sps:$4 sm:$0xff]   ;;  %510 = vmatprep.subr.bf16.mxu0 %v7573_v5  ;;  %7139 = vmatprep.subr.bf16.mxu1 %v8068_v8  ;;  %v7577_v9 = vld [vmem:[#allocation2 + $0x94] ss:$12 sps:$4 sm:$0xff]  }
  0x36   : > { %s8195_s23 = scalar_select %p230_p7, %s8125_s19, 1  ;;  %511 = vmatpush1.bf16.msra.mxu0 %v7575_v6  ;;  %7140 = vmatpush3.bf16.msra.mxu1 %v7576_v7  ;;  %v7579_v10 = vld [vmem:[#allocation2 + $0x90] ss:$12 sps:$4 sm:$0xff]   ;;  %v7580_v11 = vld [vmem:[#allocation2 + $0x98] ss:$12 sps:$4 sm:$0xff]   ;;  %v8069_v22 = vmov 0  }
  0x37   : > { %7141 = vmatprep.subr.bf16.mxu1 %v8068_v8  ;;  %512 = vmatprep.subr.bf16.mxu0 %v7577_v9  ;;  %v7581_v12 = vld [vmem:[#allocation2 + $0x7c] ss:$12 sps:$4 sm:$0xff]   ;;  %v7583_v13 = vld [vmem:[#allocation2 + $0x78] ss:$12 sps:$4 sm:$0xff]   ;;  %v7584_v14 = vld [vmem:[#allocation2 + $0x80] ss:$12 sps:$4 sm:$0xff]  }
  0x38   : > { %s6653_s27 = sshll.u32 %s8195_s23, 3  ;;  %v7585_v15 = vld [vmem:[#allocation2 + $0x64] ss:$12 sps:$4 sm:$0xff]   ;;  %v7587_v16 = vld [vmem:[#allocation2 + $0x60] ss:$12 sps:$4 sm:$0xff]   ;;  %542 = vmatprep.mubr.bf16.mxu0 %v8069_v22  ;;  %vm8070_vm0 = vmmov 0   ;;  %s8256_s8 = scalar_lea.vmem %s8898_s1, %s8195_s23 }
  0x39   : > { %s8201_s30 = scalar_lea.vmem %s8897_s0, %s6653_s27  ;;  %v7588_v17 = vld [vmem:[#allocation2 + $0x68] ss:$12 sps:$4 sm:$0xff]   ;;  %v7589_v18 = vld [vmem:[#allocation2 + $0x4c] ss:$12 sps:$4 sm:$0xff]   ;;  %v7592_v20 = vld [vmem:[#allocation2 + $0x50] ss:$12 sps:$4 sm:$0xff]   ;;  %7155 = vmatprep.mubr.msk.bf16.mxu1 %vm8070_vm0, %v8068_v8 }
  0x3a   : > { %v238_v0 = vld [vmem:[%s8201_s30] sm:$0xff]  ;;  %513 = vmatpush1.bf16.msra.mxu0 %v7579_v10  ;;  %7142 = vmatpush3.bf16.msra.mxu1 %v7580_v11  ;;  %v7591_v19 = vld [vmem:[#allocation2 + $0x48] ss:$12 sps:$4 sm:$0xff]   ;;  %v7595_v23 = vld [vmem:[#allocation2 + $0x30] ss:$12 sps:$4 sm:$0xff]   ;;  %v368_v47 = vshrl.u32 %v367_v46, 7 }
  0x3b   : > { %344 = vadd.xlane.f32.xlu0 %v238_v0  ;;  %7143 = vmatprep.subr.bf16.mxu1 %v8068_v8  ;;  %v7593_v21 = vld [vmem:[#allocation2 + $0x34] ss:$12 sps:$4 sm:$0xff]   ;;  %v7596_v24 = vld [vmem:[#allocation2 + $0x38] ss:$12 sps:$4 sm:$0xff]   ;;  %v7597_v25 = vld [vmem:[#allocation2 + $0x1c] ss:$12 sps:$4 sm:$0xff]  }
  0x3c   : > { %514 = vmatprep.subr.bf16.mxu0 %v7581_v12  ;;  %v7599_v26 = vld [vmem:[#allocation2 + $0x18] ss:$12 sps:$4 sm:$0xff]   ;;  %v7600_v27 = vld [vmem:[#allocation2 + $0x20] ss:$12 sps:$4 sm:$0xff]   ;;  %v7604_v30 = vld [vmem:[#allocation2 + $0x8] ss:$12 sps:$4 sm:$0xff]  }
  0x3d   : > { %v7601_v28 = vld [vmem:[#allocation2 + $0x4] ss:$12 sps:$4 sm:$0xff]   ;;  %v7603_v29 = vld [vmem:[#allocation2] ss:$12 sps:$4 sm:$0xff]   ;;  %v340_v40 = vld [vmem:[#allocation5 + $0xa] ss:$0 sm:$0xff] }
  0x3e   : > { %515 = vmatpush1.bf16.msra.mxu0 %v7583_v13  ;;  %7144 = vmatpush3.bf16.msra.mxu1 %v7584_v14  ;;  %v341_v42 = vld [vmem:[#allocation5 + $0x12] ss:$0 sm:$0xff]  ;;  %v8226_v48 = vsub.s32 1, %v368_v47  ;;  %v335_v49 = vld [vmem:[#allocation5] ss:$8 sm:$0x7] }
  0x3f   : > { %516 = vmatprep.subr.bf16.mxu0 %v7585_v15  ;;  %7145 = vmatprep.subr.bf16.mxu1 %v8068_v8  ;;  %v8228_v50 = vsub.s32 0, %v368_v47  ;;  %v8230_v51 = vsub.s32 2, %v368_v47  ;;  %vm598_vm3 = vcmask 130048   ;;  %s8071_s5 = smov 112   ;;  %vm675_vm4 = vcmask 64512   ;;  %s8072_s9 = smov 96  }
  0x40   : > { %v374_v52 = vrot.slane %v335_v49, %v8226_v48  ;;  %s8073_s10 = smov 80   ;;  %s8074_s11 = smov 64   ;;  %vm1945_vm5 = vcmask 261120   ;;  %vm1947_vm6 = vcmask 392192   ;;  %vm1949_vm7 = vcmask 523264  }
  0x41   : > { %v370_v55 = vrot.slane %v335_v49, %v8228_v50  ;;  %v378_v58 = vrot.slane %v335_v49, %v8230_v51  ;;  %s8075_s12 = smov 48   ;;  %s8076_s13 = smov 32   ;;  %vm1951_vm8 = vcmask 654336   ;;  %vm1953_vm9 = vcmask 785408  }
  0x42   : > { %517 = vmatpush1.bf16.msra.mxu0 %v7587_v16  ;;  %7146 = vmatpush3.bf16.msra.mxu1 %v7588_v17  ;;  %s8077_s14 = smov 16   ;;  %vm1955_vm10 = vcmask 916480   ;;  %s227_s20 = sand.u32 1, %s8052_s16  }
  0x43   : > { %518 = vmatprep.subr.bf16.mxu0 %v7589_v18  ;;  %7147 = vmatprep.subr.bf16.mxu1 %v8068_v8  ;;  %s6652_s22 = sshll.u32 %s227_s20, 3  ;;  %s6920_s23 = sshll.u32 %s8125_s19, 7 }
  0x44   : > { %s229_s27 = scalar_lea.vmem [#allocation7], %s6652_s22  ;;  %s6541_s6 = scalar_lea.sflag [#allocation4], %s227_s20 }
  0x45   : > { %s6554_s28 = sshll.u32 %s229_s27, 4  ;;  %s6555_s28 = int_to_ptr.vmem [resolvable:$true] %s6554_s28 }
  0x46   : > { %519 = vmatpush1.bf16.msra.mxu0 %v7591_v19  ;;  %7148 = vmatpush3.bf16.msra.mxu1 %v7592_v20  ;;  %s7992_s7 = scalar_lea.vmem %s6555_s28, 128 }
  0x47   : > { %520 = vmatprep.subr.bf16.mxu0 %v7593_v21  ;;  %7149 = vmatprep.subr.bf16.mxu1 %v8068_v8  ;;  %p7993_p10 = scmp.ne.s32.totalorder %s6555_s28, %s7992_s7 }
  0x49   : > { %p7994_p12 = pnand %p7993_p10, %p8142_p5 }
  0x4a   : > { %521 = vmatpush1.bf16.msra.mxu0 %v7595_v23  ;;  %7150 = vmatpush3.bf16.msra.mxu1 %v7596_v24 }
  0x4b   : > { %522 = vmatprep.subr.bf16.mxu0 %v7597_v25  ;;  %7151 = vmatprep.subr.bf16.mxu1 %v8068_v8  ;;  %p7995_p8 = pneg %p7994_p12 }
  0x4e   : > { %523 = vmatpush1.bf16.msra.mxu0 %v7599_v26  ;;  %7152 = vmatpush3.bf16.msra.mxu1 %v7600_v27 }
  0x4f   : > { %524 = vmatprep.subr.bf16.mxu0 %v7601_v28  ;;  %7153 = vmatprep.subr.bf16.mxu1 %v8068_v8 }
  0x52   : > { %525 = vmatpush1.bf16.msra.mxu0 %v7603_v29  ;;  %7154 = vmatpush3.bf16.msra.mxu1 %v7604_v30 }
  0x53   : > { %7159 = vmatprep.subr.mxu1 %v8068_v8  ;;  %7199 = vmatprep.subr.mxu0 %v8068_v8 }
  0xc4   : > { %v345_v1 = vpop.xlane.xlu0 %344 }
  0xc5   : > { %v347_v2 = vmul.f32 0.0078125, %v345_v1 }
  0xc7   : > { %v8204_v3 = vsub.f32 %v238_v0, %v347_v2  ;;  %v8259_v2 = vld [vmem:[%s8256_s8] ss:$0 sm:$0xff] }
  0xc9   : > { %v349_v4 = vmul.f32 %v8204_v3, %v8204_v3 }
  0xcb   : > { %350 = vadd.xlane.f32.xlu0 %v349_v4 }
 0x154   : > { %v351_v31 = vpop.xlane.xlu0 %350 }
 0x155   : > { %v352_v32 = vmul.f32 0.007874016, %v351_v31 }
 0x157   : > { %7813 = vrsqrt.f32 %v352_v32  ;;  %vm355_vm1 = vcmp.eq.f32.partialorder %v352_v32, inf  ;;  %v358_v35 = vand.u32 2147483648, %v352_v32  ;;  %vm357_vm2 = vcmp.eq.f32.partialorder %v352_v32, 0.0 }
 0x164   : > { %v7814_v33 = vpop.eup %7813 }
 0x165   : > { %v354_v34 = vmul.f32 %v7814_v33, %v352_v32 }
 0x167   : > { %v356_v36 = vsel %vm355_vm1, %v352_v32, %v354_v34 }
 0x168   : > { %v359_v37 = vsel %vm357_vm2, %v358_v35, %v356_v36 }
 0x169   : > { %v360_v38 = vadd.f32 1e-06, %v359_v37 }
 0x16b   : > { %7815 = vrcp.f32 %v360_v38 }
 0x178   : > { %v7816_v39 = vpop.eup %7815 }
 0x179   : > { %v362_v41 = vmul.f32 %v7816_v39, %v8204_v3 }
 0x17b   : > { %v363_v43 = vmul.f32 %v362_v41, %v340_v40 }
 0x17d   : > { %v364_v44 = vadd.f32 %v363_v43, %v341_v42 }
 0x17f   : > { %v365_v45 = vpack.c.bf16 %v364_v44, %v364_v44 }
 0x181   : > { %543 = vmatmul.mubr.bf16.vlgmr.msra.gmra.mxu0 %v365_v45  ;;  %7156 = vmatmul.mubr.bf16.vlgmr.msra.gmra.mxu1 %v365_v45 }
 0x182   : > { %7161 = vmatprep.mubr.msk.f32.mxu1 %vm8070_vm0, %v8068_v8  ;;  %7201 = vmatprep.mubr.msk.f32.mxu0 %vm8070_vm0, %v8068_v8 }
 0x241   : > { %v544_v53 = vpop.f32.mrf.mxu0  ;;  %v585_v54 = vpop.f32.mrf.mxu1 }
 0x242   : > { %v8241_v62 = vadd.f32 %v544_v53, %v370_v55  ;;  %v8244_v1 = vadd.f32 %v585_v54, %v378_v58 }
 0x243   : > { %v546_v56 = vpop.f32.mrf.mxu0  ;;  %v7157_v57 = vpop.f32.mrf.mxu1 }
 0x244   : > { %v8235_v59 = vadd.f32 %v546_v56, %v374_v52 }
 0x245   : > { %v548_v60 = vpop.f32.mrf.mxu0  ;;  %v588_v61 = vpop.f32.mrf.mxu1 }
 0x246   : > { %762 = vrot.lane.b32.xlu0 %v8235_v59, %s8071_s5  ;;  %7160 = vmatpush3.xpose.msk.msra.mxu1 %vm598_vm3, %v8235_v59 }
 0x247   : > { %v549_v63 = vpop.f32.mrf.mxu0  ;;  %v7158_v0 = vpop.f32.mrf.mxu1  ;;  %7164 = vmatprep.subr.mxu1 %v8068_v8 }
 0x249   : > { %7162 = vmatmul.mubr.msk.f32.vlgmr.msra.gmra.mxu1 %vm598_vm3, %v8241_v62 }
 0x24a   : > { %7165 = vmatpush3.msra.mxu1 %v8244_v1  ;;  %7166 = vmatprep.mubr.msk.f32.mxu1 %vm8070_vm0, %v8068_v8 }
 0x24b   : > { %7169 = vmatprep.subr.mxu1 %v8068_v8 }
 0x2b8   : > { %v763_v16 = vpop.permute.xlu0 %762 }
 0x309   : > { %v671_v3 = vpop.f32.mrf.mxu1 }
 0x30a   : > { %v672_v4 = vadd.f32 %v8259_v2, %v671_v3 }
 0x30b   : > { %v7163_v5 = vpop.f32.mrf.mxu1 }
 0x30c   : > { %v676_v6 = vsel %vm675_vm4, %v672_v4, -inf }
 0x30d   : > { %677 = vmax.xlane.f32.xlu1 %v676_v6 }
 0x396   : > { %v678_v7 = vpop.xlane.xlu1 %677 }
 0x397   : > { %v679_v9 = vsub.f32 %v672_v4, %v678_v7 }
 0x399   : > { %v680_v10 = vmul.f32 1.442695, %v679_v9 }
 0x39b   : > { %7817 = vpow2.f32 %v680_v10 }
 0x3a8   : > { %v7818_v11 = vpop.eup %7817 }
 0x3a9   : > { %v682_v12 = vsel %vm675_vm4, %v7818_v11, 0.0 }
 0x3aa   : > { %683 = vadd.xlane.f32.xlu1 %v682_v12 }
 0x3bb   : > { %760 = vrot.lane.b32.xlu1 %v8241_v62, %s8071_s5 }
 0x433   : > { %v684_v13 = vpop.xlane.xlu1 %683 }
 0x434   : > { %7819 = vrcp.f32 %v684_v13 }
 0x437   : > { %v761_v17 = vpop.permute.xlu1 %760 }
 0x441   : > { %v7820_v14 = vpop.eup %7819 }
 0x442   : > { %v686_v15 = vmul.f32 %v7820_v14, %v7818_v11 }
 0x444   : > { %7167 = vmatmul.mubr.msk.f32.vlgmr.msra.gmra.mxu1 %vm675_vm4, %v686_v15 }
 0x445   : > { %7170 = vmatpush3.xpose.msk.msra.mxu1 %vm598_vm3, %v763_v16  ;;  %7171 = vmatprep.mubr.msk.f32.mxu1 %vm8070_vm0, %v8068_v8 }
 0x446   : > { %7174 = vmatprep.subr.mxu1 %v8068_v8 }
 0x448   : > { %7172 = vmatmul.mubr.msk.f32.vlgmr.msra.gmra.mxu1 %vm598_vm3, %v761_v17 }
 0x449   : > { %7176 = vmatprep.mubr.msk.f32.mxu1 %vm8070_vm0, %v8068_v8 }
 0x504   : > { %v8274_v18 = vpop.f32.mrf.mxu1 }
 0x506   : > { %v7168_v19 = vpop.f32.mrf.mxu1 }
 0x508   : > { %v834_v20 = vpop.f32.mrf.mxu1 }
 0x509   : > { %v835_v21 = vadd.f32 %v8259_v2, %v834_v20 }
 0x50a   : > { %v7173_v23 = vpop.f32.mrf.mxu1 }
 0x50b   : > { %v838_v24 = vsel %vm675_vm4, %v835_v21, -inf }
 0x50c   : > { %839 = vmax.xlane.f32.xlu1 %v838_v24 }
 0x51d   : > { %928 = vrot.lane.b32.xlu1 %v8235_v59, %s8072_s9 }
 0x521   : > { %926 = vrot.lane.b32.xlu1 %v8241_v62, %s8072_s9 }
 0x595   : > { %v840_v25 = vpop.xlane.xlu1 %839 }
 0x596   : > { %v841_v26 = vsub.f32 %v835_v21, %v840_v25 }
 0x598   : > { %v842_v27 = vmul.f32 1.442695, %v841_v26 }
 0x599   : > { %v929_v33 = vpop.permute.xlu1 %928 }
 0x59a   : > { %7821 = vpow2.f32 %v842_v27 }
 0x59d   : > { %v927_v35 = vpop.permute.xlu1 %926 }
 0x5a7   : > { %v7822_v28 = vpop.eup %7821 }
 0x5a8   : > { %v844_v29 = vsel %vm675_vm4, %v7822_v28, 0.0 }
 0x5a9   : > { %845 = vadd.xlane.f32.xlu0 %v844_v29 }
 0x5bf   : > { %850 = vrot.lane.b32.xlu0 %v8244_v1, %s8071_s5 }
 0x632   : > { %v846_v30 = vpop.xlane.xlu0 %845 }
 0x633   : > { %7823 = vrcp.f32 %v846_v30 }
 0x636   : > { %v851_v31 = vpop.permute.xlu0 %850 }
 0x637   : > { %7175 = vmatpush3.msra.mxu1 %v851_v31 }
 0x638   : > { %7179 = vmatprep.subr.mxu1 %v8068_v8 }
 0x640   : > { %v7824_v32 = vpop.eup %7823 }
 0x641   : > { %v848_v34 = vmul.f32 %v7824_v32, %v7822_v28 }
 0x643   : > { %7177 = vmatmul.mubr.msk.f32.vlgmr.msra.gmra.mxu1 %vm675_vm4, %v848_v34 }
 0x644   : > { %7180 = vmatpush3.xpose.msk.msra.mxu1 %vm598_vm3, %v929_v33  ;;  %7181 = vmatprep.mubr.msk.f32.mxu1 %vm8070_vm0, %v8068_v8 }
 0x645   : > { %7184 = vmatprep.subr.mxu1 %v8068_v8 }
 0x647   : > { %7182 = vmatmul.mubr.msk.f32.vlgmr.msra.gmra.mxu1 %vm598_vm3, %v927_v35 }
 0x648   : > { %7186 = vmatprep.mubr.msk.f32.mxu1 %vm8070_vm0, %v8068_v8 }
 0x703   : > { %v8294_v36 = vpop.f32.mrf.mxu1 }
 0x705   : > { %v7178_v37 = vpop.f32.mrf.mxu1 }
 0x707   : > { %v1000_v38 = vpop.f32.mrf.mxu1 }
 0x708   : > { %v1001_v39 = vadd.f32 %v8259_v2, %v1000_v38 }
 0x709   : > { %v7183_v40 = vpop.f32.mrf.mxu1 }
 0x70a   : > { %v1004_v41 = vsel %vm675_vm4, %v1001_v39, -inf }
 0x70b   : > { %1005 = vmax.xlane.f32.xlu1 %v1004_v41 }
 0x71c   : > { %1093 = vrot.lane.b32.xlu1 %v8235_v59, %s8073_s10 }
 0x720   : > { %1091 = vrot.lane.b32.xlu1 %v8241_v62, %s8073_s10 }
 0x724   : > { %1256 = vrot.lane.b32.xlu1 %v8241_v62, %s8074_s11 }
 0x728   : > { %1421 = vrot.lane.b32.xlu1 %v8241_v62, %s8075_s12 }
 0x72c   : > { %1586 = vrot.lane.b32.xlu1 %v8241_v62, %s8076_s13 }
 0x730   : > { %1751 = vrot.lane.b32.xlu1 %v8241_v62, %s8077_s14 }
 0x794   : > { %v1006_v42 = vpop.xlane.xlu1 %1005 }
 0x795   : > { %v1007_v43 = vsub.f32 %v1001_v39, %v1006_v42 }
 0x797   : > { %v1008_v44 = vmul.f32 1.442695, %v1007_v43 }
 0x798   : > { %v1094_v47 = vpop.permute.xlu1 %1093 }
 0x799   : > { %7825 = vpow2.f32 %v1008_v44 }
 0x79c   : > { %v1092_v49 = vpop.permute.xlu1 %1091 }
 0x7a0   : > { %v1257_v54 = vpop.permute.xlu1 %1256 }
 0x7a4   : > { %v1422_v56 = vpop.permute.xlu1 %1421 }
 0x7a6   : > { %v7826_v45 = vpop.eup %7825 }
 0x7a7   : > { %v1010_v46 = vsel %vm675_vm4, %v7826_v45, 0.0 }
 0x7a8   : > { %1011 = vadd.xlane.f32.xlu0 %v1010_v46  ;;  %v1587_v61 = vpop.permute.xlu1 %1586 }
 0x7ac   : > { %v1752_v63 = vpop.permute.xlu1 %1751 }
 0x7be   : > { %1015 = vrot.lane.b32.xlu0 %v8244_v1, %s8072_s9 }
 0x7c2   : > { %1258 = vrot.lane.b32.xlu0 %v8235_v59, %s8074_s11 }
 0x7c6   : > { %1423 = vrot.lane.b32.xlu0 %v8235_v59, %s8075_s12 }
 0x7ca   : > { %1588 = vrot.lane.b32.xlu0 %v8235_v59, %s8076_s13 }
 0x7ce   : > { %1753 = vrot.lane.b32.xlu0 %v8235_v59, %s8077_s14 }
 0x831   : > { %v1012_v52 = vpop.xlane.xlu0 %1011 }
 0x832   : > { %7827 = vrcp.f32 %v1012_v52 }
 0x835   : > { %v1016_v53 = vpop.permute.xlu0 %1015 }
 0x836   : > { %7185 = vmatpush3.msra.mxu1 %v1016_v53 }
 0x837   : > { %7189 = vmatprep.subr.mxu1 %v8068_v8 }
 0x839   : > { %v1259_v55 = vpop.permute.xlu0 %1258 }
 0x83a   : > { %7200 = vmatpush3.xpose.msk.msra.mxu0 %vm598_vm3, %v1259_v55 }
 0x83b   : > { %7209 = vmatprep.subr.mxu0 %v8068_v8 }
 0x83d   : > { %v1424_v57 = vpop.permute.xlu0 %1423  ;;  %7202 = vmatmul.mubr.msk.f32.vlgmr.msra.gmra.mxu0 %vm598_vm3, %v1257_v54 }
 0x83e   : > { %7210 = vmatpush3.xpose.msk.msra.mxu0 %vm598_vm3, %v1424_v57  ;;  %7211 = vmatprep.mubr.msk.f32.mxu0 %vm8070_vm0, %v8068_v8 }
 0x83f   : > { %v7828_v58 = vpop.eup %7827  ;;  %7219 = vmatprep.subr.mxu0 %v8068_v8 }
 0x840   : > { %v1014_v59 = vmul.f32 %v7828_v58, %v7826_v45 }
 0x841   : > { %v1589_v60 = vpop.permute.xlu0 %1588  ;;  %7212 = vmatmul.mubr.msk.f32.vlgmr.msra.gmra.mxu0 %vm598_vm3, %v1422_v56 }
 0x842   : > { %7187 = vmatmul.mubr.msk.f32.vlgmr.msra.gmra.mxu1 %vm675_vm4, %v1014_v59  ;;  %7220 = vmatpush3.xpose.msk.msra.mxu0 %vm598_vm3, %v1589_v60 }
 0x843   : > { %7190 = vmatpush3.xpose.msk.msra.mxu1 %vm598_vm3, %v1094_v47  ;;  %7221 = vmatprep.mubr.msk.f32.mxu0 %vm8070_vm0, %v8068_v8 }
 0x844   : > { %7191 = vmatprep.mubr.msk.f32.mxu1 %vm8070_vm0, %v8068_v8  ;;  %7229 = vmatprep.subr.mxu0 %v8068_v8 }
 0x845   : > { %v1754_v62 = vpop.permute.xlu0 %1753  ;;  %7222 = vmatmul.mubr.msk.f32.vlgmr.msra.gmra.mxu0 %vm598_vm3, %v1587_v61  ;;  %7194 = vmatprep.subr.mxu1 %v8068_v8 }
 0x846   : > { %7192 = vmatmul.mubr.msk.f32.vlgmr.msra.gmra.mxu1 %vm598_vm3, %v1092_v49  ;;  %7230 = vmatpush3.xpose.msk.msra.mxu0 %vm598_vm3, %v1754_v62 }
 0x847   : > { %7231 = vmatprep.mubr.msk.f32.mxu0 %vm8070_vm0, %v8068_v8  ;;  %7196 = vmatprep.mubr.msk.f32.mxu1 %vm8070_vm0, %v8068_v8 }
 0x848   : > { %7239 = vmatprep.subr.bf16.mxu0 %v8068_v8 }
 0x849   : > { %7232 = vmatmul.mubr.msk.f32.vlgmr.msra.gmra.mxu0 %vm598_vm3, %v1752_v63 }
 0x84a   : > { %7255 = vmatprep.mubr.msk.bf16.mxu0 %vm8070_vm0, %v8068_v8 }
 0x8fd   : > { %v1330_v0 = vpop.f32.mrf.mxu0 }
 0x8fe   : > { %v1331_v3 = vadd.f32 %v8259_v2, %v1330_v0 }
 0x8ff   : > { %v7203_v4 = vpop.f32.mrf.mxu0 }
 0x900   : > { %v1334_v5 = vsel %vm675_vm4, %v1331_v3, -inf }
 0x901   : > { %1335 = vmax.xlane.f32.xlu1 %v1334_v5  ;;  %v1495_v6 = vpop.f32.mrf.mxu0 }
 0x902   : > { %v1087_v7 = vpop.f32.mrf.mxu1  ;;  %v1496_v16 = vadd.f32 %v8259_v2, %v1495_v6 }
 0x903   : > { %v7213_v9 = vpop.f32.mrf.mxu0 }
 0x904   : > { %v7188_v10 = vpop.f32.mrf.mxu1  ;;  %v1499_v23 = vsel %vm675_vm4, %v1496_v16, -inf }
 0x905   : > { %v1660_v11 = vpop.f32.mrf.mxu0 }
 0x906   : > { %v1165_v12 = vpop.f32.mrf.mxu1  ;;  %v1661_v21 = vadd.f32 %v8259_v2, %v1660_v11 }
 0x907   : > { %v1166_v13 = vadd.f32 %v8259_v2, %v1165_v12  ;;  %v7223_v14 = vpop.f32.mrf.mxu0  ;;  %v7605_v12 = vld [vmem:[#allocation2 + $0x168] ss:$12 sps:$4 sm:$0xff]  }
 0x908   : > { %v7193_v15 = vpop.f32.mrf.mxu1  ;;  %v1664_v25 = vsel %vm675_vm4, %v1661_v21, -inf  ;;  %7240 = vmatpush3.bf16.msra.mxu0 %v7605_v12  ;;  %v7607_v14 = vld [vmem:[#allocation2 + $0x138] ss:$12 sps:$4 sm:$0xff]  }
 0x909   : > { %v1825_v17 = vpop.f32.mrf.mxu0  ;;  %v1169_v19 = vsel %vm675_vm4, %v1166_v13, -inf  ;;  %7241 = vmatprep.subr.bf16.mxu0 %v8068_v8  ;;  %v7608_v15 = vld [vmem:[#allocation2 + $0x120] ss:$12 sps:$4 sm:$0xff]   ;;  %v7636_v12 = vld [vmem:[#allocation2 + $0x184] ss:$12 sps:$4 sm:$0xff]  }
 0x90a   : > { %1170 = vmax.xlane.f32.xlu0 %v1169_v19  ;;  %v1826_v24 = vadd.f32 %v8259_v2, %v1825_v17  ;;  %v7610_v17 = vld [vmem:[#allocation2 + $0xf0] ss:$12 sps:$4 sm:$0xff]   ;;  %v7611_v19 = vld [vmem:[#allocation2 + $0xd8] ss:$12 sps:$4 sm:$0xff]  }
 0x90b   : > { %v7233_v20 = vpop.f32.mrf.mxu0 }
 0x90c   : > { %v1829_v26 = vsel %vm675_vm4, %v1826_v24, -inf }
 0x90e   : > { %1500 = vmax.xlane.f32.xlu0 %v1499_v23  ;;  %v7612_v23 = vld [vmem:[#allocation2 + $0xc0] ss:$12 sps:$4 sm:$0xff]  }
 0x912   : > { %1665 = vmax.xlane.f32.xlu0 %v1664_v25 }
 0x916   : > { %1830 = vmax.xlane.f32.xlu0 %v1829_v26 }
 0x98a   : > { %v1336_v27 = vpop.xlane.xlu1 %1335 }
 0x98b   : > { %v1337_v28 = vsub.f32 %v1331_v3, %v1336_v27 }
 0x98d   : > { %v1338_v29 = vmul.f32 1.442695, %v1337_v28 }
 0x98f   : > { %7829 = vpow2.f32 %v1338_v29 }
 0x993   : > { %v1171_v30 = vpop.xlane.xlu0 %1170 }
 0x994   : > { %v1172_v49 = vsub.f32 %v1166_v13, %v1171_v30  ;;  %v7606_v13 = vld [vmem:[#allocation2 + $0x150] ss:$12 sps:$4 sm:$0xff]  }
 0x995   : > { %7242 = vmatpush3.bf16.msra.mxu0 %v7606_v13  ;;  %v7634_v13 = vld [vmem:[#allocation2 + $0x180] ss:$12 sps:$4 sm:$0xff]  }
 0x996   : > { %v1173_v52 = vmul.f32 1.442695, %v1172_v49  ;;  %7243 = vmatprep.subr.bf16.mxu0 %v8068_v8 }
 0x997   : > { %v1501_v31 = vpop.xlane.xlu0 %1500 }
 0x998   : > { %v1502_v32 = vsub.f32 %v1496_v16, %v1501_v31  ;;  %v7609_v16 = vld [vmem:[#allocation2 + $0x108] ss:$12 sps:$4 sm:$0xff]  }
 0x999   : > { %7244 = vmatpush3.bf16.msra.mxu0 %v7607_v14  ;;  %v7637_v14 = vld [vmem:[#allocation2 + $0x3a8] ss:$12 sps:$4 sm:$0xff]  }
 0x99a   : > { %v1503_v33 = vmul.f32 1.442695, %v1502_v32  ;;  %7245 = vmatprep.subr.bf16.mxu0 %v8068_v8 }
 0x99b   : > { %v1666_v34 = vpop.xlane.xlu0 %1665 }
 0x99c   : > { %v7830_v35 = vpop.eup %7829  ;;  %7831 = vpow2.f32 %v1503_v33  ;;  %v1667_v37 = vsub.f32 %v1661_v21, %v1666_v34 }
 0x99d   : > { %v1340_v2 = vsel %vm675_vm4, %v7830_v35, 0.0  ;;  %7246 = vmatpush3.bf16.msra.mxu0 %v7608_v15  ;;  %v7638_v15 = vld [vmem:[#allocation2 + $0x2e8] ss:$12 sps:$4 sm:$0xff]  }
 0x99e   : > { %v1668_v38 = vmul.f32 1.442695, %v1667_v37  ;;  %1341 = vadd.xlane.f32.xlu0 %v1340_v2  ;;  %7247 = vmatprep.subr.bf16.mxu0 %v8068_v8 }
 0x99f   : > { %v1831_v39 = vpop.xlane.xlu0 %1830 }
 0x9a0   : > { %7833 = vpow2.f32 %v1668_v38  ;;  %v1832_v40 = vsub.f32 %v1826_v24, %v1831_v39 }
 0x9a1   : > { %7248 = vmatpush3.bf16.msra.mxu0 %v7609_v16  ;;  %v7639_v16 = vld [vmem:[#allocation2 + $0x390] ss:$12 sps:$4 sm:$0xff]  }
 0x9a2   : > { %v1833_v41 = vmul.f32 1.442695, %v1832_v40  ;;  %7249 = vmatprep.subr.bf16.mxu0 %v8068_v8 }
 0x9a4   : > { %7835 = vpow2.f32 %v1833_v41 }
 0x9a5   : > { %7837 = vpow2.f32 %v1173_v52  ;;  %7250 = vmatpush3.bf16.msra.mxu0 %v7610_v17  ;;  %v7640_v17 = vld [vmem:[#allocation2 + $0x2d0] ss:$12 sps:$4 sm:$0xff]  }
 0x9a6   : > { %7251 = vmatprep.subr.bf16.mxu0 %v8068_v8 }
 0x9a9   : > { %v7832_v42 = vpop.eup %7831  ;;  %7252 = vmatpush3.bf16.msra.mxu0 %v7611_v19  ;;  %v7641_v19 = vld [vmem:[#allocation2 + $0x378] ss:$12 sps:$4 sm:$0xff]  }
 0x9aa   : > { %v1505_v43 = vsel %vm675_vm4, %v7832_v42, 0.0  ;;  %7253 = vmatprep.subr.bf16.mxu0 %v8068_v8 }
 0x9ab   : > { %1506 = vadd.xlane.f32.xlu1 %v1505_v43 }
 0x9ad   : > { %v7834_v44 = vpop.eup %7833  ;;  %7254 = vmatpush3.bf16.msra.mxu0 %v7612_v23  ;;  %v7644_v23 = vld [vmem:[#allocation2 + $0x2a0] ss:$12 sps:$4 sm:$0xff]  }
 0x9ae   : > { %v1670_v45 = vsel %vm675_vm4, %v7834_v44, 0.0  ;;  %6973 = vmatprep.subr.bf16.mxu0 %v7637_v14  ;;  %v7656_v14 = vld [vmem:[#allocation2 + $0x470] ss:$12 sps:$4 sm:$0xff]  }
 0x9af   : > { %1671 = vadd.xlane.f32.xlu0 %v1670_v45 }
 0x9b1   : > { %v7836_v46 = vpop.eup %7835 }
 0x9b2   : > { %v1835_v47 = vsel %vm675_vm4, %v7836_v46, 0.0  ;;  %v7838_v53 = vpop.eup %7837 }
 0x9b3   : > { %1836 = vadd.xlane.f32.xlu1 %v1835_v47  ;;  %v1175_v54 = vsel %vm675_vm4, %v7838_v53, 0.0 }
 0x9c4   : > { %1345 = vrot.lane.b32.xlu1 %v8244_v1, %s8074_s11 }
 0x9c5   : > { %1180 = vrot.lane.b32.xlu0 %v8244_v1, %s8073_s10 }
 0x9c9   : > { %1840 = vrot.lane.b32.xlu0 %v8244_v1, %s8077_s14 }
 0x9cd   : > { %1921 = vrot.lane.b32.xlu0 %v1087_v7, %s8076_s13 }
 0x9e8   : > { %1176 = vadd.xlane.f32.xlu1 %v1175_v54 }
 0x9f9   : > { %1510 = vrot.lane.b32.xlu1 %v8244_v1, %s8075_s12 }
 0x9fd   : > { %1675 = vrot.lane.b32.xlu1 %v8244_v1, %s8076_s13 }
 0xa01   : > { %1917 = vrot.lane.b32.xlu1 %v8294_v36, %s8077_s14 }
 0xa27   : > { %v1342_v55 = vpop.xlane.xlu0 %1341 }
 0xa34   : > { %v1507_v58 = vpop.xlane.xlu1 %1506 }
 0xa38   : > { %v1672_v56 = vpop.xlane.xlu0 %1671 }
 0xa3c   : > { %v1181_v57 = vpop.permute.xlu0 %1180  ;;  %v1837_v59 = vpop.xlane.xlu1 %1836 }
 0xa3d   : > { %7195 = vmatpush3.msra.mxu1 %v1181_v57 }
 0xa3e   : > { %7204 = vmatprep.subr.mxu1 %v8068_v8 }
 0xa40   : > { %v1346_v60 = vpop.permute.xlu1 %1345  ;;  %v1841_v10 = vpop.permute.xlu0 %1840 }
 0xa44   : > { %v1922_v33 = vpop.permute.xlu0 %1921 }
 0xa71   : > { %v1177_v61 = vpop.xlane.xlu1 %1176 }
 0xa72   : > { %7839 = vrcp.f32 %v1177_v61  ;;  %v7615_v61 = vld [vmem:[#allocation2 + $0x22c] ss:$12 sps:$4 sm:$0xff]  }
 0xa73   : > { %7841 = vrcp.f32 %v1342_v55 }
 0xa74   : > { %7843 = vrcp.f32 %v1507_v58 }
 0xa75   : > { %7845 = vrcp.f32 %v1672_v56  ;;  %v1511_v36 = vpop.permute.xlu1 %1510 }
 0xa76   : > { %7847 = vrcp.f32 %v1837_v59 }
 0xa79   : > { %v1676_v6 = vpop.permute.xlu1 %1675 }
 0xa7d   : > { %v1918_v32 = vpop.permute.xlu1 %1917 }
 0xa7f   : > { %v7840_v62 = vpop.eup %7839 }
 0xa80   : > { %v1179_v1 = vmul.f32 %v7840_v62, %v7838_v53  ;;  %v7842_v63 = vpop.eup %7841  ;;  %v7937_v53 = vld [vmem:[%s8201_s30] sm:$0xff]  ;;  %v7613_v62 = vld [vmem:[#allocation2 + $0x228] ss:$12 sps:$4 sm:$0xff]  }
 0xa81   : > { %v1344_v0 = vmul.f32 %v7842_v63, %v7830_v35  ;;  %v7844_v3 = vpop.eup %7843  ;;  %v1944_v35 = vsel %vm598_vm3, %v8274_v18, %v1918_v32  ;;  %v7616_v63 = vld [vmem:[#allocation2 + $0x210] ss:$12 sps:$4 sm:$0xff]  }
 0xa82   : > { %7197 = vmatmul.mubr.msk.f32.vlgmr.msra.gmra.mxu1 %vm675_vm4, %v1179_v1  ;;  %v1509_v4 = vmul.f32 %v7844_v3, %v7832_v42  ;;  %v7846_v5 = vpop.eup %7845  ;;  %v1946_v2 = vsel %vm1945_vm5, %v1944_v35, %v1922_v33  ;;  %v7618_v1 = vld [vmem:[#allocation2 + $0x214] ss:$12 sps:$4 sm:$0xff]  }
 0xa83   : > { %7205 = vmatpush3.msra.mxu1 %v1346_v60  ;;  %7206 = vmatprep.mubr.msk.f32.mxu1 %vm8070_vm0, %v8068_v8  ;;  %v1674_v7 = vmul.f32 %v7846_v5, %v7834_v44  ;;  %v7848_v9 = vpop.eup %7847  ;;  %v7622_v3 = vld [vmem:[#allocation2 + $0x1e0] ss:$12 sps:$4 sm:$0xff]  }
 0xa84   : > { %7214 = vmatprep.subr.mxu1 %v8068_v8  ;;  %v1839_v11 = vmul.f32 %v7848_v9, %v7836_v46  ;;  %v338_v46 = vld [vmem:[#allocation5 + $0x11] ss:$0 sm:$0xff]  ;;  %v7627_v5 = vld [vmem:[#allocation2 + $0x1cc] ss:$12 sps:$4 sm:$0xff]  }
 0xa85   : > { %v7628_v9 = vld [vmem:[#allocation2 + $0x1b0] ss:$12 sps:$4 sm:$0xff]  }
 0xa86   : > { %7207 = vmatmul.mubr.msk.f32.vlgmr.msra.gmra.mxu1 %vm675_vm4, %v1344_v0  ;;  %v7619_v0 = vld [vmem:[#allocation2 + $0x1f8] ss:$12 sps:$4 sm:$0xff]  }
 0xa87   : > { %7215 = vmatpush3.msra.mxu1 %v1511_v36  ;;  %7216 = vmatprep.mubr.msk.f32.mxu1 %vm8070_vm0, %v8068_v8  ;;  %v7621_v36 = vld [vmem:[#allocation2 + $0x1fc] ss:$12 sps:$4 sm:$0xff]  }
 0xa88   : > { %7224 = vmatprep.subr.mxu1 %v8068_v8 }
 0xa8a   : > { %7217 = vmatmul.mubr.msk.f32.vlgmr.msra.gmra.mxu1 %vm675_vm4, %v1509_v4  ;;  %v7624_v4 = vld [vmem:[#allocation2 + $0x1e4] ss:$12 sps:$4 sm:$0xff]  }
 0xa8b   : > { %7225 = vmatpush3.msra.mxu1 %v1676_v6  ;;  %7226 = vmatprep.mubr.msk.f32.mxu1 %vm8070_vm0, %v8068_v8  ;;  %v7625_v6 = vld [vmem:[#allocation2 + $0x1c8] ss:$12 sps:$4 sm:$0xff]  }
 0xa8c   : > { %7234 = vmatprep.subr.mxu1 %v8068_v8 }
 0xa8e   : > { %7227 = vmatmul.mubr.msk.f32.vlgmr.msra.gmra.mxu1 %vm675_vm4, %v1674_v7  ;;  %v7630_v7 = vld [vmem:[#allocation2 + $0x1b4] ss:$12 sps:$4 sm:$0xff]  }
 0xa8f   : > { %7235 = vmatpush3.msra.mxu1 %v1841_v10  ;;  %7236 = vmatprep.mubr.msk.f32.mxu1 %vm8070_vm0, %v8068_v8  ;;  %v7633_v10 = vld [vmem:[#allocation2 + $0x19c] ss:$12 sps:$4 sm:$0xff]  }
 0xa90   : > { %2159 = vmatprep.subr.bf16.mxu1 %v7615_v61 }
 0xa92   : > { %7237 = vmatmul.mubr.msk.f32.vlgmr.msra.gmra.mxu1 %vm675_vm4, %v1839_v11  ;;  %v7631_v11 = vld [vmem:[#allocation2 + $0x198] ss:$12 sps:$4 sm:$0xff]  }
 0xa93   : > { %2191 = vmatprep.mubr.bf16.mxu1 %v8069_v22  ;;  %2160 = vmatpush1.bf16.msra.mxu1 %v7613_v62 }
 0xa94   : > { %2161 = vmatprep.subr.bf16.mxu1 %v7618_v1 }
 0xa97   : > { %2162 = vmatpush1.bf16.msra.mxu1 %v7616_v63  ;;  %v339_v63 = vld [vmem:[#allocation5 + $0x2] ss:$0 sm:$0xff] }
 0xa98   : > { %2163 = vmatprep.subr.bf16.mxu1 %v7621_v36 }
 0xa9b   : > { %2164 = vmatpush1.bf16.msra.mxu1 %v7619_v0 }
 0xa9c   : > { %2165 = vmatprep.subr.bf16.mxu1 %v7624_v4 }
 0xa9f   : > { %2166 = vmatpush1.bf16.msra.mxu1 %v7622_v3 }
 0xaa0   : > { %2167 = vmatprep.subr.bf16.mxu1 %v7627_v5 }
 0xaa3   : > { %2168 = vmatpush1.bf16.msra.mxu1 %v7625_v6 }
 0xaa4   : > { %2169 = vmatprep.subr.bf16.mxu1 %v7630_v7 }
 0xaa7   : > { %2170 = vmatpush1.bf16.msra.mxu1 %v7628_v9 }
 0xaa8   : > { %2171 = vmatprep.subr.bf16.mxu1 %v7633_v10 }
 0xaab   : > { %2172 = vmatpush1.bf16.msra.mxu1 %v7631_v11 }
 0xaac   : > { %2173 = vmatprep.subr.bf16.mxu1 %v7636_v12  ;;  %v7655_v12 = vld [vmem:[#allocation2 + $0x46c] ss:$12 sps:$4 sm:$0xff]  }
 0xaaf   : > { %2174 = vmatpush1.bf16.msra.mxu1 %v7634_v13  ;;  %v7653_v13 = vld [vmem:[#allocation2 + $0x468] ss:$12 sps:$4 sm:$0xff]  }
 0xab0   : > { %2613 = vmatprep.subr.bf16.mxu1 %v7655_v12 }
 0xb42   : > { %v1252_v20 = vpop.f32.mrf.mxu1 }
 0xb43   : > { %1925 = vrot.lane.b32.xlu1 %v1252_v20, %s8075_s12  ;;  %v7642_v20 = vld [vmem:[#allocation2 + $0x2b8] ss:$12 sps:$4 sm:$0xff]  }
 0xb44   : > { %v7198_v21 = vpop.f32.mrf.mxu1 }
 0xb45   : > { %v7643_v21 = vld [vmem:[#allocation2 + $0x360] ss:$12 sps:$4 sm:$0xff]  }
 0xb46   : > { %v1417_v24 = vpop.f32.mrf.mxu1 }
 0xb47   : > { %1929 = vrot.lane.b32.xlu0 %v1417_v24, %s8074_s11  ;;  %v7645_v24 = vld [vmem:[#allocation2 + $0x348] ss:$12 sps:$4 sm:$0xff]  }
 0xb48   : > { %v7208_v25 = vpop.f32.mrf.mxu1 }
 0xb49   : > { %v7646_v25 = vld [vmem:[#allocation2 + $0x288] ss:$12 sps:$4 sm:$0xff]  }
 0xb4a   : > { %v1582_v26 = vpop.f32.mrf.mxu1 }
 0xb4b   : > { %1933 = vrot.lane.b32.xlu1 %v1582_v26, %s8073_s10  ;;  %v7647_v26 = vld [vmem:[#allocation2 + $0x330] ss:$12 sps:$4 sm:$0xff]  }
 0xb4c   : > { %v7218_v27 = vpop.f32.mrf.mxu1 }
 0xb4d   : > { %v7648_v27 = vld [vmem:[#allocation2 + $0x270] ss:$12 sps:$4 sm:$0xff]  }
 0xb4e   : > { %v1747_v28 = vpop.f32.mrf.mxu1 }
 0xb4f   : > { %1937 = vrot.lane.b32.xlu0 %v1747_v28, %s8072_s9 }
 0xb50   : > { %v7228_v29 = vpop.f32.mrf.mxu1 }
 0xb52   : > { %v1912_v30 = vpop.f32.mrf.mxu1 }
 0xb53   : > { %1941 = vrot.lane.b32.xlu1 %v1912_v30, %s8071_s5 }
 0xb54   : > { %v7238_v31 = vpop.f32.mrf.mxu1 }
 0xbb5   : > { %v1926_v34 = vpop.permute.xlu1 %1925 }
 0xbb6   : > { %v1948_v39 = vsel %vm1947_vm6, %v1946_v2, %v1926_v34  ;;  %v342_v2 = vld [vmem:[#allocation5 + $0x3] ss:$0 sm:$0xff] }
 0xbb9   : > { %v1930_v37 = vpop.permute.xlu0 %1929 }
 0xbba   : > { %v1950_v41 = vsel %vm1949_vm7, %v1948_v39, %v1930_v37  ;;  %v343_v39 = vld [vmem:[#allocation5 + $0xb] ss:$0 sm:$0xff] }
 0xbbd   : > { %v1934_v38 = vpop.permute.xlu1 %1933 }
 0xbbe   : > { %v1952_v42 = vsel %vm1951_vm8, %v1950_v41, %v1934_v38 }
 0xbc1   : > { %v1938_v40 = vpop.permute.xlu0 %1937 }
 0xbc2   : > { %v1954_v18 = vsel %vm1953_vm9, %v1952_v42, %v1938_v40 }
 0xbc5   : > { %v1942_v43 = vpop.permute.xlu1 %1941 }
 0xbc6   : > { %v1956_v44 = vsel %vm1955_vm10, %v1954_v18, %v1942_v43  ;;  %v7649_v18 = vld [vmem:[#allocation2 + $0x318] ss:$12 sps:$4 sm:$0xff]  }
 0xbc7   : > { %v1957_v45 = vpack.c.bf16 %v1956_v44, %v1956_v44  ;;  %v7650_v43 = vld [vmem:[#allocation2 + $0x258] ss:$12 sps:$4 sm:$0xff]   ;;  %v7651_v44 = vld [vmem:[#allocation2 + $0x300] ss:$12 sps:$4 sm:$0xff]  }
 0xbc9   : > { %7256 = vmatmul.mubr.bf16.vlgmr.msra.gmra.mxu0 %v1957_v45  ;;  %v7652_v45 = vld [vmem:[#allocation2 + $0x240] ss:$12 sps:$4 sm:$0xff]  }
 0xbca   : > { %6974 = vmatpush3.bf16.msra.mxu0 %v7638_v15  ;;  %v7659_v15 = vld [vmem:[#allocation2 + $0x454] ss:$12 sps:$4 sm:$0xff]  }
 0xbcb   : > { %6975 = vmatprep.subr.bf16.mxu0 %v7639_v16  ;;  %v7660_v16 = vld [vmem:[#allocation2 + $0x458] ss:$12 sps:$4 sm:$0xff]  }
 0xbce   : > { %6976 = vmatpush3.bf16.msra.mxu0 %v7640_v17  ;;  %v7663_v17 = vld [vmem:[#allocation2 + $0x43c] ss:$12 sps:$4 sm:$0xff]  }
 0xbcf   : > { %6977 = vmatprep.subr.bf16.mxu0 %v7641_v19  ;;  %v7661_v19 = vld [vmem:[#allocation2 + $0x438] ss:$12 sps:$4 sm:$0xff]  }
 0xbd2   : > { %6978 = vmatpush3.bf16.msra.mxu0 %v7642_v20  ;;  %v7664_v20 = vld [vmem:[#allocation2 + $0x440] ss:$12 sps:$4 sm:$0xff]  }
 0xbd3   : > { %6979 = vmatprep.subr.bf16.mxu0 %v7643_v21  ;;  %v7665_v21 = vld [vmem:[#allocation2 + $0x420] ss:$12 sps:$4 sm:$0xff]  }
 0xbd6   : > { %6980 = vmatpush3.bf16.msra.mxu0 %v7644_v23  ;;  %v7667_v23 = vld [vmem:[#allocation2 + $0x424] ss:$12 sps:$4 sm:$0xff]  }
 0xbd7   : > { %6981 = vmatprep.subr.bf16.mxu0 %v7645_v24  ;;  %v7668_v24 = vld [vmem:[#allocation2 + $0x428] ss:$12 sps:$4 sm:$0xff]  }
 0xbda   : > { %6982 = vmatpush3.bf16.msra.mxu0 %v7646_v25  ;;  %v7671_v25 = vld [vmem:[#allocation2 + $0x40c] ss:$12 sps:$4 sm:$0xff]  }
 0xbdb   : > { %6983 = vmatprep.subr.bf16.mxu0 %v7647_v26  ;;  %v7669_v26 = vld [vmem:[#allocation2 + $0x408] ss:$12 sps:$4 sm:$0xff]  }
 0xbde   : > { %6984 = vmatpush3.bf16.msra.mxu0 %v7648_v27  ;;  %v7672_v27 = vld [vmem:[#allocation2 + $0x410] ss:$12 sps:$4 sm:$0xff]  }
 0xbdf   : > { %6985 = vmatprep.subr.bf16.mxu0 %v7649_v18 }
 0xbe2   : > { %6986 = vmatpush3.bf16.msra.mxu0 %v7650_v43 }
 0xbe3   : > { %6987 = vmatprep.subr.bf16.mxu0 %v7651_v44 }
 0xbe6   : > { %6988 = vmatpush3.bf16.msra.mxu0 %v7652_v45  ;;  %v2444_v45 = vld [vmem:[#allocation5 + $0xe] ss:$0 sm:$0xff] }
 0xbe7   : > { %7259 = vmatprep.subr.bf16.mxu0 %v8068_v8 }
 0xc89   : > { %v2040_v47 = vpop.f32.mrf.mxu0 }
 0xc8a   : > { %v2041_v49 = vadd.f32 %v2040_v47, %v338_v46  ;;  %v337_v46 = vld [vmem:[#allocation5 + $0x1] ss:$8 sm:$0x3] }
 0xc8b   : > { %v7257_v52 = vpop.f32.mrf.mxu0  ;;  %v2072_v47 = vrot.slane %v337_v46, %v8228_v50 }
 0xc8c   : > { %v8417_v54 = vadd.f32 %v7937_v53, %v2041_v49  ;;  %v2076_v49 = vrot.slane %v337_v46, %v8226_v48 }
 0xc8d   : > { %v2043_v55 = vpop.f32.mrf.mxu0 }
 0xc8e   : > { %2047 = vadd.xlane.f32.xlu0 %v8417_v54 }
 0xc8f   : > { %v7258_v56 = vpop.f32.mrf.mxu0 }
 0xd17   : > { %v2048_v57 = vpop.xlane.xlu0 %2047 }
 0xd18   : > { %v2049_v58 = vmul.f32 0.0078125, %v2048_v57 }
 0xd1a   : > { %v8421_v59 = vsub.f32 %v8417_v54, %v2049_v58 }
 0xd1c   : > { %v2051_v60 = vmul.f32 %v8421_v59, %v8421_v59 }
 0xd1e   : > { %2052 = vadd.xlane.f32.xlu1 %v2051_v60 }
 0xda7   : > { %v2053_v28 = vpop.xlane.xlu1 %2052 }
 0xda8   : > { %v2054_v29 = vmul.f32 0.007874016, %v2053_v28  ;;  %v7675_v28 = vld [vmem:[#allocation2 + $0x3f4] ss:$12 sps:$4 sm:$0xff]  }
 0xdaa   : > { %7849 = vrsqrt.f32 %v2054_v29  ;;  %vm2057_vm11 = vcmp.eq.f32.partialorder %v2054_v29, inf  ;;  %v2060_v32 = vand.u32 2147483648, %v2054_v29  ;;  %vm2059_vm12 = vcmp.eq.f32.partialorder %v2054_v29, 0.0 }
 0xdb7   : > { %v7850_v30 = vpop.eup %7849 }
 0xdb8   : > { %v2056_v31 = vmul.f32 %v7850_v30, %v2054_v29  ;;  %v7676_v30 = vld [vmem:[#allocation2 + $0x3f8] ss:$12 sps:$4 sm:$0xff]  }
 0xdba   : > { %v2058_v33 = vsel %vm2057_vm11, %v2054_v29, %v2056_v31  ;;  %v7673_v29 = vld [vmem:[#allocation2 + $0x3f0] ss:$12 sps:$4 sm:$0xff]  }
 0xdbb   : > { %v2061_v34 = vsel %vm2059_vm12, %v2060_v32, %v2058_v33  ;;  %v7679_v31 = vld [vmem:[#allocation2 + $0x3dc] ss:$12 sps:$4 sm:$0xff]   ;;  %v7677_v32 = vld [vmem:[#allocation2 + $0x3d8] ss:$12 sps:$4 sm:$0xff]   ;;  %v7680_v33 = vld [vmem:[#allocation2 + $0x3e0] ss:$12 sps:$4 sm:$0xff]  }
 0xdbc   : > { %v2062_v35 = vadd.f32 1e-06, %v2061_v34  ;;  %v7683_v34 = vld [vmem:[#allocation2 + $0x3c4] ss:$12 sps:$4 sm:$0xff]  }
 0xdbe   : > { %7851 = vrcp.f32 %v2062_v35  ;;  %v7681_v35 = vld [vmem:[#allocation2 + $0x3c0] ss:$12 sps:$4 sm:$0xff]  }
 0xdcb   : > { %v7852_v37 = vpop.eup %7851 }
 0xdcc   : > { %v2064_v38 = vmul.f32 %v7852_v37, %v8421_v59  ;;  %v7684_v37 = vld [vmem:[#allocation2 + $0x3c8] ss:$12 sps:$4 sm:$0xff]  }
 0xdce   : > { %v2065_v40 = vmul.f32 %v2064_v38, %v342_v2 }
 0xdd0   : > { %v2066_v41 = vadd.f32 %v2065_v40, %v343_v39 }
 0xdd2   : > { %v2067_v42 = vpack.c.bf16 %v2066_v41, %v2066_v41 }
 0xdd4   : > { %2192 = vmatmul.mubr.bf16.vlgmr.msra.gmra.mxu1 %v2067_v42 }
 0xdd5   : > { %2645 = vmatprep.mubr.bf16.mxu1 %v8069_v22  ;;  %2614 = vmatpush1.bf16.msra.mxu1 %v7653_v13 }
 0xdd6   : > { %2615 = vmatprep.subr.bf16.mxu1 %v7659_v15 }
 0xe94   : > { %v2193_v52 = vpop.f32.mrf.mxu1 }
 0xe95   : > { %v2194_v53 = vadd.f32 %v2193_v52, %v2072_v47  ;;  %v2445_v47 = vld [vmem:[#allocation5 + $0x16] ss:$0 sm:$0xff] }
 0xe96   : > { %v2195_v55 = vpop.f32.mrf.mxu1 }
 0xe97   : > { %v2196_v56 = vadd.f32 %v2195_v55, %v2076_v49  ;;  %v2200_v57 = vmax.f32 %v2194_v53, 0.0  ;;  %v2439_v55 = vld [vmem:[#allocation5 + $0x4] ss:$8 sm:$0x7] }
 0xe98   : > { %v2197_v58 = vpop.f32.mrf.mxu1 }
 0xe99   : > { %v2201_v59 = vmax.f32 %v2196_v56, 0.0  ;;  %v2202_v62 = vpack.c.bf16 %v2200_v57, %v2200_v57  ;;  %v2477_v56 = vrot.slane %v2439_v55, %v8226_v48 }
 0xe9a   : > { %v2198_v60 = vpop.f32.mrf.mxu1 }
 0xe9b   : > { %v2203_v61 = vpack.c.bf16 %v2201_v59, %v2201_v59  ;;  %v2473_v59 = vrot.slane %v2439_v55, %v8228_v50 }
 0xe9d   : > { %2332 = vmatprep.mubr.bf16.mxu0 %v2203_v61 }
 0xe9e   : > { %2333 = vmatmul.mubr.bf16.vlgmr.msra.gmra.mxu0 %v2202_v62  ;;  %v2481_v62 = vrot.slane %v2439_v55, %v8230_v51 }
 0xe9f   : > { %7275 = vmatprep.mubr.msk.bf16.mxu0 %vm8070_vm0, %v8068_v8  ;;  %7260 = vmatpush3.bf16.msra.mxu0 %v7656_v14 }
 0xea0   : > { %7261 = vmatprep.subr.bf16.mxu0 %v8068_v8 }
 0xea3   : > { %7262 = vmatpush3.bf16.msra.mxu0 %v7660_v16 }
 0xea4   : > { %7263 = vmatprep.subr.bf16.mxu0 %v8068_v8 }
 0xea7   : > { %7264 = vmatpush3.bf16.msra.mxu0 %v7664_v20 }
 0xea8   : > { %7265 = vmatprep.subr.bf16.mxu0 %v8068_v8 }
 0xeab   : > { %7266 = vmatpush3.bf16.msra.mxu0 %v7668_v24 }
 0xeac   : > { %7267 = vmatprep.subr.bf16.mxu0 %v8068_v8 }
 0xeaf   : > { %7268 = vmatpush3.bf16.msra.mxu0 %v7672_v27 }
 0xeb0   : > { %7269 = vmatprep.subr.bf16.mxu0 %v8068_v8 }
 0xeb3   : > { %7270 = vmatpush3.bf16.msra.mxu0 %v7676_v30 }
 0xeb4   : > { %7271 = vmatprep.subr.bf16.mxu0 %v8068_v8 }
 0xeb7   : > { %7272 = vmatpush3.bf16.msra.mxu0 %v7680_v33 }
 0xeb8   : > { %7273 = vmatprep.subr.bf16.mxu0 %v8068_v8 }
 0xebb   : > { %7274 = vmatpush3.bf16.msra.mxu0 %v7684_v37 }
 0xebc   : > { %7319 = vmatprep.subr.mxu0 %v8068_v8 }
 0xf5e   : > { %v6989_v1 = vpop.f32.mrf.mxu0 }
 0xf60   : > { %v6990_v36 = vpop.f32.mrf.mxu0 }
 0xf61   : > { %v6991_v0 = vadd.f32 %v6990_v36, %v6989_v1 }
 0xf62   : > { %v6992_v3 = vpop.f32.mrf.mxu0 }
 0xf63   : > { %v2335_v4 = vadd.f32 %v6991_v0, %v339_v63 }
 0xf64   : > { %v6993_v5 = vpop.f32.mrf.mxu0 }
 0xf65   : > { %v8433_v6 = vadd.f32 %v2335_v4, %v8417_v54  ;;  %v7657_v54 = vld [vmem:[#allocation2 + $0x450] ss:$12 sps:$4 sm:$0xff]  }
 0xf66   : > { %2616 = vmatpush1.bf16.msra.mxu1 %v7657_v54 }
 0xf67   : > { %2448 = vadd.xlane.f32.xlu0 %v8433_v6  ;;  %2617 = vmatprep.subr.bf16.mxu1 %v7663_v17 }
 0xf6a   : > { %2618 = vmatpush1.bf16.msra.mxu1 %v7661_v19 }
 0xf6b   : > { %2619 = vmatprep.subr.bf16.mxu1 %v7667_v23 }
 0xf6e   : > { %2620 = vmatpush1.bf16.msra.mxu1 %v7665_v21 }
 0xf6f   : > { %2621 = vmatprep.subr.bf16.mxu1 %v7671_v25 }
 0xf72   : > { %2622 = vmatpush1.bf16.msra.mxu1 %v7669_v26 }
 0xf73   : > { %2623 = vmatprep.subr.bf16.mxu1 %v7675_v28 }
 0xf76   : > { %2624 = vmatpush1.bf16.msra.mxu1 %v7673_v29 }
 0xf77   : > { %2625 = vmatprep.subr.bf16.mxu1 %v7679_v31 }
 0xf7a   : > { %2626 = vmatpush1.bf16.msra.mxu1 %v7677_v32 }
 0xf7b   : > { %2627 = vmatprep.subr.bf16.mxu1 %v7683_v34 }
 0xf7e   : > { %2628 = vmatpush1.bf16.msra.mxu1 %v7681_v35 }
 0xf7f   : > { %7279 = vmatprep.subr.mxu1 %v8068_v8 }
 0xff0   : > { %v2449_v7 = vpop.xlane.xlu0 %2448 }
 0xff1   : > { %v2450_v9 = vmul.f32 0.0078125, %v2449_v7 }
 0xff3   : > { %v8437_v10 = vsub.f32 %v8433_v6, %v2450_v9  ;;  %v8474_v9 = vld [vmem:[%s8256_s8] ss:$0 sm:$0xff] }
 0xff5   : > { %v2452_v11 = vmul.f32 %v8437_v10, %v8437_v10 }
 0xff7   : > { %2453 = vadd.xlane.f32.xlu0 %v2452_v11 }
0x1080   : > { %v2454_v2 = vpop.xlane.xlu0 %2453 }
0x1081   : > { %v2455_v38 = vmul.f32 0.007874016, %v2454_v2 }
0x1083   : > { %7853 = vrsqrt.f32 %v2455_v38  ;;  %vm2458_vm13 = vcmp.eq.f32.partialorder %v2455_v38, inf  ;;  %v2461_v41 = vand.u32 2147483648, %v2455_v38  ;;  %vm2460_vm14 = vcmp.eq.f32.partialorder %v2455_v38, 0.0 }
0x1090   : > { %v7854_v39 = vpop.eup %7853 }
0x1091   : > { %v2457_v40 = vmul.f32 %v7854_v39, %v2455_v38 }
0x1093   : > { %v2459_v42 = vsel %vm2458_vm13, %v2455_v38, %v2457_v40 }
0x1094   : > { %v2462_v18 = vsel %vm2460_vm14, %v2461_v41, %v2459_v42 }
0x1095   : > { %v2463_v43 = vadd.f32 1e-06, %v2462_v18 }
0x1097   : > { %7855 = vrcp.f32 %v2463_v43 }
0x10a4   : > { %v7856_v44 = vpop.eup %7855 }
0x10a5   : > { %v2465_v46 = vmul.f32 %v7856_v44, %v8437_v10 }
0x10a7   : > { %v2466_v49 = vmul.f32 %v2465_v46, %v2444_v45 }
0x10a9   : > { %v2467_v52 = vadd.f32 %v2466_v49, %v2445_v47 }
0x10ab   : > { %v2468_v53 = vpack.c.bf16 %v2467_v52, %v2467_v52 }
0x10ad   : > { %2646 = vmatmul.mubr.bf16.vlgmr.msra.gmra.mxu1 %v2468_v53  ;;  %7276 = vmatmul.mubr.bf16.vlgmr.msra.gmra.mxu0 %v2468_v53 }
0x10ae   : > { %7281 = vmatprep.mubr.msk.f32.mxu1 %vm8070_vm0, %v8068_v8  ;;  %7321 = vmatprep.mubr.msk.f32.mxu0 %vm8070_vm0, %v8068_v8 }
0x116d   : > { %v2647_v57 = vpop.f32.mrf.mxu1  ;;  %v2688_v58 = vpop.f32.mrf.mxu0 }
0x116e   : > { %v8462_v0 = vadd.f32 %v2647_v57, %v2473_v59  ;;  %v8465_v5 = vadd.f32 %v2688_v58, %v2481_v62 }
0x116f   : > { %v2649_v60 = vpop.f32.mrf.mxu1  ;;  %v7277_v61 = vpop.f32.mrf.mxu0 }
0x1170   : > { %v8458_v1 = vadd.f32 %v2649_v60, %v2477_v56 }
0x1171   : > { %v2651_v63 = vpop.f32.mrf.mxu1  ;;  %v2691_v36 = vpop.f32.mrf.mxu0 }
0x1172   : > { %7280 = vmatpush3.xpose.msk.msra.mxu1 %vm598_vm3, %v8458_v1 }
0x1173   : > { %v2652_v3 = vpop.f32.mrf.mxu1  ;;  %v7278_v4 = vpop.f32.mrf.mxu0  ;;  %7284 = vmatprep.subr.mxu1 %v8068_v8 }
0x1175   : > { %7282 = vmatmul.mubr.msk.f32.vlgmr.msra.gmra.mxu1 %vm598_vm3, %v8462_v0 }
0x1176   : > { %7285 = vmatpush3.msra.mxu1 %v8465_v5  ;;  %7286 = vmatprep.mubr.msk.f32.mxu1 %vm8070_vm0, %v8068_v8 }
0x1177   : > { %7289 = vmatprep.subr.mxu1 %v8068_v8 }
0x1235   : > { %v2766_v7 = vpop.f32.mrf.mxu1 }
0x1236   : > { %v2767_v10 = vadd.f32 %v8474_v9, %v2766_v7 }
0x1237   : > { %v7283_v11 = vpop.f32.mrf.mxu1 }
0x1238   : > { %v2770_v12 = vsel %vm675_vm4, %v2767_v10, -inf }
0x1239   : > { %2771 = vmax.xlane.f32.xlu0 %v2770_v12 }
0x124f   : > { %2856 = vrot.lane.b32.xlu0 %v8458_v1, %s8071_s5 }
0x12c2   : > { %v2772_v13 = vpop.xlane.xlu0 %2771 }
0x12c3   : > { %v2773_v14 = vsub.f32 %v2767_v10, %v2772_v13 }
0x12c5   : > { %v2774_v15 = vmul.f32 1.442695, %v2773_v14 }
0x12c6   : > { %v2857_v21 = vpop.permute.xlu0 %2856 }
0x12c7   : > { %7857 = vpow2.f32 %v2774_v15 }
0x12d4   : > { %v7858_v54 = vpop.eup %7857 }
0x12d5   : > { %v2776_v16 = vsel %vm675_vm4, %v7858_v54, 0.0 }
0x12d6   : > { %2777 = vadd.xlane.f32.xlu1 %v2776_v16 }
0x12e7   : > { %2854 = vrot.lane.b32.xlu1 %v8462_v0, %s8071_s5 }
0x135f   : > { %v2778_v17 = vpop.xlane.xlu1 %2777 }
0x1360   : > { %7859 = vrcp.f32 %v2778_v17 }
0x1363   : > { %v2855_v23 = vpop.permute.xlu1 %2854 }
0x136d   : > { %v7860_v19 = vpop.eup %7859 }
0x136e   : > { %v2780_v20 = vmul.f32 %v7860_v19, %v7858_v54 }
0x1370   : > { %7287 = vmatmul.mubr.msk.f32.vlgmr.msra.gmra.mxu1 %vm675_vm4, %v2780_v20 }
0x1371   : > { %7290 = vmatpush3.xpose.msk.msra.mxu1 %vm598_vm3, %v2857_v21  ;;  %7291 = vmatprep.mubr.msk.f32.mxu1 %vm8070_vm0, %v8068_v8 }
0x1372   : > { %7294 = vmatprep.subr.mxu1 %v8068_v8 }
0x1374   : > { %7292 = vmatmul.mubr.msk.f32.vlgmr.msra.gmra.mxu1 %vm598_vm3, %v2855_v23 }
0x1375   : > { %7296 = vmatprep.mubr.msk.f32.mxu1 %vm8070_vm0, %v8068_v8 }
0x1430   : > { %v8491_v24 = vpop.f32.mrf.mxu1 }
0x1432   : > { %v7288_v25 = vpop.f32.mrf.mxu1 }
0x1434   : > { %v2928_v26 = vpop.f32.mrf.mxu1 }
0x1435   : > { %v2929_v27 = vadd.f32 %v8474_v9, %v2928_v26 }
0x1436   : > { %v7293_v28 = vpop.f32.mrf.mxu1 }
0x1437   : > { %v2932_v29 = vsel %vm675_vm4, %v2929_v27, -inf }
0x1438   : > { %2933 = vmax.xlane.f32.xlu1 %v2932_v29 }
0x1449   : > { %3022 = vrot.lane.b32.xlu1 %v8458_v1, %s8072_s9 }
0x144d   : > { %3020 = vrot.lane.b32.xlu1 %v8462_v0, %s8072_s9 }
0x14c1   : > { %v2934_v30 = vpop.xlane.xlu1 %2933 }
0x14c2   : > { %v2935_v31 = vsub.f32 %v2929_v27, %v2934_v30 }
0x14c4   : > { %v2936_v32 = vmul.f32 1.442695, %v2935_v31 }
0x14c5   : > { %v3023_v38 = vpop.permute.xlu1 %3022 }
0x14c6   : > { %7861 = vpow2.f32 %v2936_v32 }
0x14c9   : > { %v3021_v40 = vpop.permute.xlu1 %3020 }
0x14d3   : > { %v7862_v33 = vpop.eup %7861 }
0x14d4   : > { %v2938_v34 = vsel %vm675_vm4, %v7862_v33, 0.0 }
0x14d5   : > { %2939 = vadd.xlane.f32.xlu0 %v2938_v34 }
0x14eb   : > { %2944 = vrot.lane.b32.xlu0 %v8465_v5, %s8071_s5 }
0x155e   : > { %v2940_v35 = vpop.xlane.xlu0 %2939 }
0x155f   : > { %7863 = vrcp.f32 %v2940_v35 }
0x1562   : > { %v2945_v37 = vpop.permute.xlu0 %2944 }
0x1563   : > { %7295 = vmatpush3.msra.mxu1 %v2945_v37 }
0x1564   : > { %7299 = vmatprep.subr.mxu1 %v8068_v8 }
0x156c   : > { %v7864_v2 = vpop.eup %7863 }
0x156d   : > { %v2942_v39 = vmul.f32 %v7864_v2, %v7862_v33 }
0x156f   : > { %7297 = vmatmul.mubr.msk.f32.vlgmr.msra.gmra.mxu1 %vm675_vm4, %v2942_v39 }
0x1570   : > { %7300 = vmatpush3.xpose.msk.msra.mxu1 %vm598_vm3, %v3023_v38  ;;  %7301 = vmatprep.mubr.msk.f32.mxu1 %vm8070_vm0, %v8068_v8 }
0x1571   : > { %7304 = vmatprep.subr.mxu1 %v8068_v8 }
0x1573   : > { %7302 = vmatmul.mubr.msk.f32.vlgmr.msra.gmra.mxu1 %vm598_vm3, %v3021_v40 }
0x1574   : > { %7306 = vmatprep.mubr.msk.f32.mxu1 %vm8070_vm0, %v8068_v8 }
0x162f   : > { %v8511_v41 = vpop.f32.mrf.mxu1 }
0x1631   : > { %v7298_v42 = vpop.f32.mrf.mxu1 }
0x1633   : > { %v3094_v18 = vpop.f32.mrf.mxu1 }
0x1634   : > { %v3095_v43 = vadd.f32 %v8474_v9, %v3094_v18 }
0x1635   : > { %v7303_v44 = vpop.f32.mrf.mxu1 }
0x1636   : > { %v3098_v45 = vsel %vm675_vm4, %v3095_v43, -inf }
0x1637   : > { %3099 = vmax.xlane.f32.xlu1 %v3098_v45 }
0x1648   : > { %3187 = vrot.lane.b32.xlu1 %v8458_v1, %s8073_s10 }
0x164c   : > { %3185 = vrot.lane.b32.xlu1 %v8462_v0, %s8073_s10 }
0x1650   : > { %3350 = vrot.lane.b32.xlu1 %v8462_v0, %s8074_s11 }
0x1654   : > { %3515 = vrot.lane.b32.xlu1 %v8462_v0, %s8075_s12 }
0x1658   : > { %3680 = vrot.lane.b32.xlu1 %v8462_v0, %s8076_s13 }
0x165c   : > { %3845 = vrot.lane.b32.xlu1 %v8462_v0, %s8077_s14 }
0x16c0   : > { %v3100_v46 = vpop.xlane.xlu1 %3099 }
0x16c1   : > { %v3101_v47 = vsub.f32 %v3095_v43, %v3100_v46 }
0x16c3   : > { %v3102_v49 = vmul.f32 1.442695, %v3101_v47 }
0x16c4   : > { %v3188_v55 = vpop.permute.xlu1 %3187 }
0x16c5   : > { %7865 = vpow2.f32 %v3102_v49 }
0x16c8   : > { %v3186_v56 = vpop.permute.xlu1 %3185 }
0x16cc   : > { %v3351_v59 = vpop.permute.xlu1 %3350 }
0x16d0   : > { %v3516_v61 = vpop.permute.xlu1 %3515 }
0x16d2   : > { %v7866_v52 = vpop.eup %7865 }
0x16d3   : > { %v3104_v53 = vsel %vm675_vm4, %v7866_v52, 0.0 }
0x16d4   : > { %3105 = vadd.xlane.f32.xlu0 %v3104_v53  ;;  %v3681_v0 = vpop.permute.xlu1 %3680 }
0x16d8   : > { %v3846_v4 = vpop.permute.xlu1 %3845 }
0x16ea   : > { %3109 = vrot.lane.b32.xlu0 %v8465_v5, %s8072_s9 }
0x16ee   : > { %3352 = vrot.lane.b32.xlu0 %v8458_v1, %s8074_s11 }
0x16f2   : > { %3517 = vrot.lane.b32.xlu0 %v8458_v1, %s8075_s12 }
0x16f6   : > { %3682 = vrot.lane.b32.xlu0 %v8458_v1, %s8076_s13 }
0x16fa   : > { %3847 = vrot.lane.b32.xlu0 %v8458_v1, %s8077_s14 }
0x175d   : > { %v3106_v57 = vpop.xlane.xlu0 %3105 }
0x175e   : > { %7867 = vrcp.f32 %v3106_v57 }
0x1761   : > { %v3110_v58 = vpop.permute.xlu0 %3109 }
0x1762   : > { %7305 = vmatpush3.msra.mxu1 %v3110_v58 }
0x1763   : > { %7309 = vmatprep.subr.mxu1 %v8068_v8 }
0x1765   : > { %v3353_v60 = vpop.permute.xlu0 %3352 }
0x1766   : > { %7320 = vmatpush3.xpose.msk.msra.mxu0 %vm598_vm3, %v3353_v60 }
0x1767   : > { %7329 = vmatprep.subr.mxu0 %v8068_v8 }
0x1769   : > { %v3518_v62 = vpop.permute.xlu0 %3517  ;;  %7322 = vmatmul.mubr.msk.f32.vlgmr.msra.gmra.mxu0 %vm598_vm3, %v3351_v59 }
0x176a   : > { %7330 = vmatpush3.xpose.msk.msra.mxu0 %vm598_vm3, %v3518_v62  ;;  %7331 = vmatprep.mubr.msk.f32.mxu0 %vm8070_vm0, %v8068_v8 }
0x176b   : > { %v7868_v1 = vpop.eup %7867  ;;  %7339 = vmatprep.subr.mxu0 %v8068_v8 }
0x176c   : > { %v3108_v63 = vmul.f32 %v7868_v1, %v7866_v52 }
0x176d   : > { %v3683_v36 = vpop.permute.xlu0 %3682  ;;  %7332 = vmatmul.mubr.msk.f32.vlgmr.msra.gmra.mxu0 %vm598_vm3, %v3516_v61 }
0x176e   : > { %7307 = vmatmul.mubr.msk.f32.vlgmr.msra.gmra.mxu1 %vm675_vm4, %v3108_v63  ;;  %7340 = vmatpush3.xpose.msk.msra.mxu0 %vm598_vm3, %v3683_v36 }
0x176f   : > { %7310 = vmatpush3.xpose.msk.msra.mxu1 %vm598_vm3, %v3188_v55  ;;  %7341 = vmatprep.mubr.msk.f32.mxu0 %vm8070_vm0, %v8068_v8 }
0x1770   : > { %7311 = vmatprep.mubr.msk.f32.mxu1 %vm8070_vm0, %v8068_v8  ;;  %7349 = vmatprep.subr.mxu0 %v8068_v8 }
0x1771   : > { %v3848_v3 = vpop.permute.xlu0 %3847  ;;  %7342 = vmatmul.mubr.msk.f32.vlgmr.msra.gmra.mxu0 %vm598_vm3, %v3681_v0  ;;  %7314 = vmatprep.subr.mxu1 %v8068_v8 }
0x1772   : > { %7312 = vmatmul.mubr.msk.f32.vlgmr.msra.gmra.mxu1 %vm598_vm3, %v3186_v56  ;;  %7350 = vmatpush3.xpose.msk.msra.mxu0 %vm598_vm3, %v3848_v3 }
0x1773   : > { %7351 = vmatprep.mubr.msk.f32.mxu0 %vm8070_vm0, %v8068_v8  ;;  %7316 = vmatprep.mubr.msk.f32.mxu1 %vm8070_vm0, %v8068_v8 }
0x1774   : > { %7359 = vmatprep.subr.bf16.mxu0 %v8068_v8 }
0x1775   : > { %7352 = vmatmul.mubr.msk.f32.vlgmr.msra.gmra.mxu0 %vm598_vm3, %v3846_v4 }
0x1776   : > { %7375 = vmatprep.mubr.msk.bf16.mxu0 %vm8070_vm0, %v8068_v8 }
0x1829   : > { %v3424_v7 = vpop.f32.mrf.mxu0 }
0x182a   : > { %v3425_v10 = vadd.f32 %v8474_v9, %v3424_v7 }
0x182b   : > { %v7323_v11 = vpop.f32.mrf.mxu0 }
0x182c   : > { %v3428_v12 = vsel %vm675_vm4, %v3425_v10, -inf }
0x182d   : > { %3429 = vmax.xlane.f32.xlu1 %v3428_v12  ;;  %v3589_v13 = vpop.f32.mrf.mxu0 }
0x182e   : > { %v3181_v14 = vpop.f32.mrf.mxu1  ;;  %v3590_v23 = vadd.f32 %v8474_v9, %v3589_v13 }
0x182f   : > { %v7333_v15 = vpop.f32.mrf.mxu0 }
0x1830   : > { %v7308_v54 = vpop.f32.mrf.mxu1  ;;  %v3593_v29 = vsel %vm675_vm4, %v3590_v23, -inf }
0x1831   : > { %v3754_v16 = vpop.f32.mrf.mxu0 }
0x1832   : > { %v3259_v17 = vpop.f32.mrf.mxu1  ;;  %v3755_v28 = vadd.f32 %v8474_v9, %v3754_v16 }
0x1833   : > { %v3260_v19 = vadd.f32 %v8474_v9, %v3259_v17  ;;  %v7343_v20 = vpop.f32.mrf.mxu0 }
0x1834   : > { %v7313_v21 = vpop.f32.mrf.mxu1  ;;  %v3758_v31 = vsel %vm675_vm4, %v3755_v28, -inf  ;;  %v7686_v20 = vld [vmem:[#allocation2 + $0x510] ss:$12 sps:$4 sm:$0xff]  }
0x1835   : > { %v3919_v25 = vpop.f32.mrf.mxu0  ;;  %v3263_v26 = vsel %vm675_vm4, %v3260_v19, -inf  ;;  %v7687_v21 = vld [vmem:[#allocation2 + $0x4f8] ss:$12 sps:$4 sm:$0xff]  }
0x1836   : > { %3264 = vmax.xlane.f32.xlu0 %v3263_v26  ;;  %v3920_v30 = vadd.f32 %v8474_v9, %v3919_v25  ;;  %v7689_v25 = vld [vmem:[#allocation2 + $0x4c8] ss:$12 sps:$4 sm:$0xff]   ;;  %v7690_v26 = vld [vmem:[#allocation2 + $0x4b0] ss:$12 sps:$4 sm:$0xff]  }
0x1837   : > { %v7353_v27 = vpop.f32.mrf.mxu0 }
0x1838   : > { %v3923_v32 = vsel %vm675_vm4, %v3920_v30, -inf  ;;  %v7691_v27 = vld [vmem:[#allocation2 + $0x498] ss:$12 sps:$4 sm:$0xff]  }
0x183a   : > { %3594 = vmax.xlane.f32.xlu0 %v3593_v29 }
0x183e   : > { %3759 = vmax.xlane.f32.xlu0 %v3758_v31 }
0x1842   : > { %3924 = vmax.xlane.f32.xlu0 %v3923_v32 }
0x18b6   : > { %v3430_v33 = vpop.xlane.xlu1 %3429 }
0x18b7   : > { %v3431_v34 = vsub.f32 %v3425_v10, %v3430_v33 }
0x18b9   : > { %v3432_v35 = vmul.f32 1.442695, %v3431_v34 }
0x18bb   : > { %7869 = vpow2.f32 %v3432_v35 }
0x18bf   : > { %v3265_v37 = vpop.xlane.xlu0 %3264 }
0x18c0   : > { %v3266_v57 = vsub.f32 %v3260_v19, %v3265_v37  ;;  %v7685_v19 = vld [vmem:[#allocation2 + $0x528] ss:$12 sps:$4 sm:$0xff]  }
0x18c1   : > { %7360 = vmatpush3.bf16.msra.mxu0 %v7685_v19  ;;  %v7714_v19 = vld [vmem:[#allocation2 + $0x540] ss:$12 sps:$4 sm:$0xff]  }
0x18c2   : > { %v3267_v58 = vmul.f32 1.442695, %v3266_v57  ;;  %7361 = vmatprep.subr.bf16.mxu0 %v8068_v8  ;;  %v2442_v57 = vld [vmem:[#allocation5 + $0x15] ss:$0 sm:$0xff] }
0x18c3   : > { %v3595_v2 = vpop.xlane.xlu0 %3594 }
0x18c4   : > { %v3596_v38 = vsub.f32 %v3590_v23, %v3595_v2  ;;  %v7688_v23 = vld [vmem:[#allocation2 + $0x4e0] ss:$12 sps:$4 sm:$0xff]  }
0x18c5   : > { %7362 = vmatpush3.bf16.msra.mxu0 %v7686_v20  ;;  %v7717_v20 = vld [vmem:[#allocation2 + $0x768] ss:$12 sps:$4 sm:$0xff]  }
0x18c6   : > { %v3597_v39 = vmul.f32 1.442695, %v3596_v38  ;;  %7363 = vmatprep.subr.bf16.mxu0 %v8068_v8 }
0x18c7   : > { %v3760_v40 = vpop.xlane.xlu0 %3759 }
0x18c8   : > { %v7870_v42 = vpop.eup %7869  ;;  %7871 = vpow2.f32 %v3597_v39  ;;  %v3761_v18 = vsub.f32 %v3755_v28, %v3760_v40 }
0x18c9   : > { %v3434_v9 = vsel %vm675_vm4, %v7870_v42, 0.0  ;;  %7364 = vmatpush3.bf16.msra.mxu0 %v7687_v21  ;;  %v7718_v21 = vld [vmem:[#allocation2 + $0x6a8] ss:$12 sps:$4 sm:$0xff]  }
0x18ca   : > { %v3762_v43 = vmul.f32 1.442695, %v3761_v18  ;;  %3435 = vadd.xlane.f32.xlu0 %v3434_v9  ;;  %7365 = vmatprep.subr.bf16.mxu0 %v8068_v8 }
0x18cb   : > { %v3925_v44 = vpop.xlane.xlu0 %3924 }
0x18cc   : > { %7873 = vpow2.f32 %v3762_v43  ;;  %v3926_v45 = vsub.f32 %v3920_v30, %v3925_v44  ;;  %v7692_v30 = vld [vmem:[#allocation2 + $0x480] ss:$12 sps:$4 sm:$0xff]  }
0x18cd   : > { %7366 = vmatpush3.bf16.msra.mxu0 %v7688_v23  ;;  %v7719_v23 = vld [vmem:[#allocation2 + $0x750] ss:$12 sps:$4 sm:$0xff]  }
0x18ce   : > { %v3927_v46 = vmul.f32 1.442695, %v3926_v45  ;;  %7367 = vmatprep.subr.bf16.mxu0 %v8068_v8 }
0x18d0   : > { %7875 = vpow2.f32 %v3927_v46 }
0x18d1   : > { %7877 = vpow2.f32 %v3267_v58  ;;  %7368 = vmatpush3.bf16.msra.mxu0 %v7689_v25  ;;  %v7720_v25 = vld [vmem:[#allocation2 + $0x690] ss:$12 sps:$4 sm:$0xff]  }
0x18d2   : > { %7369 = vmatprep.subr.bf16.mxu0 %v8068_v8 }
0x18d5   : > { %v7872_v47 = vpop.eup %7871  ;;  %7370 = vmatpush3.bf16.msra.mxu0 %v7690_v26  ;;  %v7721_v26 = vld [vmem:[#allocation2 + $0x738] ss:$12 sps:$4 sm:$0xff]  }
0x18d6   : > { %v3599_v49 = vsel %vm675_vm4, %v7872_v47, 0.0  ;;  %7371 = vmatprep.subr.bf16.mxu0 %v8068_v8 }
0x18d7   : > { %3600 = vadd.xlane.f32.xlu1 %v3599_v49 }
0x18d9   : > { %v7874_v52 = vpop.eup %7873  ;;  %7372 = vmatpush3.bf16.msra.mxu0 %v7691_v27  ;;  %v7722_v27 = vld [vmem:[#allocation2 + $0x678] ss:$12 sps:$4 sm:$0xff]  }
0x18da   : > { %v3764_v53 = vsel %vm675_vm4, %v7874_v52, 0.0  ;;  %7373 = vmatprep.subr.bf16.mxu0 %v8068_v8 }
0x18db   : > { %3765 = vadd.xlane.f32.xlu0 %v3764_v53 }
0x18dd   : > { %v7876_v55 = vpop.eup %7875  ;;  %7374 = vmatpush3.bf16.msra.mxu0 %v7692_v30  ;;  %v7725_v30 = vld [vmem:[#allocation2 + $0x708] ss:$12 sps:$4 sm:$0xff]  }
0x18de   : > { %v3929_v56 = vsel %vm675_vm4, %v7876_v55, 0.0  ;;  %v7878_v59 = vpop.eup %7877  ;;  %7045 = vmatprep.subr.bf16.mxu0 %v7717_v20  ;;  %v7736_v20 = vld [vmem:[#allocation2 + $0x830] ss:$12 sps:$4 sm:$0xff]  }
0x18df   : > { %3930 = vadd.xlane.f32.xlu1 %v3929_v56  ;;  %v3269_v60 = vsel %vm675_vm4, %v7878_v59, 0.0 }
0x18f0   : > { %3439 = vrot.lane.b32.xlu1 %v8465_v5, %s8074_s11 }
0x18f1   : > { %3274 = vrot.lane.b32.xlu0 %v8465_v5, %s8073_s10 }
0x18f5   : > { %3934 = vrot.lane.b32.xlu0 %v8465_v5, %s8077_s14 }
0x18f9   : > { %4015 = vrot.lane.b32.xlu0 %v3181_v14, %s8076_s13 }
0x1914   : > { %3270 = vadd.xlane.f32.xlu1 %v3269_v60 }
0x1925   : > { %3604 = vrot.lane.b32.xlu1 %v8465_v5, %s8075_s12 }
0x1929   : > { %3769 = vrot.lane.b32.xlu1 %v8465_v5, %s8076_s13 }
0x192d   : > { %4011 = vrot.lane.b32.xlu1 %v8511_v41, %s8077_s14 }
0x1953   : > { %v3436_v61 = vpop.xlane.xlu0 %3435 }
0x1960   : > { %v3601_v63 = vpop.xlane.xlu1 %3600 }
0x1964   : > { %v3766_v62 = vpop.xlane.xlu0 %3765 }
0x1968   : > { %v3275_v1 = vpop.permute.xlu0 %3274  ;;  %v3931_v36 = vpop.xlane.xlu1 %3930 }
0x1969   : > { %7315 = vmatpush3.msra.mxu1 %v3275_v1 }
0x196a   : > { %7324 = vmatprep.subr.mxu1 %v8068_v8 }
0x196c   : > { %v3440_v0 = vpop.permute.xlu1 %3439  ;;  %v3935_v16 = vpop.permute.xlu0 %3934 }
0x1970   : > { %v4016_v40 = vpop.permute.xlu0 %4015 }
0x199d   : > { %v3271_v3 = vpop.xlane.xlu1 %3270 }
0x199e   : > { %7879 = vrcp.f32 %v3271_v3  ;;  %v7695_v3 = vld [vmem:[#allocation2 + $0x5ec] ss:$12 sps:$4 sm:$0xff]  }
0x199f   : > { %7881 = vrcp.f32 %v3436_v61 }
0x19a0   : > { %7883 = vrcp.f32 %v3601_v63 }
0x19a1   : > { %7885 = vrcp.f32 %v3766_v62  ;;  %v3605_v41 = vpop.permute.xlu1 %3604 }
0x19a2   : > { %7887 = vrcp.f32 %v3931_v36 }
0x19a5   : > { %v3770_v14 = vpop.permute.xlu1 %3769 }
0x19a9   : > { %v4012_v39 = vpop.permute.xlu1 %4011 }
0x19aa   : > { %v4038_v18 = vsel %vm598_vm3, %v8491_v24, %v4012_v39 }
0x19ab   : > { %v7880_v4 = vpop.eup %7879  ;;  %v4039_v43 = vsel %vm1945_vm5, %v4038_v18, %v4016_v40 }
0x19ac   : > { %v3273_v5 = vmul.f32 %v7880_v4, %v7878_v59  ;;  %v7882_v7 = vpop.eup %7881  ;;  %v7693_v4 = vld [vmem:[#allocation2 + $0x5e8] ss:$12 sps:$4 sm:$0xff]  }
0x19ad   : > { %v3438_v10 = vmul.f32 %v7882_v7, %v7870_v42  ;;  %v7884_v11 = vpop.eup %7883  ;;  %v7701_v7 = vld [vmem:[#allocation2 + $0x5bc] ss:$12 sps:$4 sm:$0xff]  }
0x19ae   : > { %7317 = vmatmul.mubr.msk.f32.vlgmr.msra.gmra.mxu1 %vm675_vm4, %v3273_v5  ;;  %v3603_v12 = vmul.f32 %v7884_v11, %v7872_v47  ;;  %v7886_v13 = vpop.eup %7885  ;;  %v7698_v5 = vld [vmem:[#allocation2 + $0x5d4] ss:$12 sps:$4 sm:$0xff]   ;;  %v7704_v11 = vld [vmem:[#allocation2 + $0x5a4] ss:$12 sps:$4 sm:$0xff]  }
0x19af   : > { %7325 = vmatpush3.msra.mxu1 %v3440_v0  ;;  %7326 = vmatprep.mubr.msk.f32.mxu1 %vm8070_vm0, %v8068_v8  ;;  %v3768_v15 = vmul.f32 %v7886_v13, %v7874_v52  ;;  %v7888_v54 = vpop.eup %7887  ;;  %v7705_v13 = vld [vmem:[#allocation2 + $0x588] ss:$12 sps:$4 sm:$0xff]  }
0x19b0   : > { %7334 = vmatprep.subr.mxu1 %v8068_v8  ;;  %v3933_v17 = vmul.f32 %v7888_v54, %v7876_v55  ;;  %v7713_v54 = vld [vmem:[#allocation2 + $0x55c] ss:$12 sps:$4 sm:$0xff]  }
0x19b2   : > { %7327 = vmatmul.mubr.msk.f32.vlgmr.msra.gmra.mxu1 %vm675_vm4, %v3438_v10  ;;  %v7702_v10 = vld [vmem:[#allocation2 + $0x5a0] ss:$12 sps:$4 sm:$0xff]  }
0x19b3   : > { %7335 = vmatpush3.msra.mxu1 %v3605_v41  ;;  %7336 = vmatprep.mubr.msk.f32.mxu1 %vm8070_vm0, %v8068_v8  ;;  %v7699_v41 = vld [vmem:[#allocation2 + $0x5b8] ss:$12 sps:$4 sm:$0xff]  }
0x19b4   : > { %7344 = vmatprep.subr.mxu1 %v8068_v8 }
0x19b6   : > { %7337 = vmatmul.mubr.msk.f32.vlgmr.msra.gmra.mxu1 %vm675_vm4, %v3603_v12  ;;  %v7707_v12 = vld [vmem:[#allocation2 + $0x58c] ss:$12 sps:$4 sm:$0xff]  }
0x19b7   : > { %7345 = vmatpush3.msra.mxu1 %v3770_v14  ;;  %7346 = vmatprep.mubr.msk.f32.mxu1 %vm8070_vm0, %v8068_v8  ;;  %v7710_v14 = vld [vmem:[#allocation2 + $0x574] ss:$12 sps:$4 sm:$0xff]  }
0x19b8   : > { %7354 = vmatprep.subr.mxu1 %v8068_v8 }
0x19ba   : > { %7347 = vmatmul.mubr.msk.f32.vlgmr.msra.gmra.mxu1 %vm675_vm4, %v3768_v15  ;;  %v7708_v15 = vld [vmem:[#allocation2 + $0x570] ss:$12 sps:$4 sm:$0xff]  }
0x19bb   : > { %7355 = vmatpush3.msra.mxu1 %v3935_v16  ;;  %7356 = vmatprep.mubr.msk.f32.mxu1 %vm8070_vm0, %v8068_v8  ;;  %v7711_v16 = vld [vmem:[#allocation2 + $0x558] ss:$12 sps:$4 sm:$0xff]  }
0x19bc   : > { %4247 = vmatprep.subr.bf16.mxu1 %v7695_v3 }
0x19be   : > { %7357 = vmatmul.mubr.msk.f32.vlgmr.msra.gmra.mxu1 %vm675_vm4, %v3933_v17  ;;  %v7716_v17 = vld [vmem:[#allocation2 + $0x544] ss:$12 sps:$4 sm:$0xff]  }
0x19bf   : > { %4279 = vmatprep.mubr.bf16.mxu1 %v8069_v22  ;;  %4248 = vmatpush1.bf16.msra.mxu1 %v7693_v4 }
0x19c0   : > { %4249 = vmatprep.subr.bf16.mxu1 %v7698_v5 }
0x1a6e   : > { %v3346_v28 = vpop.f32.mrf.mxu1 }
0x1a6f   : > { %4019 = vrot.lane.b32.xlu1 %v3346_v28, %s8075_s12  ;;  %v7723_v28 = vld [vmem:[#allocation2 + $0x720] ss:$12 sps:$4 sm:$0xff]  }
0x1a70   : > { %v7318_v29 = vpop.f32.mrf.mxu1 }
0x1a71   : > { %v7724_v29 = vld [vmem:[#allocation2 + $0x660] ss:$12 sps:$4 sm:$0xff]  }
0x1a72   : > { %v3511_v31 = vpop.f32.mrf.mxu1 }
0x1a73   : > { %4023 = vrot.lane.b32.xlu0 %v3511_v31, %s8074_s11  ;;  %v7726_v31 = vld [vmem:[#allocation2 + $0x648] ss:$12 sps:$4 sm:$0xff]  }
0x1a74   : > { %v7328_v32 = vpop.f32.mrf.mxu1 }
0x1a75   : > { %v7727_v32 = vld [vmem:[#allocation2 + $0x6f0] ss:$12 sps:$4 sm:$0xff]  }
0x1a76   : > { %v3676_v33 = vpop.f32.mrf.mxu1 }
0x1a77   : > { %4027 = vrot.lane.b32.xlu1 %v3676_v33, %s8073_s10  ;;  %v7728_v33 = vld [vmem:[#allocation2 + $0x630] ss:$12 sps:$4 sm:$0xff]  }
0x1a78   : > { %v7338_v34 = vpop.f32.mrf.mxu1 }
0x1a7a   : > { %v3841_v35 = vpop.f32.mrf.mxu1 }
0x1a7b   : > { %4031 = vrot.lane.b32.xlu0 %v3841_v35, %s8072_s9 }
0x1a7c   : > { %v7348_v37 = vpop.f32.mrf.mxu1 }
0x1a7e   : > { %v4006_v2 = vpop.f32.mrf.mxu1 }
0x1a7f   : > { %4035 = vrot.lane.b32.xlu1 %v4006_v2, %s8071_s5 }
0x1a80   : > { %v7358_v38 = vpop.f32.mrf.mxu1 }
0x1ae1   : > { %v4020_v42 = vpop.permute.xlu1 %4019 }
0x1ae2   : > { %v4040_v45 = vsel %vm1947_vm6, %v4039_v43, %v4020_v42 }
0x1ae5   : > { %v4024_v9 = vpop.permute.xlu0 %4023 }
0x1ae6   : > { %v4041_v47 = vsel %vm1949_vm7, %v4040_v45, %v4024_v9  ;;  %v2446_v9 = vld [vmem:[#allocation5 + $0x7] ss:$0 sm:$0xff] }
0x1ae9   : > { %v4028_v44 = vpop.permute.xlu1 %4027 }
0x1aea   : > { %v4042_v49 = vsel %vm1951_vm8, %v4041_v47, %v4028_v44  ;;  %v2447_v44 = vld [vmem:[#allocation5 + $0xf] ss:$0 sm:$0xff] }
0x1aed   : > { %v4032_v46 = vpop.permute.xlu0 %4031 }
0x1aee   : > { %v4043_v52 = vsel %vm1953_vm9, %v4042_v49, %v4032_v46  ;;  %v7729_v49 = vld [vmem:[#allocation2 + $0x6d8] ss:$12 sps:$4 sm:$0xff]  }
0x1af1   : > { %v4036_v53 = vpop.permute.xlu1 %4035 }
0x1af2   : > { %v4044_v55 = vsel %vm1955_vm10, %v4043_v52, %v4036_v53  ;;  %v7730_v52 = vld [vmem:[#allocation2 + $0x618] ss:$12 sps:$4 sm:$0xff]   ;;  %v7731_v53 = vld [vmem:[#allocation2 + $0x6c0] ss:$12 sps:$4 sm:$0xff]  }
0x1af3   : > { %v4045_v56 = vpack.c.bf16 %v4044_v55, %v4044_v55  ;;  %v7732_v55 = vld [vmem:[#allocation2 + $0x600] ss:$12 sps:$4 sm:$0xff]  }
0x1af5   : > { %7376 = vmatmul.mubr.bf16.vlgmr.msra.gmra.mxu0 %v4045_v56  ;;  %v2441_v56 = vld [vmem:[#allocation5 + $0x5] ss:$8 sm:$0x3] }
0x1af6   : > { %7046 = vmatpush3.bf16.msra.mxu0 %v7718_v21  ;;  %v7739_v21 = vld [vmem:[#allocation2 + $0x814] ss:$12 sps:$4 sm:$0xff]  }
0x1af7   : > { %7047 = vmatprep.subr.bf16.mxu0 %v7719_v23  ;;  %v7740_v23 = vld [vmem:[#allocation2 + $0x818] ss:$12 sps:$4 sm:$0xff]  }
0x1afa   : > { %7048 = vmatpush3.bf16.msra.mxu0 %v7720_v25  ;;  %v7743_v25 = vld [vmem:[#allocation2 + $0x7fc] ss:$12 sps:$4 sm:$0xff]  }
0x1afb   : > { %7049 = vmatprep.subr.bf16.mxu0 %v7721_v26  ;;  %v7741_v26 = vld [vmem:[#allocation2 + $0x7f8] ss:$12 sps:$4 sm:$0xff]  }
0x1afe   : > { %7050 = vmatpush3.bf16.msra.mxu0 %v7722_v27  ;;  %v7744_v27 = vld [vmem:[#allocation2 + $0x800] ss:$12 sps:$4 sm:$0xff]  }
0x1aff   : > { %7051 = vmatprep.subr.bf16.mxu0 %v7723_v28  ;;  %v7745_v28 = vld [vmem:[#allocation2 + $0x7e0] ss:$12 sps:$4 sm:$0xff]  }
0x1b02   : > { %7052 = vmatpush3.bf16.msra.mxu0 %v7724_v29  ;;  %v7747_v29 = vld [vmem:[#allocation2 + $0x7e4] ss:$12 sps:$4 sm:$0xff]  }
0x1b03   : > { %7053 = vmatprep.subr.bf16.mxu0 %v7725_v30  ;;  %v7748_v30 = vld [vmem:[#allocation2 + $0x7e8] ss:$12 sps:$4 sm:$0xff]  }
0x1b06   : > { %7054 = vmatpush3.bf16.msra.mxu0 %v7726_v31  ;;  %v7751_v31 = vld [vmem:[#allocation2 + $0x7cc] ss:$12 sps:$4 sm:$0xff]  }
0x1b07   : > { %7055 = vmatprep.subr.bf16.mxu0 %v7727_v32  ;;  %v7749_v32 = vld [vmem:[#allocation2 + $0x7c8] ss:$12 sps:$4 sm:$0xff]  }
0x1b0a   : > { %7056 = vmatpush3.bf16.msra.mxu0 %v7728_v33  ;;  %v7752_v33 = vld [vmem:[#allocation2 + $0x7d0] ss:$12 sps:$4 sm:$0xff]  }
0x1b0b   : > { %7057 = vmatprep.subr.bf16.mxu0 %v7729_v49 }
0x1b0e   : > { %7058 = vmatpush3.bf16.msra.mxu0 %v7730_v52 }
0x1b0f   : > { %7059 = vmatprep.subr.bf16.mxu0 %v7731_v53 }
0x1b12   : > { %7060 = vmatpush3.bf16.msra.mxu0 %v7732_v55  ;;  %v4532_v55 = vld [vmem:[#allocation5 + $0x22] ss:$0 sm:$0xff] }
0x1b13   : > { %7379 = vmatprep.subr.bf16.mxu0 %v8068_v8 }
0x1bb5   : > { %v4128_v24 = vpop.f32.mrf.mxu0 }
0x1bb6   : > { %v4129_v58 = vadd.f32 %v4128_v24, %v2442_v57  ;;  %v4160_v57 = vrot.slane %v2441_v56, %v8228_v50  ;;  %v4164_v24 = vrot.slane %v2441_v56, %v8226_v48 }
0x1bb7   : > { %v7377_v59 = vpop.f32.mrf.mxu0 }
0x1bb8   : > { %v8634_v60 = vadd.f32 %v4129_v58, %v8433_v6  ;;  %v7696_v6 = vld [vmem:[#allocation2 + $0x5d0] ss:$12 sps:$4 sm:$0xff]  }
0x1bb9   : > { %v4131_v61 = vpop.f32.mrf.mxu0  ;;  %4250 = vmatpush1.bf16.msra.mxu1 %v7696_v6  ;;  %v2443_v6 = vld [vmem:[#allocation5 + $0x6] ss:$0 sm:$0xff] }
0x1bba   : > { %4135 = vadd.xlane.f32.xlu0 %v8634_v60  ;;  %4251 = vmatprep.subr.bf16.mxu1 %v7701_v7 }
0x1bbb   : > { %v7378_v62 = vpop.f32.mrf.mxu0 }
0x1bbd   : > { %4252 = vmatpush1.bf16.msra.mxu1 %v7699_v41 }
0x1bbe   : > { %4253 = vmatprep.subr.bf16.mxu1 %v7704_v11 }
0x1bc1   : > { %4254 = vmatpush1.bf16.msra.mxu1 %v7702_v10 }
0x1bc2   : > { %4255 = vmatprep.subr.bf16.mxu1 %v7707_v12 }
0x1bc5   : > { %4256 = vmatpush1.bf16.msra.mxu1 %v7705_v13 }
0x1bc6   : > { %4257 = vmatprep.subr.bf16.mxu1 %v7710_v14 }
0x1bc9   : > { %4258 = vmatpush1.bf16.msra.mxu1 %v7708_v15 }
0x1bca   : > { %4259 = vmatprep.subr.bf16.mxu1 %v7713_v54 }
0x1bcd   : > { %4260 = vmatpush1.bf16.msra.mxu1 %v7711_v16 }
0x1bce   : > { %4261 = vmatprep.subr.bf16.mxu1 %v7716_v17  ;;  %v7735_v17 = vld [vmem:[#allocation2 + $0x82c] ss:$12 sps:$4 sm:$0xff]  }
0x1bd1   : > { %4262 = vmatpush1.bf16.msra.mxu1 %v7714_v19  ;;  %v7733_v19 = vld [vmem:[#allocation2 + $0x828] ss:$12 sps:$4 sm:$0xff]  }
0x1bd2   : > { %4701 = vmatprep.subr.bf16.mxu1 %v7735_v17 }
0x1c43   : > { %v4136_v1 = vpop.xlane.xlu0 %4135 }
0x1c44   : > { %v4137_v63 = vmul.f32 0.0078125, %v4136_v1 }
0x1c46   : > { %v8638_v36 = vsub.f32 %v8634_v60, %v4137_v63 }
0x1c48   : > { %v4139_v0 = vmul.f32 %v8638_v36, %v8638_v36 }
0x1c4a   : > { %4140 = vadd.xlane.f32.xlu1 %v4139_v0 }
0x1cd3   : > { %v4141_v34 = vpop.xlane.xlu1 %4140 }
0x1cd4   : > { %v4142_v35 = vmul.f32 0.007874016, %v4141_v34  ;;  %v7755_v34 = vld [vmem:[#allocation2 + $0x7b4] ss:$12 sps:$4 sm:$0xff]  }
0x1cd6   : > { %7889 = vrsqrt.f32 %v4142_v35  ;;  %vm4145_vm15 = vcmp.eq.f32.partialorder %v4142_v35, inf  ;;  %v4148_v38 = vand.u32 2147483648, %v4142_v35  ;;  %vm4147_vm1 = vcmp.eq.f32.partialorder %v4142_v35, 0.0 }
0x1ce3   : > { %v7890_v37 = vpop.eup %7889 }
0x1ce4   : > { %v4144_v2 = vmul.f32 %v7890_v37, %v4142_v35  ;;  %v7756_v37 = vld [vmem:[#allocation2 + $0x7b8] ss:$12 sps:$4 sm:$0xff]  }
0x1ce6   : > { %v4146_v39 = vsel %vm4145_vm15, %v4142_v35, %v4144_v2  ;;  %v7753_v35 = vld [vmem:[#allocation2 + $0x7b0] ss:$12 sps:$4 sm:$0xff]  }
0x1ce7   : > { %v4149_v40 = vsel %vm4147_vm1, %v4148_v38, %v4146_v39  ;;  %v7759_v2 = vld [vmem:[#allocation2 + $0x79c] ss:$12 sps:$4 sm:$0xff]   ;;  %v7757_v38 = vld [vmem:[#allocation2 + $0x798] ss:$12 sps:$4 sm:$0xff]   ;;  %v7760_v39 = vld [vmem:[#allocation2 + $0x7a0] ss:$12 sps:$4 sm:$0xff]  }
0x1ce8   : > { %v4150_v42 = vadd.f32 1e-06, %v4149_v40  ;;  %v7763_v40 = vld [vmem:[#allocation2 + $0x784] ss:$12 sps:$4 sm:$0xff]  }
0x1cea   : > { %7891 = vrcp.f32 %v4150_v42  ;;  %v7761_v42 = vld [vmem:[#allocation2 + $0x780] ss:$12 sps:$4 sm:$0xff]  }
0x1cf7   : > { %v7892_v18 = vpop.eup %7891 }
0x1cf8   : > { %v4152_v43 = vmul.f32 %v7892_v18, %v8638_v36  ;;  %v7764_v18 = vld [vmem:[#allocation2 + $0x788] ss:$12 sps:$4 sm:$0xff]  }
0x1cfa   : > { %v4153_v45 = vmul.f32 %v4152_v43, %v2446_v9 }
0x1cfc   : > { %v4154_v46 = vadd.f32 %v4153_v45, %v2447_v44 }
0x1cfe   : > { %v4155_v47 = vpack.c.bf16 %v4154_v46, %v4154_v46 }
0x1d00   : > { %4280 = vmatmul.mubr.bf16.vlgmr.msra.gmra.mxu1 %v4155_v47 }
0x1d01   : > { %4733 = vmatprep.mubr.bf16.mxu1 %v8069_v22  ;;  %4702 = vmatpush1.bf16.msra.mxu1 %v7733_v19 }
0x1d02   : > { %4703 = vmatprep.subr.bf16.mxu1 %v7739_v21 }
0x1dc0   : > { %v4281_v58 = vpop.f32.mrf.mxu1 }
0x1dc1   : > { %v4282_v59 = vadd.f32 %v4281_v58, %v4160_v57  ;;  %v4533_v57 = vld [vmem:[#allocation5 + $0x2a] ss:$0 sm:$0xff] }
0x1dc2   : > { %v4283_v61 = vpop.f32.mrf.mxu1 }
0x1dc3   : > { %v4284_v62 = vadd.f32 %v4283_v61, %v4164_v24  ;;  %v4288_v1 = vmax.f32 %v4282_v59, 0.0  ;;  %v4527_v61 = vld [vmem:[#allocation5 + $0x18] ss:$8 sm:$0x7] }
0x1dc4   : > { %v4285_v63 = vpop.f32.mrf.mxu1 }
0x1dc5   : > { %v4289_v36 = vmax.f32 %v4284_v62, 0.0  ;;  %v4290_v4 = vpack.c.bf16 %v4288_v1, %v4288_v1  ;;  %v4565_v62 = vrot.slane %v4527_v61, %v8226_v48 }
0x1dc6   : > { %v4286_v0 = vpop.f32.mrf.mxu1 }
0x1dc7   : > { %v4291_v3 = vpack.c.bf16 %v4289_v36, %v4289_v36  ;;  %v4561_v36 = vrot.slane %v4527_v61, %v8228_v50 }
0x1dc9   : > { %4420 = vmatprep.mubr.bf16.mxu0 %v4291_v3 }
0x1dca   : > { %4421 = vmatmul.mubr.bf16.vlgmr.msra.gmra.mxu0 %v4290_v4  ;;  %v4569_v4 = vrot.slane %v4527_v61, %v8230_v51 }
0x1dcb   : > { %7395 = vmatprep.mubr.msk.bf16.mxu0 %vm8070_vm0, %v8068_v8  ;;  %7380 = vmatpush3.bf16.msra.mxu0 %v7736_v20 }
0x1dcc   : > { %7381 = vmatprep.subr.bf16.mxu0 %v8068_v8 }
0x1dcf   : > { %7382 = vmatpush3.bf16.msra.mxu0 %v7740_v23 }
0x1dd0   : > { %7383 = vmatprep.subr.bf16.mxu0 %v8068_v8 }
0x1dd3   : > { %7384 = vmatpush3.bf16.msra.mxu0 %v7744_v27 }
0x1dd4   : > { %7385 = vmatprep.subr.bf16.mxu0 %v8068_v8 }
0x1dd7   : > { %7386 = vmatpush3.bf16.msra.mxu0 %v7748_v30 }
0x1dd8   : > { %7387 = vmatprep.subr.bf16.mxu0 %v8068_v8 }
0x1ddb   : > { %7388 = vmatpush3.bf16.msra.mxu0 %v7752_v33 }
0x1ddc   : > { %7389 = vmatprep.subr.bf16.mxu0 %v8068_v8 }
0x1ddf   : > { %7390 = vmatpush3.bf16.msra.mxu0 %v7756_v37 }
0x1de0   : > { %7391 = vmatprep.subr.bf16.mxu0 %v8068_v8 }
0x1de3   : > { %7392 = vmatpush3.bf16.msra.mxu0 %v7760_v39 }
0x1de4   : > { %7393 = vmatprep.subr.bf16.mxu0 %v8068_v8 }
0x1de7   : > { %7394 = vmatpush3.bf16.msra.mxu0 %v7764_v18 }
0x1de8   : > { %7439 = vmatprep.subr.mxu0 %v8068_v8 }
0x1e8a   : > { %v7061_v5 = vpop.f32.mrf.mxu0 }
0x1e8c   : > { %v7062_v7 = vpop.f32.mrf.mxu0 }
0x1e8d   : > { %v7063_v41 = vadd.f32 %v7062_v7, %v7061_v5 }
0x1e8e   : > { %v7064_v10 = vpop.f32.mrf.mxu0 }
0x1e8f   : > { %v4423_v11 = vadd.f32 %v7063_v41, %v2443_v6 }
0x1e90   : > { %v7065_v12 = vpop.f32.mrf.mxu0 }
0x1e91   : > { %v8650_v13 = vadd.f32 %v4423_v11, %v8634_v60  ;;  %v7737_v60 = vld [vmem:[#allocation2 + $0x810] ss:$12 sps:$4 sm:$0xff]  }
0x1e92   : > { %4704 = vmatpush1.bf16.msra.mxu1 %v7737_v60 }
0x1e93   : > { %4536 = vadd.xlane.f32.xlu0 %v8650_v13  ;;  %4705 = vmatprep.subr.bf16.mxu1 %v7743_v25 }
0x1e96   : > { %4706 = vmatpush1.bf16.msra.mxu1 %v7741_v26 }
0x1e97   : > { %4707 = vmatprep.subr.bf16.mxu1 %v7747_v29 }
0x1e9a   : > { %4708 = vmatpush1.bf16.msra.mxu1 %v7745_v28 }
0x1e9b   : > { %4709 = vmatprep.subr.bf16.mxu1 %v7751_v31 }
0x1e9e   : > { %4710 = vmatpush1.bf16.msra.mxu1 %v7749_v32 }
0x1e9f   : > { %4711 = vmatprep.subr.bf16.mxu1 %v7755_v34 }
0x1ea2   : > { %4712 = vmatpush1.bf16.msra.mxu1 %v7753_v35 }
0x1ea3   : > { %4713 = vmatprep.subr.bf16.mxu1 %v7759_v2 }
0x1ea6   : > { %4714 = vmatpush1.bf16.msra.mxu1 %v7757_v38 }
0x1ea7   : > { %4715 = vmatprep.subr.bf16.mxu1 %v7763_v40 }
0x1eaa   : > { %4716 = vmatpush1.bf16.msra.mxu1 %v7761_v42 }
0x1eab   : > { %7399 = vmatprep.subr.mxu1 %v8068_v8 }
0x1f1c   : > { %v4537_v14 = vpop.xlane.xlu0 %4536 }
0x1f1d   : > { %v4538_v15 = vmul.f32 0.0078125, %v4537_v14  ;;  %v8691_v14 = vld [vmem:[%s8256_s8] ss:$0 sm:$0xff]  ;;  %s8078_s8 = smov [#allocation7]  }
0x1f1f   : > { %v8654_v54 = vsub.f32 %v8650_v13, %v4538_v15 }
0x1f21   : > { %v4540_v16 = vmul.f32 %v8654_v54, %v8654_v54 }
0x1f23   : > { %4541 = vadd.xlane.f32.xlu0 %v4540_v16 }
0x1fac   : > { %v4542_v9 = vpop.xlane.xlu0 %4541 }
0x1fad   : > { %v4543_v43 = vmul.f32 0.007874016, %v4542_v9 }
0x1faf   : > { %7893 = vrsqrt.f32 %v4543_v43  ;;  %vm4546_vm2 = vcmp.eq.f32.partialorder %v4543_v43, inf  ;;  %v4549_v46 = vand.u32 2147483648, %v4543_v43  ;;  %vm4548_vm11 = vcmp.eq.f32.partialorder %v4543_v43, 0.0 }
0x1fbc   : > { %v7894_v44 = vpop.eup %7893 }
0x1fbd   : > { %v4545_v45 = vmul.f32 %v7894_v44, %v4543_v43 }
0x1fbf   : > { %v4547_v47 = vsel %vm4546_vm2, %v4543_v43, %v4545_v45 }
0x1fc0   : > { %v4550_v49 = vsel %vm4548_vm11, %v4549_v46, %v4547_v47 }
0x1fc1   : > { %v4551_v52 = vadd.f32 1e-06, %v4550_v49 }
0x1fc3   : > { %7895 = vrcp.f32 %v4551_v52 }
0x1fd0   : > { %v7896_v53 = vpop.eup %7895 }
0x1fd1   : > { %v4553_v56 = vmul.f32 %v7896_v53, %v8654_v54 }
0x1fd3   : > { %v4554_v24 = vmul.f32 %v4553_v56, %v4532_v55 }
0x1fd5   : > { %v4555_v58 = vadd.f32 %v4554_v24, %v4533_v57 }
0x1fd7   : > { %v4556_v59 = vpack.c.bf16 %v4555_v58, %v4555_v58 }
0x1fd9   : > { %4734 = vmatmul.mubr.bf16.vlgmr.msra.gmra.mxu1 %v4556_v59  ;;  %7396 = vmatmul.mubr.bf16.vlgmr.msra.gmra.mxu0 %v4556_v59 }
0x1fda   : > { %7401 = vmatprep.mubr.msk.f32.mxu1 %vm8070_vm0, %v8068_v8  ;;  %7441 = vmatprep.mubr.msk.f32.mxu0 %vm8070_vm0, %v8068_v8 }
0x2099   : > { %v4735_v1 = vpop.f32.mrf.mxu1  ;;  %v4776_v63 = vpop.f32.mrf.mxu0 }
0x209a   : > { %v8679_v41 = vadd.f32 %v4735_v1, %v4561_v36  ;;  %v8682_v12 = vadd.f32 %v4776_v63, %v4569_v4 }
0x209b   : > { %v4737_v0 = vpop.f32.mrf.mxu1  ;;  %v7397_v3 = vpop.f32.mrf.mxu0 }
0x209c   : > { %v8675_v5 = vadd.f32 %v4737_v0, %v4565_v62 }
0x209d   : > { %v4739_v6 = vpop.f32.mrf.mxu1  ;;  %v4779_v7 = vpop.f32.mrf.mxu0 }
0x209e   : > { %7400 = vmatpush3.xpose.msk.msra.mxu1 %vm598_vm3, %v8675_v5 }
0x209f   : > { %v4740_v10 = vpop.f32.mrf.mxu1  ;;  %v7398_v11 = vpop.f32.mrf.mxu0  ;;  %7404 = vmatprep.subr.mxu1 %v8068_v8 }
0x20a1   : > { %7402 = vmatmul.mubr.msk.f32.vlgmr.msra.gmra.mxu1 %vm598_vm3, %v8679_v41 }
0x20a2   : > { %7405 = vmatpush3.msra.mxu1 %v8682_v12  ;;  %7406 = vmatprep.mubr.msk.f32.mxu1 %vm8070_vm0, %v8068_v8 }
0x20a3   : > { %7409 = vmatprep.subr.mxu1 %v8068_v8 }
0x2161   : > { %v4854_v51 = vpop.f32.mrf.mxu1 }
0x2162   : > { %v4855_v15 = vadd.f32 %v8691_v14, %v4854_v51 }
0x2163   : > { %v7403_v54 = vpop.f32.mrf.mxu1 }
0x2164   : > { %v4858_v16 = vsel %vm675_vm4, %v4855_v15, -inf }
0x2165   : > { %4859 = vmax.xlane.f32.xlu0 %v4858_v16 }
0x217b   : > { %4944 = vrot.lane.b32.xlu0 %v8675_v5, %s8071_s5 }
0x21ee   : > { %v4860_v17 = vpop.xlane.xlu0 %4859 }
0x21ef   : > { %v4861_v19 = vsub.f32 %v4855_v15, %v4860_v17 }
0x21f1   : > { %v4862_v20 = vmul.f32 1.442695, %v4861_v19 }
0x21f2   : > { %v4945_v27 = vpop.permute.xlu0 %4944 }
0x21f3   : > { %7897 = vpow2.f32 %v4862_v20 }
0x2200   : > { %v7898_v21 = vpop.eup %7897 }
0x2201   : > { %v4864_v60 = vsel %vm675_vm4, %v7898_v21, 0.0 }
0x2202   : > { %4865 = vadd.xlane.f32.xlu1 %v4864_v60 }
0x2213   : > { %4942 = vrot.lane.b32.xlu1 %v8679_v41, %s8071_s5 }
0x228b   : > { %v4866_v23 = vpop.xlane.xlu1 %4865 }
0x228c   : > { %7899 = vrcp.f32 %v4866_v23 }
0x228f   : > { %v4943_v28 = vpop.permute.xlu1 %4942 }
0x2299   : > { %v7900_v25 = vpop.eup %7899 }
0x229a   : > { %v4868_v26 = vmul.f32 %v7900_v25, %v7898_v21 }
0x229c   : > { %7407 = vmatmul.mubr.msk.f32.vlgmr.msra.gmra.mxu1 %vm675_vm4, %v4868_v26 }
0x229d   : > { %7410 = vmatpush3.xpose.msk.msra.mxu1 %vm598_vm3, %v4945_v27  ;;  %7411 = vmatprep.mubr.msk.f32.mxu1 %vm8070_vm0, %v8068_v8 }
0x229e   : > { %7414 = vmatprep.subr.mxu1 %v8068_v8 }
0x22a0   : > { %7412 = vmatmul.mubr.msk.f32.vlgmr.msra.gmra.mxu1 %vm598_vm3, %v4943_v28 }
0x22a1   : > { %7416 = vmatprep.mubr.msk.f32.mxu1 %vm8070_vm0, %v8068_v8 }
0x235c   : > { %v8708_v29 = vpop.f32.mrf.mxu1 }
0x235e   : > { %v7408_v30 = vpop.f32.mrf.mxu1 }
0x2360   : > { %v5016_v31 = vpop.f32.mrf.mxu1 }
0x2361   : > { %v5017_v32 = vadd.f32 %v8691_v14, %v5016_v31 }
0x2362   : > { %v7413_v33 = vpop.f32.mrf.mxu1 }
0x2363   : > { %v5020_v34 = vsel %vm675_vm4, %v5017_v32, -inf }
0x2364   : > { %5021 = vmax.xlane.f32.xlu1 %v5020_v34 }
0x2375   : > { %5110 = vrot.lane.b32.xlu1 %v8675_v5, %s8072_s9 }
0x2379   : > { %5108 = vrot.lane.b32.xlu1 %v8679_v41, %s8072_s9 }
0x23ed   : > { %v5022_v35 = vpop.xlane.xlu1 %5021 }
0x23ee   : > { %v5023_v37 = vsub.f32 %v5017_v32, %v5022_v35 }
0x23f0   : > { %v5024_v2 = vmul.f32 1.442695, %v5023_v37 }
0x23f1   : > { %v5111_v9 = vpop.permute.xlu1 %5110 }
0x23f2   : > { %7901 = vpow2.f32 %v5024_v2 }
0x23f5   : > { %v5109_v44 = vpop.permute.xlu1 %5108 }
0x23ff   : > { %v7902_v38 = vpop.eup %7901 }
0x2400   : > { %v5026_v39 = vsel %vm675_vm4, %v7902_v38, 0.0 }
0x2401   : > { %5027 = vadd.xlane.f32.xlu0 %v5026_v39 }
0x2417   : > { %5032 = vrot.lane.b32.xlu0 %v8682_v12, %s8071_s5 }
0x248a   : > { %v5028_v40 = vpop.xlane.xlu0 %5027 }
0x248b   : > { %7903 = vrcp.f32 %v5028_v40 }
0x248e   : > { %v5033_v42 = vpop.permute.xlu0 %5032 }
0x248f   : > { %7415 = vmatpush3.msra.mxu1 %v5033_v42 }
0x2490   : > { %7419 = vmatprep.subr.mxu1 %v8068_v8 }
0x2498   : > { %v7904_v18 = vpop.eup %7903 }
0x2499   : > { %v5030_v43 = vmul.f32 %v7904_v18, %v7902_v38 }
0x249b   : > { %7417 = vmatmul.mubr.msk.f32.vlgmr.msra.gmra.mxu1 %vm675_vm4, %v5030_v43 }
0x249c   : > { %7420 = vmatpush3.xpose.msk.msra.mxu1 %vm598_vm3, %v5111_v9  ;;  %7421 = vmatprep.mubr.msk.f32.mxu1 %vm8070_vm0, %v8068_v8 }
0x249d   : > { %7424 = vmatprep.subr.mxu1 %v8068_v8 }
0x249f   : > { %7422 = vmatmul.mubr.msk.f32.vlgmr.msra.gmra.mxu1 %vm598_vm3, %v5109_v44 }
0x24a0   : > { %7426 = vmatprep.mubr.msk.f32.mxu1 %vm8070_vm0, %v8068_v8 }
0x255b   : > { %v8728_v45 = vpop.f32.mrf.mxu1 }
0x255d   : > { %v7418_v46 = vpop.f32.mrf.mxu1 }
0x255f   : > { %v5182_v47 = vpop.f32.mrf.mxu1 }
0x2560   : > { %v5183_v49 = vadd.f32 %v8691_v14, %v5182_v47 }
0x2561   : > { %v7423_v52 = vpop.f32.mrf.mxu1 }
0x2562   : > { %v5186_v53 = vsel %vm675_vm4, %v5183_v49, -inf }
0x2563   : > { %5187 = vmax.xlane.f32.xlu1 %v5186_v53 }
0x2574   : > { %5275 = vrot.lane.b32.xlu1 %v8675_v5, %s8073_s10 }
0x2578   : > { %5273 = vrot.lane.b32.xlu1 %v8679_v41, %s8073_s10 }
0x257c   : > { %5438 = vrot.lane.b32.xlu1 %v8679_v41, %s8074_s11 }
0x2580   : > { %5603 = vrot.lane.b32.xlu1 %v8679_v41, %s8075_s12 }
0x2584   : > { %5768 = vrot.lane.b32.xlu1 %v8679_v41, %s8076_s13 }
0x2588   : > { %5933 = vrot.lane.b32.xlu1 %v8679_v41, %s8077_s14 }
0x25ec   : > { %v5188_v55 = vpop.xlane.xlu1 %5187 }
0x25ed   : > { %v5189_v56 = vsub.f32 %v5183_v49, %v5188_v55 }
0x25ef   : > { %v5190_v57 = vmul.f32 1.442695, %v5189_v56 }
0x25f0   : > { %v5276_v59 = vpop.permute.xlu1 %5275 }
0x25f1   : > { %7905 = vpow2.f32 %v5190_v57 }
0x25f4   : > { %v5274_v61 = vpop.permute.xlu1 %5273 }
0x25f8   : > { %v5439_v63 = vpop.permute.xlu1 %5438 }
0x25fc   : > { %v5604_v0 = vpop.permute.xlu1 %5603 }
0x25fe   : > { %v7906_v24 = vpop.eup %7905 }
0x25ff   : > { %v5192_v58 = vsel %vm675_vm4, %v7906_v24, 0.0 }
0x2600   : > { %5193 = vadd.xlane.f32.xlu0 %v5192_v58  ;;  %v5769_v7 = vpop.permute.xlu1 %5768 }
0x2604   : > { %v5934_v10 = vpop.permute.xlu1 %5933 }
0x2616   : > { %5197 = vrot.lane.b32.xlu0 %v8682_v12, %s8072_s9 }
0x261a   : > { %5440 = vrot.lane.b32.xlu0 %v8675_v5, %s8074_s11 }
0x261e   : > { %5605 = vrot.lane.b32.xlu0 %v8675_v5, %s8075_s12 }
0x2622   : > { %5770 = vrot.lane.b32.xlu0 %v8675_v5, %s8076_s13 }
0x2626   : > { %5935 = vrot.lane.b32.xlu0 %v8675_v5, %s8077_s14 }
0x2689   : > { %v5194_v62 = vpop.xlane.xlu0 %5193 }
0x268a   : > { %7907 = vrcp.f32 %v5194_v62 }
0x268d   : > { %v5198_v1 = vpop.permute.xlu0 %5197 }
0x268e   : > { %7425 = vmatpush3.msra.mxu1 %v5198_v1 }
0x268f   : > { %7429 = vmatprep.subr.mxu1 %v8068_v8 }
0x2691   : > { %v5441_v36 = vpop.permute.xlu0 %5440 }
0x2692   : > { %7440 = vmatpush3.xpose.msk.msra.mxu0 %vm598_vm3, %v5441_v36 }
0x2693   : > { %7449 = vmatprep.subr.mxu0 %v8068_v8 }
0x2695   : > { %v5606_v3 = vpop.permute.xlu0 %5605  ;;  %7442 = vmatmul.mubr.msk.f32.vlgmr.msra.gmra.mxu0 %vm598_vm3, %v5439_v63 }
0x2696   : > { %7450 = vmatpush3.xpose.msk.msra.mxu0 %vm598_vm3, %v5606_v3  ;;  %7451 = vmatprep.mubr.msk.f32.mxu0 %vm8070_vm0, %v8068_v8 }
0x2697   : > { %v7908_v4 = vpop.eup %7907  ;;  %7459 = vmatprep.subr.mxu0 %v8068_v8 }
0x2698   : > { %v5196_v5 = vmul.f32 %v7908_v4, %v7906_v24 }
0x2699   : > { %v5771_v6 = vpop.permute.xlu0 %5770  ;;  %7452 = vmatmul.mubr.msk.f32.vlgmr.msra.gmra.mxu0 %vm598_vm3, %v5604_v0 }
0x269a   : > { %7427 = vmatmul.mubr.msk.f32.vlgmr.msra.gmra.mxu1 %vm675_vm4, %v5196_v5  ;;  %7460 = vmatpush3.xpose.msk.msra.mxu0 %vm598_vm3, %v5771_v6 }
0x269b   : > { %7430 = vmatpush3.xpose.msk.msra.mxu1 %vm598_vm3, %v5276_v59  ;;  %7461 = vmatprep.mubr.msk.f32.mxu0 %vm8070_vm0, %v8068_v8 }
0x269c   : > { %7431 = vmatprep.mubr.msk.f32.mxu1 %vm8070_vm0, %v8068_v8  ;;  %7469 = vmatprep.subr.mxu0 %v8068_v8 }
0x269d   : > { %v5936_v41 = vpop.permute.xlu0 %5935  ;;  %7462 = vmatmul.mubr.msk.f32.vlgmr.msra.gmra.mxu0 %vm598_vm3, %v5769_v7  ;;  %7434 = vmatprep.subr.mxu1 %v8068_v8 }
0x269e   : > { %7432 = vmatmul.mubr.msk.f32.vlgmr.msra.gmra.mxu1 %vm598_vm3, %v5274_v61  ;;  %7470 = vmatpush3.xpose.msk.msra.mxu0 %vm598_vm3, %v5936_v41 }
0x269f   : > { %7471 = vmatprep.mubr.msk.f32.mxu0 %vm8070_vm0, %v8068_v8  ;;  %7436 = vmatprep.mubr.msk.f32.mxu1 %vm8070_vm0, %v8068_v8 }
0x26a0   : > { %7479 = vmatprep.subr.bf16.mxu0 %v8068_v8 }
0x26a1   : > { %7472 = vmatmul.mubr.msk.f32.vlgmr.msra.gmra.mxu0 %vm598_vm3, %v5934_v10 }
0x26a2   : > { %7495 = vmatprep.mubr.msk.bf16.mxu0 %vm8070_vm0, %v8068_v8 }
0x2755   : > { %v5512_v11 = vpop.f32.mrf.mxu0 }
0x2756   : > { %v5513_v51 = vadd.f32 %v8691_v14, %v5512_v11 }
0x2757   : > { %v7443_v15 = vpop.f32.mrf.mxu0 }
0x2758   : > { %v5516_v54 = vsel %vm675_vm4, %v5513_v51, -inf }
0x2759   : > { %5517 = vmax.xlane.f32.xlu1 %v5516_v54  ;;  %v5677_v16 = vpop.f32.mrf.mxu0 }
0x275a   : > { %v5269_v17 = vpop.f32.mrf.mxu1  ;;  %v5678_v27 = vadd.f32 %v8691_v14, %v5677_v16 }
0x275b   : > { %v7453_v19 = vpop.f32.mrf.mxu0 }
0x275c   : > { %v7428_v20 = vpop.f32.mrf.mxu1  ;;  %v5681_v33 = vsel %vm675_vm4, %v5678_v27, -inf }
0x275d   : > { %v5842_v21 = vpop.f32.mrf.mxu0 }
0x275e   : > { %v5347_v60 = vpop.f32.mrf.mxu1  ;;  %v5843_v32 = vadd.f32 %v8691_v14, %v5842_v21 }
0x275f   : > { %v5348_v23 = vadd.f32 %v8691_v14, %v5347_v60  ;;  %v7463_v25 = vpop.f32.mrf.mxu0  ;;  %v7765_v60 = vld [vmem:[#allocation2 + $0x8e8] ss:$12 sps:$4 sm:$0xff]  }
0x2760   : > { %v7433_v26 = vpop.f32.mrf.mxu1  ;;  %v5846_v35 = vsel %vm675_vm4, %v5843_v32, -inf  ;;  %7480 = vmatpush3.bf16.msra.mxu0 %v7765_v60  ;;  %v7767_v25 = vld [vmem:[#allocation2 + $0x8b8] ss:$12 sps:$4 sm:$0xff]   ;;  %v7799_v60 = vld [vmem:[#allocation2 + $0xb10] ss:$12 sps:$4 sm:$0xff]  }
0x2761   : > { %v6007_v28 = vpop.f32.mrf.mxu0  ;;  %v5351_v30 = vsel %vm675_vm4, %v5348_v23, -inf  ;;  %7481 = vmatprep.subr.bf16.mxu0 %v8068_v8  ;;  %v7768_v26 = vld [vmem:[#allocation2 + $0x8a0] ss:$12 sps:$4 sm:$0xff]  }
0x2762   : > { %5352 = vmax.xlane.f32.xlu0 %v5351_v30  ;;  %v6008_v34 = vadd.f32 %v8691_v14, %v6007_v28  ;;  %v7771_v28 = vld [vmem:[#allocation2 + $0x858] ss:$12 sps:$4 sm:$0xff]  }
0x2763   : > { %v7473_v31 = vpop.f32.mrf.mxu0 }
0x2764   : > { %v6011_v37 = vsel %vm675_vm4, %v6008_v34, -inf }
0x2766   : > { %5682 = vmax.xlane.f32.xlu0 %v5681_v33 }
0x276a   : > { %5847 = vmax.xlane.f32.xlu0 %v5846_v35 }
0x276e   : > { %6012 = vmax.xlane.f32.xlu0 %v6011_v37 }
0x27e2   : > { %v5518_v2 = vpop.xlane.xlu1 %5517 }
0x27e3   : > { %v5519_v38 = vsub.f32 %v5513_v51, %v5518_v2 }
0x27e5   : > { %v5520_v39 = vmul.f32 1.442695, %v5519_v38 }
0x27e7   : > { %7909 = vpow2.f32 %v5520_v39 }
0x27eb   : > { %v5353_v40 = vpop.xlane.xlu0 %5352 }
0x27ec   : > { %v5354_v61 = vsub.f32 %v5348_v23, %v5353_v40  ;;  %v7766_v23 = vld [vmem:[#allocation2 + $0x8d0] ss:$12 sps:$4 sm:$0xff]  }
0x27ed   : > { %7482 = vmatpush3.bf16.msra.mxu0 %v7766_v23  ;;  %v7800_v23 = vld [vmem:[#allocation2 + $0xa50] ss:$12 sps:$4 sm:$0xff]  }
0x27ee   : > { %v5355_v62 = vmul.f32 1.442695, %v5354_v61  ;;  %7483 = vmatprep.subr.bf16.mxu0 %v8068_v8 }
0x27ef   : > { %v5683_v42 = vpop.xlane.xlu0 %5682 }
0x27f0   : > { %v5684_v18 = vsub.f32 %v5678_v27, %v5683_v42  ;;  %v7769_v27 = vld [vmem:[#allocation2 + $0x888] ss:$12 sps:$4 sm:$0xff]  }
0x27f1   : > { %7484 = vmatpush3.bf16.msra.mxu0 %v7767_v25  ;;  %v7801_v25 = vld [vmem:[#allocation2 + $0xaf8] ss:$12 sps:$4 sm:$0xff]  }
0x27f2   : > { %v5685_v9 = vmul.f32 1.442695, %v5684_v18  ;;  %7485 = vmatprep.subr.bf16.mxu0 %v8068_v8 }
0x27f3   : > { %v5848_v43 = vpop.xlane.xlu0 %5847 }
0x27f4   : > { %v7910_v44 = vpop.eup %7909  ;;  %7911 = vpow2.f32 %v5685_v9  ;;  %v5849_v46 = vsub.f32 %v5843_v32, %v5848_v43  ;;  %v7772_v32 = vld [vmem:[#allocation2 + $0x840] ss:$12 sps:$4 sm:$0xff]  }
0x27f5   : > { %v5522_v14 = vsel %vm675_vm4, %v7910_v44, 0.0  ;;  %7486 = vmatpush3.bf16.msra.mxu0 %v7768_v26  ;;  %v7802_v26 = vld [vmem:[#allocation2 + $0xa38] ss:$12 sps:$4 sm:$0xff]  }
0x27f6   : > { %v5850_v47 = vmul.f32 1.442695, %v5849_v46  ;;  %5523 = vadd.xlane.f32.xlu0 %v5522_v14  ;;  %7487 = vmatprep.subr.bf16.mxu0 %v8068_v8 }
0x27f7   : > { %v6013_v49 = vpop.xlane.xlu0 %6012 }
0x27f8   : > { %7913 = vpow2.f32 %v5850_v47  ;;  %v6014_v52 = vsub.f32 %v6008_v34, %v6013_v49 }
0x27f9   : > { %7488 = vmatpush3.bf16.msra.mxu0 %v7769_v27  ;;  %v7803_v27 = vld [vmem:[#allocation2 + $0xae0] ss:$12 sps:$4 sm:$0xff]  }
0x27fa   : > { %v6015_v53 = vmul.f32 1.442695, %v6014_v52  ;;  %7489 = vmatprep.subr.bf16.mxu0 %v8068_v8 }
0x27fc   : > { %7915 = vpow2.f32 %v6015_v53 }
0x27fd   : > { %7917 = vpow2.f32 %v5355_v62 }
0x2801   : > { %v7912_v55 = vpop.eup %7911 }
0x2802   : > { %v5687_v56 = vsel %vm675_vm4, %v7912_v55, 0.0 }
0x2803   : > { %5688 = vadd.xlane.f32.xlu1 %v5687_v56 }
0x2805   : > { %v7914_v57 = vpop.eup %7913 }
0x2806   : > { %v5852_v24 = vsel %vm675_vm4, %v7914_v57, 0.0 }
0x2807   : > { %5853 = vadd.xlane.f32.xlu0 %v5852_v24  ;;  %v4530_v24 = vld [vmem:[#allocation5 + $0x29] ss:$0 sm:$0xff] }
0x2809   : > { %v7916_v58 = vpop.eup %7915 }
0x280a   : > { %v6017_v59 = vsel %vm675_vm4, %v7916_v58, 0.0  ;;  %v7918_v1 = vpop.eup %7917 }
0x280b   : > { %6018 = vadd.xlane.f32.xlu1 %v6017_v59  ;;  %v5357_v63 = vsel %vm675_vm4, %v7918_v1, 0.0 }
0x281c   : > { %5527 = vrot.lane.b32.xlu1 %v8682_v12, %s8074_s11 }
0x281d   : > { %5362 = vrot.lane.b32.xlu0 %v8682_v12, %s8073_s10 }
0x2821   : > { %6022 = vrot.lane.b32.xlu0 %v8682_v12, %s8077_s14 }
0x2825   : > { %6103 = vrot.lane.b32.xlu0 %v5269_v17, %s8076_s13 }
0x2840   : > { %5358 = vadd.xlane.f32.xlu1 %v5357_v63 }
0x2851   : > { %5692 = vrot.lane.b32.xlu1 %v8682_v12, %s8075_s12 }
0x2855   : > { %5857 = vrot.lane.b32.xlu1 %v8682_v12, %s8076_s13 }
0x2859   : > { %6099 = vrot.lane.b32.xlu1 %v8728_v45, %s8077_s14 }
0x287f   : > { %v5524_v36 = vpop.xlane.xlu0 %5523 }
0x288c   : > { %v5689_v4 = vpop.xlane.xlu1 %5688 }
0x2890   : > { %v5854_v0 = vpop.xlane.xlu0 %5853 }
0x2894   : > { %v5363_v3 = vpop.permute.xlu0 %5362  ;;  %v6019_v5 = vpop.xlane.xlu1 %6018 }
0x2895   : > { %7435 = vmatpush3.msra.mxu1 %v5363_v3 }
0x2896   : > { %7444 = vmatprep.subr.mxu1 %v8068_v8 }
0x2898   : > { %v5528_v6 = vpop.permute.xlu1 %5527  ;;  %v6023_v20 = vpop.permute.xlu0 %6022 }
0x28c9   : > { %v5359_v7 = vpop.xlane.xlu1 %5358 }
0x28ca   : > { %7919 = vrcp.f32 %v5359_v7  ;;  %v7781_v7 = vld [vmem:[#allocation2 + $0x97c] ss:$12 sps:$4 sm:$0xff]  }
0x28cb   : > { %7921 = vrcp.f32 %v5524_v36 }
0x28cc   : > { %7923 = vrcp.f32 %v5689_v4  ;;  %v7775_v4 = vld [vmem:[#allocation2 + $0x9ac] ss:$12 sps:$4 sm:$0xff]  }
0x28cd   : > { %7925 = vrcp.f32 %v5854_v0  ;;  %v5693_v45 = vpop.permute.xlu1 %5692 }
0x28ce   : > { %7927 = vrcp.f32 %v6019_v5  ;;  %v7773_v5 = vld [vmem:[#allocation2 + $0x9a8] ss:$12 sps:$4 sm:$0xff]  }
0x28d1   : > { %v5858_v16 = vpop.permute.xlu1 %5857 }
0x28d5   : > { %v6100_v42 = vpop.permute.xlu1 %6099 }
0x28d6   : > { %v6126_v9 = vsel %vm598_vm3, %v8708_v29, %v6100_v42 }
0x28d7   : > { %v7920_v41 = vpop.eup %7919 }
0x28d8   : > { %v5361_v12 = vmul.f32 %v7920_v41, %v7918_v1  ;;  %v7922_v10 = vpop.eup %7921  ;;  %v7779_v41 = vld [vmem:[#allocation2 + $0x978] ss:$12 sps:$4 sm:$0xff]  }
0x28d9   : > { %v5526_v11 = vmul.f32 %v7922_v10, %v7910_v44  ;;  %v7924_v51 = vpop.eup %7923  ;;  %v7784_v10 = vld [vmem:[#allocation2 + $0x964] ss:$12 sps:$4 sm:$0xff]  }
0x28da   : > { %7437 = vmatmul.mubr.msk.f32.vlgmr.msra.gmra.mxu1 %vm675_vm4, %v5361_v12  ;;  %v5691_v15 = vmul.f32 %v7924_v51, %v7912_v55  ;;  %v7926_v54 = vpop.eup %7925  ;;  %v7782_v12 = vld [vmem:[#allocation2 + $0x960] ss:$12 sps:$4 sm:$0xff]  }
0x28db   : > { %7445 = vmatpush3.msra.mxu1 %v5528_v6  ;;  %7446 = vmatprep.mubr.msk.f32.mxu1 %vm8070_vm0, %v8068_v8  ;;  %v5856_v17 = vmul.f32 %v7926_v54, %v7914_v57  ;;  %v7928_v19 = vpop.eup %7927  ;;  %v7778_v6 = vld [vmem:[#allocation2 + $0x994] ss:$12 sps:$4 sm:$0xff]   ;;  %v7793_v54 = vld [vmem:[#allocation2 + $0x91c] ss:$12 sps:$4 sm:$0xff]  }
0x28dc   : > { %7454 = vmatprep.subr.mxu1 %v8068_v8  ;;  %v6021_v21 = vmul.f32 %v7928_v19, %v7916_v58  ;;  %v7790_v51 = vld [vmem:[#allocation2 + $0x934] ss:$12 sps:$4 sm:$0xff]  }
0x28dd   : > { %v7794_v19 = vld [vmem:[#allocation2 + $0x900] ss:$12 sps:$4 sm:$0xff]  }
0x28de   : > { %7447 = vmatmul.mubr.msk.f32.vlgmr.msra.gmra.mxu1 %vm675_vm4, %v5526_v11  ;;  %v7785_v11 = vld [vmem:[#allocation2 + $0x948] ss:$12 sps:$4 sm:$0xff]  }
0x28df   : > { %7455 = vmatpush3.msra.mxu1 %v5693_v45  ;;  %7456 = vmatprep.mubr.msk.f32.mxu1 %vm8070_vm0, %v8068_v8  ;;  %v7787_v45 = vld [vmem:[#allocation2 + $0x94c] ss:$12 sps:$4 sm:$0xff]  }
0x28e0   : > { %7464 = vmatprep.subr.mxu1 %v8068_v8 }
0x28e2   : > { %7457 = vmatmul.mubr.msk.f32.vlgmr.msra.gmra.mxu1 %vm675_vm4, %v5691_v15  ;;  %v7788_v15 = vld [vmem:[#allocation2 + $0x930] ss:$12 sps:$4 sm:$0xff]  }
0x28e3   : > { %7465 = vmatpush3.msra.mxu1 %v5858_v16  ;;  %7466 = vmatprep.mubr.msk.f32.mxu1 %vm8070_vm0, %v8068_v8  ;;  %v7791_v16 = vld [vmem:[#allocation2 + $0x918] ss:$12 sps:$4 sm:$0xff]  }
0x28e4   : > { %7474 = vmatprep.subr.mxu1 %v8068_v8 }
0x28e6   : > { %7467 = vmatmul.mubr.msk.f32.vlgmr.msra.gmra.mxu1 %vm675_vm4, %v5856_v17  ;;  %v7796_v17 = vld [vmem:[#allocation2 + $0x904] ss:$12 sps:$4 sm:$0xff]  }
0x28e7   : > { %7475 = vmatpush3.msra.mxu1 %v6023_v20  ;;  %7476 = vmatprep.mubr.msk.f32.mxu1 %vm8070_vm0, %v8068_v8  ;;  %v7797_v20 = vld [vmem:[#allocation2 + $0xb28] ss:$12 sps:$4 sm:$0xff]  }
0x28e8   : > { %6335 = vmatprep.subr.bf16.mxu1 %v7775_v4  ;;  %v4531_v4 = vld [vmem:[#allocation5 + $0x1a] ss:$0 sm:$0xff] }
0x28ea   : > { %7477 = vmatmul.mubr.msk.f32.vlgmr.msra.gmra.mxu1 %vm675_vm4, %v6021_v21  ;;  %v7798_v21 = vld [vmem:[#allocation2 + $0xa68] ss:$12 sps:$4 sm:$0xff]  }
0x28eb   : > { %6367 = vmatprep.mubr.bf16.mxu1 %v8069_v22  ;;  %v7770_v22 = vld [vmem:[#allocation2 + $0x870] ss:$12 sps:$4 sm:$0xff]   ;;  %6336 = vmatpush1.bf16.msra.mxu1 %v7773_v5 }
0x28ec   : > { %7490 = vmatpush3.bf16.msra.mxu0 %v7770_v22  ;;  %6337 = vmatprep.subr.bf16.mxu1 %v7778_v6  ;;  %v7804_v22 = vld [vmem:[#allocation2 + $0xa20] ss:$12 sps:$4 sm:$0xff]  }
0x28ed   : > { %7491 = vmatprep.subr.bf16.mxu0 %v8068_v8 }
0x28f0   : > { %7492 = vmatpush3.bf16.msra.mxu0 %v7771_v28  ;;  %v7805_v28 = vld [vmem:[#allocation2 + $0xac8] ss:$12 sps:$4 sm:$0xff]  }
0x28f1   : > { %7493 = vmatprep.subr.bf16.mxu0 %v8068_v8  ;;  %v6104_v8 = vpop.permute.xlu0 %6103 }
0x28f2   : > { %v6127_v44 = vsel %vm1945_vm5, %v6126_v9, %v6104_v8  ;;  %v4534_v8 = vld [vmem:[#allocation5 + $0x1b] ss:$0 sm:$0xff]  ;;  %v4535_v9 = vld [vmem:[#allocation5 + $0x23] ss:$0 sm:$0xff] }
0x28f4   : > { %7494 = vmatpush3.bf16.msra.mxu0 %v7772_v32  ;;  %v7808_v32 = vld [vmem:[#allocation2 + $0x9f0] ss:$12 sps:$4 sm:$0xff]  }
0x28f5   : > { %7117 = vmatprep.subr.bf16.mxu0 %v7797_v20 }
0x299a   : > { %v5434_v30 = vpop.f32.mrf.mxu1 }
0x299b   : > { %6107 = vrot.lane.b32.xlu1 %v5434_v30, %s8075_s12  ;;  %v7806_v30 = vld [vmem:[#allocation2 + $0xa08] ss:$12 sps:$4 sm:$0xff]  }
0x299c   : > { %v7438_v31 = vpop.f32.mrf.mxu1 }
0x299d   : > { %v7807_v31 = vld [vmem:[#allocation2 + $0xab0] ss:$12 sps:$4 sm:$0xff]  }
0x299e   : > { %v5599_v33 = vpop.f32.mrf.mxu1 }
0x299f   : > { %6111 = vrot.lane.b32.xlu0 %v5599_v33, %s8074_s11 }
0x29a0   : > { %v7448_v34 = vpop.f32.mrf.mxu1 }
0x29a2   : > { %v5764_v35 = vpop.f32.mrf.mxu1 }
0x29a3   : > { %6115 = vrot.lane.b32.xlu1 %v5764_v35, %s8073_s10 }
0x29a4   : > { %v7458_v37 = vpop.f32.mrf.mxu1 }
0x29a6   : > { %v5929_v2 = vpop.f32.mrf.mxu1 }
0x29a7   : > { %6119 = vrot.lane.b32.xlu0 %v5929_v2, %s8072_s9  ;;  %s7996_s9 = sshll.u32 %s8078_s8, 4  ;;  %s7997_s9 = int_to_ptr.vmem [resolvable:$false] %s7996_s9 }
0x29a8   : > { %v7468_v38 = vpop.f32.mrf.mxu1  ;;  %s7998_s19 = scalar_lea.vmem %s7997_s9, 256  ;;  %p7999_p11 = scmp.lt.s32.totalorder %s6555_s28, %s7997_s9 }
0x29a9   : > { %p8000_p0 = scmp.lt.s32.totalorder %s7998_s19, %s7992_s7 }
0x29aa   : > { %v6094_v39 = vpop.f32.mrf.mxu1 }
0x29ab   : > { %6123 = vrot.lane.b32.xlu1 %v6094_v39, %s8071_s5  ;;  %s6552_s5 = scalar_lea.hbm %s8901_s4, %s6920_s23  ;;  %p8001_p1 = por %p8000_p0, %p7999_p11 }
0x29ac   : > { %v7478_v40 = vpop.f32.mrf.mxu1 }
0x29ad   : > { %p8002_p3 = pnand %p8001_p1, %p7995_p8 }
0x2a0d   : > { %v6108_v18 = vpop.permute.xlu1 %6107 }
0x2a0e   : > { %v6128_v14 = vsel %vm1947_vm6, %v6127_v44, %v6108_v18 }
0x2a11   : > { %v6112_v43 = vpop.permute.xlu0 %6111 }
0x2a12   : > { %v6129_v49 = vsel %vm1949_vm7, %v6128_v14, %v6112_v43  ;;  %v7809_v14 = vld [vmem:[#allocation2 + $0xa98] ss:$12 sps:$4 sm:$0xff]  }
0x2a15   : > { %v6116_v46 = vpop.permute.xlu1 %6115 }
0x2a16   : > { %v6130_v52 = vsel %vm1951_vm8, %v6129_v49, %v6116_v46  ;;  %v7811_v49 = vld [vmem:[#allocation2 + $0xa80] ss:$12 sps:$4 sm:$0xff]  }
0x2a19   : > { %v6120_v47 = vpop.permute.xlu0 %6119 }
0x2a1a   : > { %v6131_v53 = vsel %vm1953_vm9, %v6130_v52, %v6120_v47  ;;  %v7810_v47 = vld [vmem:[#allocation2 + $0x9d8] ss:$12 sps:$4 sm:$0xff]   ;;  %v7812_v52 = vld [vmem:[#allocation2 + $0x9c0] ss:$12 sps:$4 sm:$0xff]  }
0x2a1d   : > { %v6124_v55 = vpop.permute.xlu1 %6123 }
0x2a1e   : > { %v6132_v56 = vsel %vm1955_vm10, %v6131_v53, %v6124_v55  ;;  %v4529_v53 = vld [vmem:[#allocation5 + $0x19] ss:$8 sm:$0x3] }
0x2a1f   : > { %v6133_v57 = vpack.c.bf16 %v6132_v56, %v6132_v56  ;;  %v6248_v55 = vrot.slane %v4529_v53, %v8228_v50  ;;  %v6252_v56 = vrot.slane %v4529_v53, %v8226_v48 }
0x2a21   : > { %7496 = vmatmul.mubr.bf16.vlgmr.msra.gmra.mxu0 %v6133_v57 }
0x2a22   : > { %7118 = vmatpush3.bf16.msra.mxu0 %v7798_v21  ;;  %v6517_v21 = vld [vmem:[#allocation5 + $0x1c] ss:$0 sm:$0xff] }
0x2a23   : > { %7119 = vmatprep.subr.bf16.mxu0 %v7799_v60 }
0x2a26   : > { %7120 = vmatpush3.bf16.msra.mxu0 %v7800_v23  ;;  %v6518_v23 = vld [vmem:[#allocation5 + $0x24] ss:$0 sm:$0xff] }
0x2a27   : > { %7121 = vmatprep.subr.bf16.mxu0 %v7801_v25 }
0x2a2a   : > { %7122 = vmatpush3.bf16.msra.mxu0 %v7802_v26 }
0x2a2b   : > { %7123 = vmatprep.subr.bf16.mxu0 %v7803_v27 }
0x2a2e   : > { %7124 = vmatpush3.bf16.msra.mxu0 %v7804_v22 }
0x2a2f   : > { %7125 = vmatprep.subr.bf16.mxu0 %v7805_v28 }
0x2a32   : > { %7126 = vmatpush3.bf16.msra.mxu0 %v7806_v30 }
0x2a33   : > { %7127 = vmatprep.subr.bf16.mxu0 %v7807_v31 }
0x2a36   : > { %7128 = vmatpush3.bf16.msra.mxu0 %v7808_v32 }
0x2a37   : > { %7129 = vmatprep.subr.bf16.mxu0 %v7809_v14 }
0x2a3a   : > { %7130 = vmatpush3.bf16.msra.mxu0 %v7810_v47 }
0x2a3b   : > { %7131 = vmatprep.subr.bf16.mxu0 %v7811_v49 }
0x2a3e   : > { %7132 = vmatpush3.bf16.msra.mxu0 %v7812_v52 }
0x2ae1   : > { %v6216_v29 = vpop.f32.mrf.mxu0 }
0x2ae2   : > { %v6217_v58 = vadd.f32 %v6216_v29, %v4530_v24 }
0x2ae3   : > { %v7497_v59 = vpop.f32.mrf.mxu0 }
0x2ae4   : > { %v8851_v61 = vadd.f32 %v6217_v58, %v8650_v13  ;;  %v7776_v13 = vld [vmem:[#allocation2 + $0x990] ss:$12 sps:$4 sm:$0xff]  }
0x2ae5   : > { %v6219_v62 = vpop.f32.mrf.mxu0  ;;  %6338 = vmatpush1.bf16.msra.mxu1 %v7776_v13 }
0x2ae6   : > { %6223 = vadd.xlane.f32.xlu0 %v8851_v61  ;;  %6339 = vmatprep.subr.bf16.mxu1 %v7781_v7 }
0x2ae7   : > { %v7498_v1 = vpop.f32.mrf.mxu0 }
0x2ae9   : > { %6340 = vmatpush1.bf16.msra.mxu1 %v7779_v41 }
0x2aea   : > { %6341 = vmatprep.subr.bf16.mxu1 %v7784_v10 }
0x2aed   : > { %6342 = vmatpush1.bf16.msra.mxu1 %v7782_v12 }
0x2aee   : > { %6343 = vmatprep.subr.bf16.mxu1 %v7787_v45 }
0x2af1   : > { %6344 = vmatpush1.bf16.msra.mxu1 %v7785_v11 }
0x2af2   : > { %6345 = vmatprep.subr.bf16.mxu1 %v7790_v51 }
0x2af5   : > { %6346 = vmatpush1.bf16.msra.mxu1 %v7788_v15 }
0x2af6   : > { %6347 = vmatprep.subr.bf16.mxu1 %v7793_v54 }
0x2af9   : > { %6348 = vmatpush1.bf16.msra.mxu1 %v7791_v16 }
0x2afa   : > { %6349 = vmatprep.subr.bf16.mxu1 %v7796_v17 }
0x2afd   : > { %6350 = vmatpush1.bf16.msra.mxu1 %v7794_v19 }
0x2b6f   : > { %v6224_v63 = vpop.xlane.xlu0 %6223 }
0x2b70   : > { %v6225_v36 = vmul.f32 0.0078125, %v6224_v63 }
0x2b72   : > { %v8855_v0 = vsub.f32 %v8851_v61, %v6225_v36 }
0x2b74   : > { %v6227_v3 = vmul.f32 %v8855_v0, %v8855_v0 }
0x2b76   : > { %6228 = vadd.xlane.f32.xlu1 %v6227_v3 }
0x2bff   : > { %v6229_v33 = vpop.xlane.xlu1 %6228 }
0x2c00   : > { %v6230_v34 = vmul.f32 0.007874016, %v6229_v33 }
0x2c02   : > { %7929 = vrsqrt.f32 %v6230_v34  ;;  %vm6233_vm0 = vcmp.eq.f32.partialorder %v6230_v34, inf  ;;  %v6236_v2 = vand.u32 2147483648, %v6230_v34  ;;  %vm6235_vm3 = vcmp.eq.f32.partialorder %v6230_v34, 0.0 }
0x2c0f   : > { %v7930_v35 = vpop.eup %7929 }
0x2c10   : > { %v6232_v37 = vmul.f32 %v7930_v35, %v6230_v34 }
0x2c12   : > { %v6234_v38 = vsel %vm6233_vm0, %v6230_v34, %v6232_v37 }
0x2c13   : > { %v6237_v39 = vsel %vm6235_vm3, %v6236_v2, %v6234_v38 }
0x2c14   : > { %v6238_v40 = vadd.f32 1e-06, %v6237_v39 }
0x2c16   : > { %7931 = vrcp.f32 %v6238_v40 }
0x2c23   : > { %v7932_v42 = vpop.eup %7931 }
0x2c24   : > { %v6240_v18 = vmul.f32 %v7932_v42, %v8855_v0 }
0x2c26   : > { %v6241_v43 = vmul.f32 %v6240_v18, %v4534_v8 }
0x2c28   : > { %v6242_v44 = vadd.f32 %v6241_v43, %v4535_v9 }
0x2c2a   : > { %v6243_v46 = vpack.c.bf16 %v6242_v44, %v6242_v44 }
0x2c2c   : > { %6368 = vmatmul.mubr.bf16.vlgmr.msra.gmra.mxu1 %v6243_v46 }
0x2cec   : > { %v6369_v57 = vpop.f32.mrf.mxu1 }
0x2ced   : > { %v6370_v24 = vadd.f32 %v6369_v57, %v6248_v55 }
0x2cee   : > { %v6371_v29 = vpop.f32.mrf.mxu1 }
0x2cef   : > { %v6372_v58 = vadd.f32 %v6371_v29, %v6252_v56  ;;  %v6376_v59 = vmax.f32 %v6370_v24, 0.0 }
0x2cf0   : > { %v6373_v62 = vpop.f32.mrf.mxu1 }
0x2cf1   : > { %v6377_v1 = vmax.f32 %v6372_v58, 0.0  ;;  %v6378_v0 = vpack.c.bf16 %v6376_v59, %v6376_v59 }
0x2cf2   : > { %v6374_v63 = vpop.f32.mrf.mxu1 }
0x2cf3   : > { %v6379_v36 = vpack.c.bf16 %v6377_v1, %v6377_v1 }
0x2cf5   : > { %6508 = vmatprep.mubr.bf16.mxu0 %v6379_v36 }
0x2cf6   : > { %6509 = vmatmul.mubr.bf16.vlgmr.msra.gmra.mxu0 %v6378_v0 }
0x2db6   : > { %v7133_v3 = vpop.f32.mrf.mxu0 }
0x2db8   : > { %v7134_v5 = vpop.f32.mrf.mxu0 }
0x2db9   : > { %v7135_v6 = vadd.f32 %v7134_v5, %v7133_v3 }
0x2dba   : > { %v7136_v13 = vpop.f32.mrf.mxu0 }
0x2dbb   : > { %v6511_v50 = vadd.f32 %v7135_v6, %v4531_v4 }
0x2dbc   : > { %v7137_v7 = vpop.f32.mrf.mxu0 }
0x2dbd   : > { %v6516_v48 = vadd.f32 %v6511_v50, %v8851_v61 }
0x2dbf   : > { %6519 = vadd.xlane.f32.xlu0 %v6516_v48 }
0x2e48   : > { %v6520_v41 = vpop.xlane.xlu0 %6519 }
0x2e49   : > { %v6521_v12 = vmul.f32 0.0078125, %v6520_v41 }
0x2e4b   : > { %v6522_v10 = vsub.f32 %v6516_v48, %v6521_v12 }
0x2e4d   : > { %v6523_v45 = vmul.f32 %v6522_v10, %v6522_v10 }
0x2e4f   : > { %6524 = vadd.xlane.f32.xlu0 %v6523_v45 }
0x2ed8   : > { %v6525_v11 = vpop.xlane.xlu0 %6524 }
0x2ed9   : > { %v6526_v51 = vmul.f32 0.007874016, %v6525_v11 }
0x2edb   : > { %7933 = vrsqrt.f32 %v6526_v51  ;;  %vm6529_vm4 = vcmp.eq.f32.partialorder %v6526_v51, inf  ;;  %v6532_v16 = vand.u32 2147483648, %v6526_v51  ;;  %vm6531_vm5 = vcmp.eq.f32.partialorder %v6526_v51, 0.0 }
0x2ee8   : > { %v7934_v15 = vpop.eup %7933 }
0x2ee9   : > { %v6528_v54 = vmul.f32 %v7934_v15, %v6526_v51 }
0x2eeb   : > { %v6530_v17 = vsel %vm6529_vm4, %v6526_v51, %v6528_v54 }
0x2eec   : > { %v6533_v19 = vsel %vm6531_vm5, %v6532_v16, %v6530_v17 }
0x2eed   : > { %v6534_v20 = vadd.f32 1e-06, %v6533_v19 }
0x2eef   : > { %7935 = vrcp.f32 %v6534_v20 }
0x2efc   : > { %v7936_v61 = vpop.eup %7935 }
0x2efd   : > { %v6536_v60 = vmul.f32 %v7936_v61, %v6522_v10 }
0x2eff   : > { %v6537_v25 = vmul.f32 %v6536_v60, %v6517_v21 }
0x2f01   : > { %v6538_v26 = vadd.f32 %v6537_v25, %v6518_v23 }
0x2f03   : > { %6539 = vst [vmem:[%s229_s27] sm:$0xff] %v6538_v26 }
0x2f04   : > { %8005 = shalt.err (!%p8002_p3)
}
0x2f05   : > { %s8006_s10 = scalar_lea.hbm %s6552_s5, 128  ;;  %s8010_s13 = scalar_lea.hbm %s8901_s4, 256 }
0x2f06   : > { %p8007_p2 = scmp.ne.s32.totalorder %s6552_s5, %s8006_s10  ;;  %p8011_p6 = scmp.lt.s32.totalorder %s6552_s5, %s8901_s4 }
0x2f07   : > { %p8012_p9 = scmp.lt.s32.totalorder %s8010_s13, %s8006_s10 }
0x2f08   : > { %p8008_p4 = pnand %p8007_p2, %p8142_p5 }
0x2f09   : > { %p8013_p7 = por %p8012_p9, %p8011_p6 }
0x2f0a   : > { %p8009_p13 = pneg %p8008_p4 }
0x2f0c   : > { %p8014_p10 = pnand %p8013_p7, %p8009_p13 }
0x2f0e   : > { %8017 = shalt.err (!%p8014_p10)
}
0x2f0f   : > { %7507 = dma.vmem_to_hbm [thread:$0]  (%p8142_p5), %s6555_s28, 128, %s6552_s5, %s6541_s6  }
0x2f10 PF: > { %p7524_p12 = scmp.ge.s32.totalorder %s8060_s18, 2  ;;  %s6566_s22 = sand.u32 1, %s8048_s15  }
0x2f11   : > { %p8911_p8 = scmp.ne.s32.totalorder %s8904_s26, 0  ;;  %s6567_s23 = scalar_lea.sflag [#allocation4], %s6566_s22 }
0x2f13   : > { %p7517_p11 = pnand %p7524_p12, %p8911_p8 }
0x2f15   : > { %p7518_p0 = pneg %p7517_p11 }
0x2f17   : > { %8043 = dma.done.wait (%p7518_p0), %s6567_s23, 128  }
0x2f18   : > { %8045 = vsyncadd (%p7518_p0), %s6567_s23, 4294967168  ;;  %p16_p1 = scmp.ge.s32.totalorder %s8129_s21, 4   ;;  %s8912_s15 = smov %s8052_s16 }
0x2f19   : > { %s8913_s16 = smov %s8056_s17  ;;  %s8914_s17 = smov %s8140_s24 }
0x2f1a   : > { %s8915_s18 = smov %s8129_s21  ;;  %18 = sbr.rel (!%p16_p1) target bundleno = 5 (0x5), region = 90 }
0x2f1f   :  { %6572 = vsyncpa [#allocation3], 1 }
0x2f20   :  { %6574 = vsyncpa [#allocation3 + $0x1], 1 }
0x2f21   :  { %6575 = vsyncpa [#allocation6], 1 }
0x2f22   :  { %6576 = vsyncpa [#allocation4], 1 }
0x2f23   :  { %6578 = vsyncpa [#allocation4 + $0x1], 1 }

</bundles_post_ra>
